<compile_context>
chip_gen: v5e
topology: v5e:2x2
jax: 0.10.0
libtpu: 0.0.40
codegen_flags: <defaults>
</compile_context>

<pallas_src>
import math
import numpy as np
import jax
import jax.numpy as jnp
from jax.experimental import pallas as pl
from jax.experimental.pallas import tpu as pltpu


def bilinear_upsample_matrix(l_in, l_out):
    """Matches nn.Upsample(size=(l_out, 1), mode='bilinear', align_corners=False)
    applied over the length axis (the width axis is 1 -> 1, i.e. identity)."""
    u = np.zeros((l_out, l_in), dtype=np.float32)
    scale = l_in / l_out
    for i in range(l_out):
        src = (i + 0.5) * scale - 0.5
        src = max(src, 0.0)
        i0 = min(int(np.floor(src)), l_in - 1)
        i1 = min(i0 + 1, l_in - 1)
        w1 = src - i0
        u[i, i0] += 1.0 - w1
        u[i, i1] += w1
    return u


def make_kernel(D, H, scales):
    """Single-step kernel: all scales & batches folded onto the row axis."""
    S = len(scales)
    kmax = max(scales)
    hd = D // H
    inv_sqrt_hd = 1.0 / math.sqrt(hd)
    G = 128 // D                      # rows packed per 128-lane output row
    f32 = jnp.float32
    bf16 = jnp.bfloat16

    def bdot(a, b):
        # bf16 MXU operands (native on v5e/v6e/v7x), f32 accumulation.
        return jnp.dot(a.astype(bf16), b.astype(bf16), preferred_element_type=f32)

    def bdot_nt(a, b):
        # a @ b.T without an explicit transpose (contract last dims on the MXU).
        return jax.lax.dot_general(a.astype(bf16), b.astype(bf16),
                                   (((1,), (1,)), ((), ())),
                                   preferred_element_type=f32)

    def layer_norm(v, g, b):
        mu = jnp.mean(v, axis=-1, keepdims=True)
        var = jnp.mean((v - mu) ** 2, axis=-1, keepdims=True)
        return (v - mu) * jax.lax.rsqrt(var + 1e-5) * g + b

    def kernel(x_ref, pos_ref, sh_ref, place_ref, wc_ref, bc_ref, ln_ref, mask_ref,
               wqkv_ref, bqkv_ref, wo_ref, bo_ref, w1_ref, b1_ref, w2_ref, b2_ref,
               ug_ref, eg_ref, o_ref, ctx_ref):
        # x + pos_embed (pos_drop is identity at inference): one (B*L, D) slab.
        xp = x_ref[...].astype(f32) + pos_ref[...].astype(f32)

        # Shifted slabs for the conv taps: xsh[j][r] = x[b, t+j] (0 past the end of
        # each sequence).  The shift is a host-built within-batch 0/1 matrix -> MXU.
        xsh = [xp]
        for j in range(1, kmax):
            xsh.append(bdot(sh_ref[j - 1], xp))

        # Conv1d(dim, dim, k_s), valid: per-tap accumulating matmuls per stage, then
        # lift each stage's (B*L, D) rows into its block of the folded (S*B*L, D)
        # slab with a 0/1 placement matrix (again MXU, no concat/relayout).
        h = None
        for s, ks in enumerate(scales):
            hs = bdot(xsh[0], wc_ref[s, 0])
            for j in range(1, ks):
                hs = hs + bdot(xsh[j], wc_ref[s, j])
            lift = bdot(place_ref[s], hs)                       # (S*B*L, D)
            h = lift if h is None else h + lift
        h = h + bc_ref[...]                                     # per-stage conv bias

        # ---- self-attention sublayer (pre-norm, residual, shared weights) ----
        hn = layer_norm(h, ln_ref[0], ln_ref[1])                # per-stage LN params
        q = bdot(hn, wqkv_ref[0]) + bqkv_ref[0]
        k = bdot(hn, wqkv_ref[1]) + bqkv_ref[1]
        v = bdot(hn, wqkv_ref[2]) + bqkv_ref[2]
        mask = mask_ref[...]                                    # (R, R) additive, f32

        for hi in range(H):
            sl = slice(hi * hd, (hi + 1) * hd)
            sc = bdot_nt(q[:, sl], k[:, sl]) * inv_sqrt_hd + mask
            m = jnp.max(sc, axis=-1, keepdims=True)
            e = jnp.exp(sc - m)
            p = e * pl.reciprocal(jnp.sum(e, axis=-1, keepdims=True), approx=True)
            # per-head context written into its lane slice; Wo applied ONCE below.
            ctx_ref[:, sl] = bdot(p, v[:, sl])
        h = h + bdot(ctx_ref[...], wo_ref[...]) + bo_ref[...]

        # ---- feed-forward sublayer (pre-norm, residual, shared weights) ----
        hn2 = layer_norm(h, ln_ref[2], ln_ref[3])
        ff = jnp.maximum(bdot(hn2, w1_ref[...]) + b1_ref[...], 0.0)
        h = h + bdot(ff, w2_ref[...]) + b2_ref[...]

        # ---- bilinear upsample, emitted as a lane-dense (R*D/128, 128) slab ----
        # dense[m, g*D + c] = (Ufull @ h)[m*G + g, c]; Ug[g] = Ufull[g::G] and Eg[g]
        # places D columns at lane offset g*D -- all matmuls, no in-kernel reshape.
        dense = bdot(bdot(ug_ref[0], h), eg_ref[0])
        for g in range(1, G):
            dense = dense + bdot(bdot(ug_ref[g], h), eg_ref[g])
        o_ref[...] = dense.astype(o_ref.dtype)

    return kernel


def multi_scale_encoder(x, params, scales, L_out=10):
    B, L, D = x.shape
    S = len(scales)
    kmax = max(scales)
    H = params['nhead']
    BL = B * L
    R = S * BL                       # folded row count (queries)
    RO = S * B * L_out               # folded output row count
    assert 128 % D == 0, "hid_dim must divide 128 for the lane-dense output path"
    G = 128 // D
    assert RO % G == 0, "S*B*L_out must be a multiple of 128 // hid_dim"
    DR = (RO * D) // 128             # lane-dense output rows

    # ---- host-built constant matrices (all tiny, DMA'd once) ----
    # within-batch shift: (sh_j @ xp)[b*L + t] = xp[b*L + t + j] if t + j < L else 0
    sh = np.zeros((max(kmax - 1, 1), BL, BL), np.float32)
    for j in range(1, kmax):
        for b in range(B):
            for t in range(L - j):
                sh[j - 1, b * L + t, b * L + t + j] = 1.0
    # stage placement ("lift") matrices: rows s*BL..(s+1)*BL <- identity
    place = np.zeros((S, R, BL), np.float32)
    for s in range(S):
        place[s, s * BL:(s + 1) * BL, :] = np.eye(BL, dtype=np.float32)
    # block-diagonal additive mask (same stage, same batch, key t' < Lc_s) and the
    # block-diagonal bilinear-upsample matrix over the folded rows.
    mask = np.full((R, R), -1e9, np.float32)
    u_full = np.zeros((RO, R), np.float32)
    for s, k in enumerate(scales):
        Lc = L - k + 1
        u = bilinear_upsample_matrix(Lc, L_out)
        for b in range(B):
            r0 = s * BL + b * L
            o0 = s * B * L_out + b * L_out
            mask[r0:r0 + L, r0:r0 + Lc] = 0.0
            u_full[o0:o0 + L_out, r0:r0 + Lc] = u
    # strided row groups of U + lane-placement matrices -> lane-dense (DR, 128) out
    ug = np.stack([u_full[g::G] for g in range(G)])             # (G, DR, R)
    eg = np.zeros((G, D, 128), np.float32)
    for g in range(G):
        eg[g, :, g * D:(g + 1) * D] = np.eye(D, dtype=np.float32)

    # per-stage parameters expanded over their row blocks (stage folded onto rows)
    def rep(a):                                                  # (S, D) -> (R, D)
        return jnp.repeat(a, BL, axis=0)
    bc_all = rep(params['bc'])
    ln_all = jnp.stack([rep(params['ln1_g']), rep(params['ln1_b']),
                        rep(params['ln2_g']), rep(params['ln2_b'])])
    pos_tiled = jnp.tile(params['pos_embed'], (B, 1))            # (B*L, D)
    x_flat = x.reshape(BL, D)

    inputs = [x_flat, pos_tiled, jnp.asarray(sh), jnp.asarray(place),
              params['wc'], bc_all, ln_all, jnp.asarray(mask),
              params['wqkv'], params['bqkv'], params['wo'], params['bo'],
              params['w1'], params['b1'], params['w2'], params['b2'],
              jnp.asarray(ug), jnp.asarray(eg)]

    def full_spec(a):
        n = a.ndim
        return pl.BlockSpec(tuple(a.shape), lambda i, n=n: (0,) * n)

    kern = make_kernel(D, H, scales)
    dense = pl.pallas_call(
        kern,
        out_shape=jax.ShapeDtypeStruct((DR, 128), x.dtype),
        grid=(1,),                                   # ONE step: scales folded on rows
        in_specs=[full_spec(a) for a in inputs],
        out_specs=pl.BlockSpec((DR, 128), lambda i: (0, 0)),
        scratch_shapes=[pltpu.VMEM((R, D), jnp.float32)],        # per-head ctx buffer
        compiler_params=pltpu.CompilerParams(
            dimension_semantics=("arbitrary",)),
    )(*inputs)

    out_full = dense.reshape(S, B, L_out, D)
    # Same list-of-(B, 10, D) structure as the PyTorch forward.
    return [out_full[s] for s in range(S)]


def init_params(key, D, F, H, scales, L=10):
    ks = iter(jax.random.split(key, 32))
    S = len(scales)
    kmax = max(scales)

    def nrm(shape, s=0.05):
        return jax.random.normal(next(ks), shape, jnp.float32) * s

    # Conv weights per stage/tap: wc[s, j] == torch_conv_weight_s[:, :, j].T; taps
    # j >= k_s are zeroed (and statically skipped in the kernel).
    tap_mask = np.zeros((S, kmax, 1, 1), np.float32)
    for s, k in enumerate(scales):
        tap_mask[s, :k] = 1.0
    wc = nrm((S, kmax, D, D)) * jnp.asarray(tap_mask)

    params = {
        'nhead': H, 'ffn_dim': F,
        # nn.Parameter(torch.zeros(1, 10, dim)) -- small-random here so the kernel
        # path is exercised with non-trivial values.
        'pos_embed': nrm((L, D), 0.02),
        # shared MultiHeadAttention weights (same instance reused across scales)
        'wqkv': nrm((3, D, D)), 'bqkv': nrm((3, 1, D), 0.01),
        'wo': nrm((D, D)), 'bo': nrm((1, D), 0.01),
        # shared PositionwiseFeedForward weights
        'w1': nrm((D, F)), 'b1': nrm((1, F), 0.01),
        'w2': nrm((F, D)), 'b2': nrm((1, D), 0.01),
        # per-stage parameters
        'wc': wc,                       # (S, kmax, D, D)
        'bc': nrm((S, D), 0.01),        # conv bias per stage
        'ln1_g': jnp.ones((S, D), jnp.float32),
        'ln1_b': jnp.zeros((S, D), jnp.float32),
        'ln2_g': jnp.ones((S, D), jnp.float32),
        'ln2_b': jnp.zeros((S, D), jnp.float32),
    }
    return params


if __name__ == "__main__":
    # small, module-consistent shapes: seq len fixed at 10 by pos_embed / Upsample(10,1)
    B, L, D, F, H = 2, 10, 32, 64, 4
    scales = [1, 2, 3]            # args.scale; args.num_scale = 3

    key = jax.random.PRNGKey(0)
    kx, kp = jax.random.split(key)
    x = jax.random.normal(kx, (B, L, D), jnp.float32)
    params = init_params(kp, D, F, H, scales, L)

    outs = multi_scale_encoder(x, params, scales)
    outs = jax.block_until_ready(outs)

    assert len(outs) == len(scales)
    for o in outs:
        assert o.shape == (B, 10, D), o.shape
        assert bool(jnp.all(jnp.isfinite(o)))
    print("KERNEL_OK")
</pallas_src>

<mosaic_0001>
module attributes {stable_mosaic.version = 11 : i64} {
  func.func @kernel(%arg0: i32, %arg1: memref<20x32xf32, #tpu.memory_space<vmem>>, %arg2: memref<20x32xf32, #tpu.memory_space<vmem>>, %arg3: memref<2x20x20xf32, #tpu.memory_space<vmem>>, %arg4: memref<3x60x20xf32, #tpu.memory_space<vmem>>, %arg5: memref<3x3x32x32xf32, #tpu.memory_space<vmem>>, %arg6: memref<60x32xf32, #tpu.memory_space<vmem>>, %arg7: memref<4x60x32xf32, #tpu.memory_space<vmem>>, %arg8: memref<60x60xf32, #tpu.memory_space<vmem>>, %arg9: memref<3x32x32xf32, #tpu.memory_space<vmem>>, %arg10: memref<3x1x32xf32, #tpu.memory_space<vmem>>, %arg11: memref<32x32xf32, #tpu.memory_space<vmem>>, %arg12: memref<1x32xf32, #tpu.memory_space<vmem>>, %arg13: memref<32x64xf32, #tpu.memory_space<vmem>>, %arg14: memref<1x64xf32, #tpu.memory_space<vmem>>, %arg15: memref<64x32xf32, #tpu.memory_space<vmem>>, %arg16: memref<1x32xf32, #tpu.memory_space<vmem>>, %arg17: memref<4x15x60xf32, #tpu.memory_space<vmem>>, %arg18: memref<4x32x128xf32, #tpu.memory_space<vmem>>, %arg19: memref<15x128xf32, #tpu.memory_space<vmem>>, %arg20: memref<60x32xf32, #tpu.memory_space<vmem>>) attributes {dimension_semantics = [#tpu.dimension_semantics<arbitrary>], iteration_bounds = array<i64: 1>, scalar_prefetch = 0 : i64, scratch_operands = 1 : i64, tpu.core_type = #tpu.core_type<tc>, window_params = [{pipeline_mode = #tpu.pipeline_mode<synchronous>, transform_indices = @transform_0, window_bounds = array<i64: 20, 32>}, {pipeline_mode = #tpu.pipeline_mode<synchronous>, transform_indices = @transform_1, window_bounds = array<i64: 20, 32>}, {pipeline_mode = #tpu.pipeline_mode<synchronous>, transform_indices = @transform_2, window_bounds = array<i64: 2, 20, 20>}, {pipeline_mode = #tpu.pipeline_mode<synchronous>, transform_indices = @transform_3, window_bounds = array<i64: 3, 60, 20>}, {pipeline_mode = #tpu.pipeline_mode<synchronous>, transform_indices = @transform_4, window_bounds = array<i64: 3, 3, 32, 32>}, {pipeline_mode = #tpu.pipeline_mode<synchronous>, transform_indices = @transform_5, window_bounds = array<i64: 60, 32>}, {pipeline_mode = #tpu.pipeline_mode<synchronous>, transform_indices = @transform_6, window_bounds = array<i64: 4, 60, 32>}, {pipeline_mode = #tpu.pipeline_mode<synchronous>, transform_indices = @transform_7, window_bounds = array<i64: 60, 60>}, {pipeline_mode = #tpu.pipeline_mode<synchronous>, transform_indices = @transform_8, window_bounds = array<i64: 3, 32, 32>}, {pipeline_mode = #tpu.pipeline_mode<synchronous>, transform_indices = @transform_9, window_bounds = array<i64: 3, 1, 32>}, {pipeline_mode = #tpu.pipeline_mode<synchronous>, transform_indices = @transform_10, window_bounds = array<i64: 32, 32>}, {pipeline_mode = #tpu.pipeline_mode<synchronous>, transform_indices = @transform_11, window_bounds = array<i64: 1, 32>}, {pipeline_mode = #tpu.pipeline_mode<synchronous>, transform_indices = @transform_12, window_bounds = array<i64: 32, 64>}, {pipeline_mode = #tpu.pipeline_mode<synchronous>, transform_indices = @transform_13, window_bounds = array<i64: 1, 64>}, {pipeline_mode = #tpu.pipeline_mode<synchronous>, transform_indices = @transform_14, window_bounds = array<i64: 64, 32>}, {pipeline_mode = #tpu.pipeline_mode<synchronous>, transform_indices = @transform_15, window_bounds = array<i64: 1, 32>}, {pipeline_mode = #tpu.pipeline_mode<synchronous>, transform_indices = @transform_16, window_bounds = array<i64: 4, 15, 60>}, {pipeline_mode = #tpu.pipeline_mode<synchronous>, transform_indices = @transform_17, window_bounds = array<i64: 4, 32, 128>}, {pipeline_mode = #tpu.pipeline_mode<synchronous>, transform_indices = @transform_18, window_bounds = array<i64: 15, 128>}]} {
    %c0 = arith.constant 0 : index
    %c0_0 = arith.constant 0 : index
    %0 = vector.load %arg1[%c0, %c0_0] : memref<20x32xf32, #tpu.memory_space<vmem>>, vector<20x32xf32>
    %c0_1 = arith.constant 0 : index
    %c0_2 = arith.constant 0 : index
    %1 = vector.load %arg2[%c0_1, %c0_2] : memref<20x32xf32, #tpu.memory_space<vmem>>, vector<20x32xf32>
    %2 = arith.addf %0, %1 : vector<20x32xf32>
    %c0_3 = arith.constant 0 : index
    %c0_4 = arith.constant 0 : index
    %c0_5 = arith.constant 0 : index
    %3 = vector.load %arg3[%c0_3, %c0_4, %c0_5] : memref<2x20x20xf32, #tpu.memory_space<vmem>>, vector<1x20x20xf32>
    %4 = vector.shape_cast %3 : vector<1x20x20xf32> to vector<20x20xf32>
    %5 = arith.truncf %4 : vector<20x20xf32> to vector<20x20xbf16>
    %6 = arith.truncf %2 : vector<20x32xf32> to vector<20x32xbf16>
    %cst = arith.constant dense<0.000000e+00> : vector<20x32xf32>
    %7 = tpu.matmul %5, %6, %cst {dimension_numbers = #tpu.dot_dimension_numbers<[1], [0], [0], [1], [0, 0, 1, 1], [], []>} : vector<20x20xbf16>, vector<20x32xbf16>, vector<20x32xf32> -> vector<20x32xf32>
    %c1 = arith.constant 1 : index
    %c0_6 = arith.constant 0 : index
    %c0_7 = arith.constant 0 : index
    %8 = vector.load %arg3[%c1, %c0_6, %c0_7] : memref<2x20x20xf32, #tpu.memory_space<vmem>>, vector<1x20x20xf32>
    %9 = vector.shape_cast %8 : vector<1x20x20xf32> to vector<20x20xf32>
    %10 = arith.truncf %9 : vector<20x20xf32> to vector<20x20xbf16>
    %11 = arith.truncf %2 : vector<20x32xf32> to vector<20x32xbf16>
    %cst_8 = arith.constant dense<0.000000e+00> : vector<20x32xf32>
    %12 = tpu.matmul %10, %11, %cst_8 {dimension_numbers = #tpu.dot_dimension_numbers<[1], [0], [0], [1], [0, 0, 1, 1], [], []>} : vector<20x20xbf16>, vector<20x32xbf16>, vector<20x32xf32> -> vector<20x32xf32>
    %c0_9 = arith.constant 0 : index
    %c0_10 = arith.constant 0 : index
    %c0_11 = arith.constant 0 : index
    %c0_12 = arith.constant 0 : index
    %13 = vector.load %arg5[%c0_9, %c0_10, %c0_11, %c0_12] : memref<3x3x32x32xf32, #tpu.memory_space<vmem>>, vector<1x1x32x32xf32>
    %14 = vector.shape_cast %13 : vector<1x1x32x32xf32> to vector<32x32xf32>
    %15 = arith.truncf %2 : vector<20x32xf32> to vector<20x32xbf16>
    %16 = arith.truncf %14 : vector<32x32xf32> to vector<32x32xbf16>
    %cst_13 = arith.constant dense<0.000000e+00> : vector<20x32xf32>
    %17 = tpu.matmul %15, %16, %cst_13 {dimension_numbers = #tpu.dot_dimension_numbers<[1], [0], [0], [1], [0, 0, 1, 1], [], []>} : vector<20x32xbf16>, vector<32x32xbf16>, vector<20x32xf32> -> vector<20x32xf32>
    %c0_14 = arith.constant 0 : index
    %c0_15 = arith.constant 0 : index
    %c0_16 = arith.constant 0 : index
    %18 = vector.load %arg4[%c0_14, %c0_15, %c0_16] : memref<3x60x20xf32, #tpu.memory_space<vmem>>, vector<1x60x20xf32>
    %19 = vector.shape_cast %18 : vector<1x60x20xf32> to vector<60x20xf32>
    %20 = arith.truncf %19 : vector<60x20xf32> to vector<60x20xbf16>
    %21 = arith.truncf %17 : vector<20x32xf32> to vector<20x32xbf16>
    %cst_17 = arith.constant dense<0.000000e+00> : vector<60x32xf32>
    %22 = tpu.matmul %20, %21, %cst_17 {dimension_numbers = #tpu.dot_dimension_numbers<[1], [0], [0], [1], [0, 0, 1, 1], [], []>} : vector<60x20xbf16>, vector<20x32xbf16>, vector<60x32xf32> -> vector<60x32xf32>
    %c1_18 = arith.constant 1 : index
    %c0_19 = arith.constant 0 : index
    %c0_20 = arith.constant 0 : index
    %c0_21 = arith.constant 0 : index
    %23 = vector.load %arg5[%c1_18, %c0_19, %c0_20, %c0_21] : memref<3x3x32x32xf32, #tpu.memory_space<vmem>>, vector<1x1x32x32xf32>
    %24 = vector.shape_cast %23 : vector<1x1x32x32xf32> to vector<32x32xf32>
    %25 = arith.truncf %2 : vector<20x32xf32> to vector<20x32xbf16>
    %26 = arith.truncf %24 : vector<32x32xf32> to vector<32x32xbf16>
    %cst_22 = arith.constant dense<0.000000e+00> : vector<20x32xf32>
    %27 = tpu.matmul %25, %26, %cst_22 {dimension_numbers = #tpu.dot_dimension_numbers<[1], [0], [0], [1], [0, 0, 1, 1], [], []>} : vector<20x32xbf16>, vector<32x32xbf16>, vector<20x32xf32> -> vector<20x32xf32>
    %c1_23 = arith.constant 1 : index
    %c1_24 = arith.constant 1 : index
    %c0_25 = arith.constant 0 : index
    %c0_26 = arith.constant 0 : index
    %28 = vector.load %arg5[%c1_23, %c1_24, %c0_25, %c0_26] : memref<3x3x32x32xf32, #tpu.memory_space<vmem>>, vector<1x1x32x32xf32>
    %29 = vector.shape_cast %28 : vector<1x1x32x32xf32> to vector<32x32xf32>
    %30 = arith.truncf %7 : vector<20x32xf32> to vector<20x32xbf16>
    %31 = arith.truncf %29 : vector<32x32xf32> to vector<32x32xbf16>
    %cst_27 = arith.constant dense<0.000000e+00> : vector<20x32xf32>
    %32 = tpu.matmul %30, %31, %cst_27 {dimension_numbers = #tpu.dot_dimension_numbers<[1], [0], [0], [1], [0, 0, 1, 1], [], []>} : vector<20x32xbf16>, vector<32x32xbf16>, vector<20x32xf32> -> vector<20x32xf32>
    %33 = arith.addf %27, %32 : vector<20x32xf32>
    %c1_28 = arith.constant 1 : index
    %c0_29 = arith.constant 0 : index
    %c0_30 = arith.constant 0 : index
    %34 = vector.load %arg4[%c1_28, %c0_29, %c0_30] : memref<3x60x20xf32, #tpu.memory_space<vmem>>, vector<1x60x20xf32>
    %35 = vector.shape_cast %34 : vector<1x60x20xf32> to vector<60x20xf32>
    %36 = arith.truncf %35 : vector<60x20xf32> to vector<60x20xbf16>
    %37 = arith.truncf %33 : vector<20x32xf32> to vector<20x32xbf16>
    %cst_31 = arith.constant dense<0.000000e+00> : vector<60x32xf32>
    %38 = tpu.matmul %36, %37, %cst_31 {dimension_numbers = #tpu.dot_dimension_numbers<[1], [0], [0], [1], [0, 0, 1, 1], [], []>} : vector<60x20xbf16>, vector<20x32xbf16>, vector<60x32xf32> -> vector<60x32xf32>
    %39 = arith.addf %22, %38 : vector<60x32xf32>
    %c2 = arith.constant 2 : index
    %c0_32 = arith.constant 0 : index
    %c0_33 = arith.constant 0 : index
    %c0_34 = arith.constant 0 : index
    %40 = vector.load %arg5[%c2, %c0_32, %c0_33, %c0_34] : memref<3x3x32x32xf32, #tpu.memory_space<vmem>>, vector<1x1x32x32xf32>
    %41 = vector.shape_cast %40 : vector<1x1x32x32xf32> to vector<32x32xf32>
    %42 = arith.truncf %2 : vector<20x32xf32> to vector<20x32xbf16>
    %43 = arith.truncf %41 : vector<32x32xf32> to vector<32x32xbf16>
    %cst_35 = arith.constant dense<0.000000e+00> : vector<20x32xf32>
    %44 = tpu.matmul %42, %43, %cst_35 {dimension_numbers = #tpu.dot_dimension_numbers<[1], [0], [0], [1], [0, 0, 1, 1], [], []>} : vector<20x32xbf16>, vector<32x32xbf16>, vector<20x32xf32> -> vector<20x32xf32>
    %c2_36 = arith.constant 2 : index
    %c1_37 = arith.constant 1 : index
    %c0_38 = arith.constant 0 : index
    %c0_39 = arith.constant 0 : index
    %45 = vector.load %arg5[%c2_36, %c1_37, %c0_38, %c0_39] : memref<3x3x32x32xf32, #tpu.memory_space<vmem>>, vector<1x1x32x32xf32>
    %46 = vector.shape_cast %45 : vector<1x1x32x32xf32> to vector<32x32xf32>
    %47 = arith.truncf %7 : vector<20x32xf32> to vector<20x32xbf16>
    %48 = arith.truncf %46 : vector<32x32xf32> to vector<32x32xbf16>
    %cst_40 = arith.constant dense<0.000000e+00> : vector<20x32xf32>
    %49 = tpu.matmul %47, %48, %cst_40 {dimension_numbers = #tpu.dot_dimension_numbers<[1], [0], [0], [1], [0, 0, 1, 1], [], []>} : vector<20x32xbf16>, vector<32x32xbf16>, vector<20x32xf32> -> vector<20x32xf32>
    %50 = arith.addf %44, %49 : vector<20x32xf32>
    %c2_41 = arith.constant 2 : index
    %c2_42 = arith.constant 2 : index
    %c0_43 = arith.constant 0 : index
    %c0_44 = arith.constant 0 : index
    %51 = vector.load %arg5[%c2_41, %c2_42, %c0_43, %c0_44] : memref<3x3x32x32xf32, #tpu.memory_space<vmem>>, vector<1x1x32x32xf32>
    %52 = vector.shape_cast %51 : vector<1x1x32x32xf32> to vector<32x32xf32>
    %53 = arith.truncf %12 : vector<20x32xf32> to vector<20x32xbf16>
    %54 = arith.truncf %52 : vector<32x32xf32> to vector<32x32xbf16>
    %cst_45 = arith.constant dense<0.000000e+00> : vector<20x32xf32>
    %55 = tpu.matmul %53, %54, %cst_45 {dimension_numbers = #tpu.dot_dimension_numbers<[1], [0], [0], [1], [0, 0, 1, 1], [], []>} : vector<20x32xbf16>, vector<32x32xbf16>, vector<20x32xf32> -> vector<20x32xf32>
    %56 = arith.addf %50, %55 : vector<20x32xf32>
    %c2_46 = arith.constant 2 : index
    %c0_47 = arith.constant 0 : index
    %c0_48 = arith.constant 0 : index
    %57 = vector.load %arg4[%c2_46, %c0_47, %c0_48] : memref<3x60x20xf32, #tpu.memory_space<vmem>>, vector<1x60x20xf32>
    %58 = vector.shape_cast %57 : vector<1x60x20xf32> to vector<60x20xf32>
    %59 = arith.truncf %58 : vector<60x20xf32> to vector<60x20xbf16>
    %60 = arith.truncf %56 : vector<20x32xf32> to vector<20x32xbf16>
    %cst_49 = arith.constant dense<0.000000e+00> : vector<60x32xf32>
    %61 = tpu.matmul %59, %60, %cst_49 {dimension_numbers = #tpu.dot_dimension_numbers<[1], [0], [0], [1], [0, 0, 1, 1], [], []>} : vector<60x20xbf16>, vector<20x32xbf16>, vector<60x32xf32> -> vector<60x32xf32>
    %62 = arith.addf %39, %61 : vector<60x32xf32>
    %c0_50 = arith.constant 0 : index
    %c0_51 = arith.constant 0 : index
    %63 = vector.load %arg6[%c0_50, %c0_51] : memref<60x32xf32, #tpu.memory_space<vmem>>, vector<60x32xf32>
    %64 = arith.addf %62, %63 : vector<60x32xf32>
    %c0_52 = arith.constant 0 : index
    %c0_53 = arith.constant 0 : index
    %c0_54 = arith.constant 0 : index
    %65 = vector.load %arg7[%c0_52, %c0_53, %c0_54] : memref<4x60x32xf32, #tpu.memory_space<vmem>>, vector<1x60x32xf32>
    %66 = vector.shape_cast %65 : vector<1x60x32xf32> to vector<60x32xf32>
    %c1_55 = arith.constant 1 : index
    %c0_56 = arith.constant 0 : index
    %c0_57 = arith.constant 0 : index
    %67 = vector.load %arg7[%c1_55, %c0_56, %c0_57] : memref<4x60x32xf32, #tpu.memory_space<vmem>>, vector<1x60x32xf32>
    %68 = vector.shape_cast %67 : vector<1x60x32xf32> to vector<60x32xf32>
    %cst_58 = arith.constant dense<0.000000e+00> : vector<60xf32>
    %69 = vector.multi_reduction <add>, %64, %cst_58 [1] : vector<60x32xf32> to vector<60xf32>
    %70 = vector.shape_cast %69 : vector<60xf32> to vector<60x1xf32>
    %cst_59 = arith.constant 3.200000e+01 : f32
    %71 = vector.broadcast %cst_59 : f32 to vector<60x1xf32>
    %72 = arith.divf %70, %71 : vector<60x1xf32>
    %73 = vector.broadcast %72 : vector<60x1xf32> to vector<60x32xf32>
    %74 = arith.subf %64, %73 : vector<60x32xf32>
    %75 = arith.mulf %74, %74 : vector<60x32xf32>
    %cst_60 = arith.constant dense<0.000000e+00> : vector<60xf32>
    %76 = vector.multi_reduction <add>, %75, %cst_60 [1] : vector<60x32xf32> to vector<60xf32>
    %77 = vector.shape_cast %76 : vector<60xf32> to vector<60x1xf32>
    %cst_61 = arith.constant 3.200000e+01 : f32
    %78 = vector.broadcast %cst_61 : f32 to vector<60x1xf32>
    %79 = arith.divf %77, %78 : vector<60x1xf32>
    %80 = vector.broadcast %72 : vector<60x1xf32> to vector<60x32xf32>
    %81 = arith.subf %64, %80 : vector<60x32xf32>
    %cst_62 = arith.constant 9.99999974E-6 : f32
    %82 = vector.broadcast %cst_62 : f32 to vector<60x1xf32>
    %83 = arith.addf %79, %82 : vector<60x1xf32>
    %84 = math.rsqrt %83 : vector<60x1xf32>
    %85 = vector.broadcast %84 : vector<60x1xf32> to vector<60x32xf32>
    %86 = arith.mulf %81, %85 : vector<60x32xf32>
    %87 = arith.mulf %86, %66 : vector<60x32xf32>
    %88 = arith.addf %87, %68 : vector<60x32xf32>
    %c0_63 = arith.constant 0 : index
    %c0_64 = arith.constant 0 : index
    %c0_65 = arith.constant 0 : index
    %89 = vector.load %arg9[%c0_63, %c0_64, %c0_65] : memref<3x32x32xf32, #tpu.memory_space<vmem>>, vector<1x32x32xf32>
    %90 = vector.shape_cast %89 : vector<1x32x32xf32> to vector<32x32xf32>
    %91 = arith.truncf %88 : vector<60x32xf32> to vector<60x32xbf16>
    %92 = arith.truncf %90 : vector<32x32xf32> to vector<32x32xbf16>
    %cst_66 = arith.constant dense<0.000000e+00> : vector<60x32xf32>
    %93 = tpu.matmul %91, %92, %cst_66 {dimension_numbers = #tpu.dot_dimension_numbers<[1], [0], [0], [1], [0, 0, 1, 1], [], []>} : vector<60x32xbf16>, vector<32x32xbf16>, vector<60x32xf32> -> vector<60x32xf32>
    %c0_67 = arith.constant 0 : index
    %c0_68 = arith.constant 0 : index
    %c0_69 = arith.constant 0 : index
    %94 = vector.load %arg10[%c0_67, %c0_68, %c0_69] : memref<3x1x32xf32, #tpu.memory_space<vmem>>, vector<1x1x32xf32>
    %95 = vector.shape_cast %94 : vector<1x1x32xf32> to vector<1x32xf32>
    %96 = vector.broadcast %95 : vector<1x32xf32> to vector<60x32xf32>
    %97 = arith.addf %93, %96 : vector<60x32xf32>
    %c1_70 = arith.constant 1 : index
    %c0_71 = arith.constant 0 : index
    %c0_72 = arith.constant 0 : index
    %98 = vector.load %arg9[%c1_70, %c0_71, %c0_72] : memref<3x32x32xf32, #tpu.memory_space<vmem>>, vector<1x32x32xf32>
    %99 = vector.shape_cast %98 : vector<1x32x32xf32> to vector<32x32xf32>
    %100 = arith.truncf %88 : vector<60x32xf32> to vector<60x32xbf16>
    %101 = arith.truncf %99 : vector<32x32xf32> to vector<32x32xbf16>
    %cst_73 = arith.constant dense<0.000000e+00> : vector<60x32xf32>
    %102 = tpu.matmul %100, %101, %cst_73 {dimension_numbers = #tpu.dot_dimension_numbers<[1], [0], [0], [1], [0, 0, 1, 1], [], []>} : vector<60x32xbf16>, vector<32x32xbf16>, vector<60x32xf32> -> vector<60x32xf32>
    %c1_74 = arith.constant 1 : index
    %c0_75 = arith.constant 0 : index
    %c0_76 = arith.constant 0 : index
    %103 = vector.load %arg10[%c1_74, %c0_75, %c0_76] : memref<3x1x32xf32, #tpu.memory_space<vmem>>, vector<1x1x32xf32>
    %104 = vector.shape_cast %103 : vector<1x1x32xf32> to vector<1x32xf32>
    %105 = vector.broadcast %104 : vector<1x32xf32> to vector<60x32xf32>
    %106 = arith.addf %102, %105 : vector<60x32xf32>
    %c2_77 = arith.constant 2 : index
    %c0_78 = arith.constant 0 : index
    %c0_79 = arith.constant 0 : index
    %107 = vector.load %arg9[%c2_77, %c0_78, %c0_79] : memref<3x32x32xf32, #tpu.memory_space<vmem>>, vector<1x32x32xf32>
    %108 = vector.shape_cast %107 : vector<1x32x32xf32> to vector<32x32xf32>
    %109 = arith.truncf %88 : vector<60x32xf32> to vector<60x32xbf16>
    %110 = arith.truncf %108 : vector<32x32xf32> to vector<32x32xbf16>
    %cst_80 = arith.constant dense<0.000000e+00> : vector<60x32xf32>
    %111 = tpu.matmul %109, %110, %cst_80 {dimension_numbers = #tpu.dot_dimension_numbers<[1], [0], [0], [1], [0, 0, 1, 1], [], []>} : vector<60x32xbf16>, vector<32x32xbf16>, vector<60x32xf32> -> vector<60x32xf32>
    %c2_81 = arith.constant 2 : index
    %c0_82 = arith.constant 0 : index
    %c0_83 = arith.constant 0 : index
    %112 = vector.load %arg10[%c2_81, %c0_82, %c0_83] : memref<3x1x32xf32, #tpu.memory_space<vmem>>, vector<1x1x32xf32>
    %113 = vector.shape_cast %112 : vector<1x1x32xf32> to vector<1x32xf32>
    %114 = vector.broadcast %113 : vector<1x32xf32> to vector<60x32xf32>
    %115 = arith.addf %111, %114 : vector<60x32xf32>
    %c0_84 = arith.constant 0 : index
    %c0_85 = arith.constant 0 : index
    %116 = vector.load %arg8[%c0_84, %c0_85] : memref<60x60xf32, #tpu.memory_space<vmem>>, vector<60x60xf32>
    %117 = vector.extract_strided_slice %97 {offsets = [0, 0], sizes = [60, 8], strides = [1, 1]} : vector<60x32xf32> to vector<60x8xf32>
    %118 = vector.extract_strided_slice %106 {offsets = [0, 0], sizes = [60, 8], strides = [1, 1]} : vector<60x32xf32> to vector<60x8xf32>
    %119 = arith.truncf %117 : vector<60x8xf32> to vector<60x8xbf16>
    %120 = arith.truncf %118 : vector<60x8xf32> to vector<60x8xbf16>
    %cst_86 = arith.constant dense<0.000000e+00> : vector<60x60xf32>
    %121 = tpu.matmul %119, %120, %cst_86 {dimension_numbers = #tpu.dot_dimension_numbers<[1], [1], [0], [0], [0, 0, 1, 0], [], []>} : vector<60x8xbf16>, vector<60x8xbf16>, vector<60x60xf32> -> vector<60x60xf32>
    %cst_87 = arith.constant 0.353553385 : f32
    %122 = vector.broadcast %cst_87 : f32 to vector<60x60xf32>
    %123 = arith.mulf %121, %122 : vector<60x60xf32>
    %124 = arith.addf %123, %116 : vector<60x60xf32>
    %cst_88 = arith.constant dense<0xFF800000> : vector<60xf32>
    %125 = vector.multi_reduction <maximumf>, %124, %cst_88 [1] : vector<60x60xf32> to vector<60xf32>
    %126 = vector.shape_cast %125 : vector<60xf32> to vector<60x1xf32>
    %127 = vector.broadcast %126 : vector<60x1xf32> to vector<60x60xf32>
    %128 = arith.subf %124, %127 : vector<60x60xf32>
    %129 = math.exp %128 : vector<60x60xf32>
    %cst_89 = arith.constant dense<0.000000e+00> : vector<60xf32>
    %130 = vector.multi_reduction <add>, %129, %cst_89 [1] : vector<60x60xf32> to vector<60xf32>
    %131 = vector.shape_cast %130 : vector<60xf32> to vector<60x1xf32>
    %132 = tpu.reciprocal %131 {approx = true} : vector<60x1xf32> -> vector<60x1xf32>
    %133 = vector.broadcast %132 : vector<60x1xf32> to vector<60x60xf32>
    %134 = arith.mulf %129, %133 : vector<60x60xf32>
    %135 = vector.extract_strided_slice %115 {offsets = [0, 0], sizes = [60, 8], strides = [1, 1]} : vector<60x32xf32> to vector<60x8xf32>
    %136 = arith.truncf %134 : vector<60x60xf32> to vector<60x60xbf16>
    %137 = arith.truncf %135 : vector<60x8xf32> to vector<60x8xbf16>
    %cst_90 = arith.constant dense<0.000000e+00> : vector<60x8xf32>
    %138 = tpu.matmul %136, %137, %cst_90 {dimension_numbers = #tpu.dot_dimension_numbers<[1], [0], [0], [1], [0, 0, 1, 1], [], []>} : vector<60x60xbf16>, vector<60x8xbf16>, vector<60x8xf32> -> vector<60x8xf32>
    %c0_91 = arith.constant 0 : index
    %c0_92 = arith.constant 0 : index
    %139 = vector.load %arg20[%c0_91, %c0_92] : memref<60x32xf32, #tpu.memory_space<vmem>>, vector<60x8xf32>
    tpu.vector_store %arg20[%c0_91, %c0_92], %138 {strides = array<i32>} : memref<60x32xf32, #tpu.memory_space<vmem>>, vector<60x8xf32>,
    %140 = vector.extract_strided_slice %97 {offsets = [0, 8], sizes = [60, 8], strides = [1, 1]} : vector<60x32xf32> to vector<60x8xf32>
    %141 = vector.extract_strided_slice %106 {offsets = [0, 8], sizes = [60, 8], strides = [1, 1]} : vector<60x32xf32> to vector<60x8xf32>
    %142 = arith.truncf %140 : vector<60x8xf32> to vector<60x8xbf16>
    %143 = arith.truncf %141 : vector<60x8xf32> to vector<60x8xbf16>
    %cst_93 = arith.constant dense<0.000000e+00> : vector<60x60xf32>
    %144 = tpu.matmul %142, %143, %cst_93 {dimension_numbers = #tpu.dot_dimension_numbers<[1], [1], [0], [0], [0, 0, 1, 0], [], []>} : vector<60x8xbf16>, vector<60x8xbf16>, vector<60x60xf32> -> vector<60x60xf32>
    %cst_94 = arith.constant 0.353553385 : f32
    %145 = vector.broadcast %cst_94 : f32 to vector<60x60xf32>
    %146 = arith.mulf %144, %145 : vector<60x60xf32>
    %147 = arith.addf %146, %116 : vector<60x60xf32>
    %cst_95 = arith.constant dense<0xFF800000> : vector<60xf32>
    %148 = vector.multi_reduction <maximumf>, %147, %cst_95 [1] : vector<60x60xf32> to vector<60xf32>
    %149 = vector.shape_cast %148 : vector<60xf32> to vector<60x1xf32>
    %150 = vector.broadcast %149 : vector<60x1xf32> to vector<60x60xf32>
    %151 = arith.subf %147, %150 : vector<60x60xf32>
    %152 = math.exp %151 : vector<60x60xf32>
    %cst_96 = arith.constant dense<0.000000e+00> : vector<60xf32>
    %153 = vector.multi_reduction <add>, %152, %cst_96 [1] : vector<60x60xf32> to vector<60xf32>
    %154 = vector.shape_cast %153 : vector<60xf32> to vector<60x1xf32>
    %155 = tpu.reciprocal %154 {approx = true} : vector<60x1xf32> -> vector<60x1xf32>
    %156 = vector.broadcast %155 : vector<60x1xf32> to vector<60x60xf32>
    %157 = arith.mulf %152, %156 : vector<60x60xf32>
    %158 = vector.extract_strided_slice %115 {offsets = [0, 8], sizes = [60, 8], strides = [1, 1]} : vector<60x32xf32> to vector<60x8xf32>
    %159 = arith.truncf %157 : vector<60x60xf32> to vector<60x60xbf16>
    %160 = arith.truncf %158 : vector<60x8xf32> to vector<60x8xbf16>
    %cst_97 = arith.constant dense<0.000000e+00> : vector<60x8xf32>
    %161 = tpu.matmul %159, %160, %cst_97 {dimension_numbers = #tpu.dot_dimension_numbers<[1], [0], [0], [1], [0, 0, 1, 1], [], []>} : vector<60x60xbf16>, vector<60x8xbf16>, vector<60x8xf32> -> vector<60x8xf32>
    %c0_98 = arith.constant 0 : index
    %c8 = arith.constant 8 : index
    %162 = vector.load %arg20[%c0_98, %c8] : memref<60x32xf32, #tpu.memory_space<vmem>>, vector<60x8xf32>
    tpu.vector_store %arg20[%c0_98, %c8], %161 {strides = array<i32>} : memref<60x32xf32, #tpu.memory_space<vmem>>, vector<60x8xf32>,
    %163 = vector.extract_strided_slice %97 {offsets = [0, 16], sizes = [60, 8], strides = [1, 1]} : vector<60x32xf32> to vector<60x8xf32>
    %164 = vector.extract_strided_slice %106 {offsets = [0, 16], sizes = [60, 8], strides = [1, 1]} : vector<60x32xf32> to vector<60x8xf32>
    %165 = arith.truncf %163 : vector<60x8xf32> to vector<60x8xbf16>
    %166 = arith.truncf %164 : vector<60x8xf32> to vector<60x8xbf16>
    %cst_99 = arith.constant dense<0.000000e+00> : vector<60x60xf32>
    %167 = tpu.matmul %165, %166, %cst_99 {dimension_numbers = #tpu.dot_dimension_numbers<[1], [1], [0], [0], [0, 0, 1, 0], [], []>} : vector<60x8xbf16>, vector<60x8xbf16>, vector<60x60xf32> -> vector<60x60xf32>
    %cst_100 = arith.constant 0.353553385 : f32
    %168 = vector.broadcast %cst_100 : f32 to vector<60x60xf32>
    %169 = arith.mulf %167, %168 : vector<60x60xf32>
    %170 = arith.addf %169, %116 : vector<60x60xf32>
    %cst_101 = arith.constant dense<0xFF800000> : vector<60xf32>
    %171 = vector.multi_reduction <maximumf>, %170, %cst_101 [1] : vector<60x60xf32> to vector<60xf32>
    %172 = vector.shape_cast %171 : vector<60xf32> to vector<60x1xf32>
    %173 = vector.broadcast %172 : vector<60x1xf32> to vector<60x60xf32>
    %174 = arith.subf %170, %173 : vector<60x60xf32>
    %175 = math.exp %174 : vector<60x60xf32>
    %cst_102 = arith.constant dense<0.000000e+00> : vector<60xf32>
    %176 = vector.multi_reduction <add>, %175, %cst_102 [1] : vector<60x60xf32> to vector<60xf32>
    %177 = vector.shape_cast %176 : vector<60xf32> to vector<60x1xf32>
    %178 = tpu.reciprocal %177 {approx = true} : vector<60x1xf32> -> vector<60x1xf32>
    %179 = vector.broadcast %178 : vector<60x1xf32> to vector<60x60xf32>
    %180 = arith.mulf %175, %179 : vector<60x60xf32>
    %181 = vector.extract_strided_slice %115 {offsets = [0, 16], sizes = [60, 8], strides = [1, 1]} : vector<60x32xf32> to vector<60x8xf32>
    %182 = arith.truncf %180 : vector<60x60xf32> to vector<60x60xbf16>
    %183 = arith.truncf %181 : vector<60x8xf32> to vector<60x8xbf16>
    %cst_103 = arith.constant dense<0.000000e+00> : vector<60x8xf32>
    %184 = tpu.matmul %182, %183, %cst_103 {dimension_numbers = #tpu.dot_dimension_numbers<[1], [0], [0], [1], [0, 0, 1, 1], [], []>} : vector<60x60xbf16>, vector<60x8xbf16>, vector<60x8xf32> -> vector<60x8xf32>
    %c0_104 = arith.constant 0 : index
    %c16 = arith.constant 16 : index
    %185 = vector.load %arg20[%c0_104, %c16] : memref<60x32xf32, #tpu.memory_space<vmem>>, vector<60x8xf32>
    tpu.vector_store %arg20[%c0_104, %c16], %184 {strides = array<i32>} : memref<60x32xf32, #tpu.memory_space<vmem>>, vector<60x8xf32>,
    %186 = vector.extract_strided_slice %97 {offsets = [0, 24], sizes = [60, 8], strides = [1, 1]} : vector<60x32xf32> to vector<60x8xf32>
    %187 = vector.extract_strided_slice %106 {offsets = [0, 24], sizes = [60, 8], strides = [1, 1]} : vector<60x32xf32> to vector<60x8xf32>
    %188 = arith.truncf %186 : vector<60x8xf32> to vector<60x8xbf16>
    %189 = arith.truncf %187 : vector<60x8xf32> to vector<60x8xbf16>
    %cst_105 = arith.constant dense<0.000000e+00> : vector<60x60xf32>
    %190 = tpu.matmul %188, %189, %cst_105 {dimension_numbers = #tpu.dot_dimension_numbers<[1], [1], [0], [0], [0, 0, 1, 0], [], []>} : vector<60x8xbf16>, vector<60x8xbf16>, vector<60x60xf32> -> vector<60x60xf32>
    %cst_106 = arith.constant 0.353553385 : f32
    %191 = vector.broadcast %cst_106 : f32 to vector<60x60xf32>
    %192 = arith.mulf %190, %191 : vector<60x60xf32>
    %193 = arith.addf %192, %116 : vector<60x60xf32>
    %cst_107 = arith.constant dense<0xFF800000> : vector<60xf32>
    %194 = vector.multi_reduction <maximumf>, %193, %cst_107 [1] : vector<60x60xf32> to vector<60xf32>
    %195 = vector.shape_cast %194 : vector<60xf32> to vector<60x1xf32>
    %196 = vector.broadcast %195 : vector<60x1xf32> to vector<60x60xf32>
    %197 = arith.subf %193, %196 : vector<60x60xf32>
    %198 = math.exp %197 : vector<60x60xf32>
    %cst_108 = arith.constant dense<0.000000e+00> : vector<60xf32>
    %199 = vector.multi_reduction <add>, %198, %cst_108 [1] : vector<60x60xf32> to vector<60xf32>
    %200 = vector.shape_cast %199 : vector<60xf32> to vector<60x1xf32>
    %201 = tpu.reciprocal %200 {approx = true} : vector<60x1xf32> -> vector<60x1xf32>
    %202 = vector.broadcast %201 : vector<60x1xf32> to vector<60x60xf32>
    %203 = arith.mulf %198, %202 : vector<60x60xf32>
    %204 = vector.extract_strided_slice %115 {offsets = [0, 24], sizes = [60, 8], strides = [1, 1]} : vector<60x32xf32> to vector<60x8xf32>
    %205 = arith.truncf %203 : vector<60x60xf32> to vector<60x60xbf16>
    %206 = arith.truncf %204 : vector<60x8xf32> to vector<60x8xbf16>
    %cst_109 = arith.constant dense<0.000000e+00> : vector<60x8xf32>
    %207 = tpu.matmul %205, %206, %cst_109 {dimension_numbers = #tpu.dot_dimension_numbers<[1], [0], [0], [1], [0, 0, 1, 1], [], []>} : vector<60x60xbf16>, vector<60x8xbf16>, vector<60x8xf32> -> vector<60x8xf32>
    %c0_110 = arith.constant 0 : index
    %c24 = arith.constant 24 : index
    %208 = vector.load %arg20[%c0_110, %c24] : memref<60x32xf32, #tpu.memory_space<vmem>>, vector<60x8xf32>
    tpu.vector_store %arg20[%c0_110, %c24], %207 {strides = array<i32>} : memref<60x32xf32, #tpu.memory_space<vmem>>, vector<60x8xf32>,
    %c0_111 = arith.constant 0 : index
    %c0_112 = arith.constant 0 : index
    %209 = vector.load %arg20[%c0_111, %c0_112] : memref<60x32xf32, #tpu.memory_space<vmem>>, vector<60x32xf32>
    %c0_113 = arith.constant 0 : index
    %c0_114 = arith.constant 0 : index
    %210 = vector.load %arg11[%c0_113, %c0_114] : memref<32x32xf32, #tpu.memory_space<vmem>>, vector<32x32xf32>
    %211 = arith.truncf %209 : vector<60x32xf32> to vector<60x32xbf16>
    %212 = arith.truncf %210 : vector<32x32xf32> to vector<32x32xbf16>
    %cst_115 = arith.constant dense<0.000000e+00> : vector<60x32xf32>
    %213 = tpu.matmul %211, %212, %cst_115 {dimension_numbers = #tpu.dot_dimension_numbers<[1], [0], [0], [1], [0, 0, 1, 1], [], []>} : vector<60x32xbf16>, vector<32x32xbf16>, vector<60x32xf32> -> vector<60x32xf32>
    %214 = arith.addf %64, %213 : vector<60x32xf32>
    %c0_116 = arith.constant 0 : index
    %c0_117 = arith.constant 0 : index
    %215 = vector.load %arg12[%c0_116, %c0_117] : memref<1x32xf32, #tpu.memory_space<vmem>>, vector<1x32xf32>
    %216 = vector.broadcast %215 : vector<1x32xf32> to vector<60x32xf32>
    %217 = arith.addf %214, %216 : vector<60x32xf32>
    %c2_118 = arith.constant 2 : index
    %c0_119 = arith.constant 0 : index
    %c0_120 = arith.constant 0 : index
    %218 = vector.load %arg7[%c2_118, %c0_119, %c0_120] : memref<4x60x32xf32, #tpu.memory_space<vmem>>, vector<1x60x32xf32>
    %219 = vector.shape_cast %218 : vector<1x60x32xf32> to vector<60x32xf32>
    %c3 = arith.constant 3 : index
    %c0_121 = arith.constant 0 : index
    %c0_122 = arith.constant 0 : index
    %220 = vector.load %arg7[%c3, %c0_121, %c0_122] : memref<4x60x32xf32, #tpu.memory_space<vmem>>, vector<1x60x32xf32>
    %221 = vector.shape_cast %220 : vector<1x60x32xf32> to vector<60x32xf32>
    %cst_123 = arith.constant dense<0.000000e+00> : vector<60xf32>
    %222 = vector.multi_reduction <add>, %217, %cst_123 [1] : vector<60x32xf32> to vector<60xf32>
    %223 = vector.shape_cast %222 : vector<60xf32> to vector<60x1xf32>
    %cst_124 = arith.constant 3.200000e+01 : f32
    %224 = vector.broadcast %cst_124 : f32 to vector<60x1xf32>
    %225 = arith.divf %223, %224 : vector<60x1xf32>
    %226 = vector.broadcast %225 : vector<60x1xf32> to vector<60x32xf32>
    %227 = arith.subf %217, %226 : vector<60x32xf32>
    %228 = arith.mulf %227, %227 : vector<60x32xf32>
    %cst_125 = arith.constant dense<0.000000e+00> : vector<60xf32>
    %229 = vector.multi_reduction <add>, %228, %cst_125 [1] : vector<60x32xf32> to vector<60xf32>
    %230 = vector.shape_cast %229 : vector<60xf32> to vector<60x1xf32>
    %cst_126 = arith.constant 3.200000e+01 : f32
    %231 = vector.broadcast %cst_126 : f32 to vector<60x1xf32>
    %232 = arith.divf %230, %231 : vector<60x1xf32>
    %233 = vector.broadcast %225 : vector<60x1xf32> to vector<60x32xf32>
    %234 = arith.subf %217, %233 : vector<60x32xf32>
    %cst_127 = arith.constant 9.99999974E-6 : f32
    %235 = vector.broadcast %cst_127 : f32 to vector<60x1xf32>
    %236 = arith.addf %232, %235 : vector<60x1xf32>
    %237 = math.rsqrt %236 : vector<60x1xf32>
    %238 = vector.broadcast %237 : vector<60x1xf32> to vector<60x32xf32>
    %239 = arith.mulf %234, %238 : vector<60x32xf32>
    %240 = arith.mulf %239, %219 : vector<60x32xf32>
    %241 = arith.addf %240, %221 : vector<60x32xf32>
    %c0_128 = arith.constant 0 : index
    %c0_129 = arith.constant 0 : index
    %242 = vector.load %arg13[%c0_128, %c0_129] : memref<32x64xf32, #tpu.memory_space<vmem>>, vector<32x64xf32>
    %243 = arith.truncf %241 : vector<60x32xf32> to vector<60x32xbf16>
    %244 = arith.truncf %242 : vector<32x64xf32> to vector<32x64xbf16>
    %cst_130 = arith.constant dense<0.000000e+00> : vector<60x64xf32>
    %245 = tpu.matmul %243, %244, %cst_130 {dimension_numbers = #tpu.dot_dimension_numbers<[1], [0], [0], [1], [0, 0, 1, 1], [], []>} : vector<60x32xbf16>, vector<32x64xbf16>, vector<60x64xf32> -> vector<60x64xf32>
    %c0_131 = arith.constant 0 : index
    %c0_132 = arith.constant 0 : index
    %246 = vector.load %arg14[%c0_131, %c0_132] : memref<1x64xf32, #tpu.memory_space<vmem>>, vector<1x64xf32>
    %247 = vector.broadcast %246 : vector<1x64xf32> to vector<60x64xf32>
    %248 = arith.addf %245, %247 : vector<60x64xf32>
    %cst_133 = arith.constant 0.000000e+00 : f32
    %249 = vector.broadcast %cst_133 : f32 to vector<60x64xf32>
    %250 = arith.maximumf %248, %249 : vector<60x64xf32>
    %c0_134 = arith.constant 0 : index
    %c0_135 = arith.constant 0 : index
    %251 = vector.load %arg15[%c0_134, %c0_135] : memref<64x32xf32, #tpu.memory_space<vmem>>, vector<64x32xf32>
    %252 = arith.truncf %250 : vector<60x64xf32> to vector<60x64xbf16>
    %253 = arith.truncf %251 : vector<64x32xf32> to vector<64x32xbf16>
    %cst_136 = arith.constant dense<0.000000e+00> : vector<60x32xf32>
    %254 = tpu.matmul %252, %253, %cst_136 {dimension_numbers = #tpu.dot_dimension_numbers<[1], [0], [0], [1], [0, 0, 1, 1], [], []>} : vector<60x64xbf16>, vector<64x32xbf16>, vector<60x32xf32> -> vector<60x32xf32>
    %255 = arith.addf %217, %254 : vector<60x32xf32>
    %c0_137 = arith.constant 0 : index
    %c0_138 = arith.constant 0 : index
    %256 = vector.load %arg16[%c0_137, %c0_138] : memref<1x32xf32, #tpu.memory_space<vmem>>, vector<1x32xf32>
    %257 = vector.broadcast %256 : vector<1x32xf32> to vector<60x32xf32>
    %258 = arith.addf %255, %257 : vector<60x32xf32>
    %c0_139 = arith.constant 0 : index
    %c0_140 = arith.constant 0 : index
    %c0_141 = arith.constant 0 : index
    %259 = vector.load %arg17[%c0_139, %c0_140, %c0_141] : memref<4x15x60xf32, #tpu.memory_space<vmem>>, vector<1x15x60xf32>
    %260 = vector.shape_cast %259 : vector<1x15x60xf32> to vector<15x60xf32>
    %261 = arith.truncf %260 : vector<15x60xf32> to vector<15x60xbf16>
    %262 = arith.truncf %258 : vector<60x32xf32> to vector<60x32xbf16>
    %cst_142 = arith.constant dense<0.000000e+00> : vector<15x32xf32>
    %263 = tpu.matmul %261, %262, %cst_142 {dimension_numbers = #tpu.dot_dimension_numbers<[1], [0], [0], [1], [0, 0, 1, 1], [], []>} : vector<15x60xbf16>, vector<60x32xbf16>, vector<15x32xf32> -> vector<15x32xf32>
    %c0_143 = arith.constant 0 : index
    %c0_144 = arith.constant 0 : index
    %c0_145 = arith.constant 0 : index
    %264 = vector.load %arg18[%c0_143, %c0_144, %c0_145] : memref<4x32x128xf32, #tpu.memory_space<vmem>>, vector<1x32x128xf32>
    %265 = vector.shape_cast %264 : vector<1x32x128xf32> to vector<32x128xf32>
    %266 = arith.truncf %263 : vector<15x32xf32> to vector<15x32xbf16>
    %267 = arith.truncf %265 : vector<32x128xf32> to vector<32x128xbf16>
    %cst_146 = arith.constant dense<0.000000e+00> : vector<15x128xf32>
    %268 = tpu.matmul %266, %267, %cst_146 {dimension_numbers = #tpu.dot_dimension_numbers<[1], [0], [0], [1], [0, 0, 1, 1], [], []>} : vector<15x32xbf16>, vector<32x128xbf16>, vector<15x128xf32> -> vector<15x128xf32>
    %c1_147 = arith.constant 1 : index
    %c0_148 = arith.constant 0 : index
    %c0_149 = arith.constant 0 : index
    %269 = vector.load %arg17[%c1_147, %c0_148, %c0_149] : memref<4x15x60xf32, #tpu.memory_space<vmem>>, vector<1x15x60xf32>
    %270 = vector.shape_cast %269 : vector<1x15x60xf32> to vector<15x60xf32>
    %271 = arith.truncf %270 : vector<15x60xf32> to vector<15x60xbf16>
    %272 = arith.truncf %258 : vector<60x32xf32> to vector<60x32xbf16>
    %cst_150 = arith.constant dense<0.000000e+00> : vector<15x32xf32>
    %273 = tpu.matmul %271, %272, %cst_150 {dimension_numbers = #tpu.dot_dimension_numbers<[1], [0], [0], [1], [0, 0, 1, 1], [], []>} : vector<15x60xbf16>, vector<60x32xbf16>, vector<15x32xf32> -> vector<15x32xf32>
    %c1_151 = arith.constant 1 : index
    %c0_152 = arith.constant 0 : index
    %c0_153 = arith.constant 0 : index
    %274 = vector.load %arg18[%c1_151, %c0_152, %c0_153] : memref<4x32x128xf32, #tpu.memory_space<vmem>>, vector<1x32x128xf32>
    %275 = vector.shape_cast %274 : vector<1x32x128xf32> to vector<32x128xf32>
    %276 = arith.truncf %273 : vector<15x32xf32> to vector<15x32xbf16>
    %277 = arith.truncf %275 : vector<32x128xf32> to vector<32x128xbf16>
    %cst_154 = arith.constant dense<0.000000e+00> : vector<15x128xf32>
    %278 = tpu.matmul %276, %277, %cst_154 {dimension_numbers = #tpu.dot_dimension_numbers<[1], [0], [0], [1], [0, 0, 1, 1], [], []>} : vector<15x32xbf16>, vector<32x128xbf16>, vector<15x128xf32> -> vector<15x128xf32>
    %279 = arith.addf %268, %278 : vector<15x128xf32>
    %c2_155 = arith.constant 2 : index
    %c0_156 = arith.constant 0 : index
    %c0_157 = arith.constant 0 : index
    %280 = vector.load %arg17[%c2_155, %c0_156, %c0_157] : memref<4x15x60xf32, #tpu.memory_space<vmem>>, vector<1x15x60xf32>
    %281 = vector.shape_cast %280 : vector<1x15x60xf32> to vector<15x60xf32>
    %282 = arith.truncf %281 : vector<15x60xf32> to vector<15x60xbf16>
    %283 = arith.truncf %258 : vector<60x32xf32> to vector<60x32xbf16>
    %cst_158 = arith.constant dense<0.000000e+00> : vector<15x32xf32>
    %284 = tpu.matmul %282, %283, %cst_158 {dimension_numbers = #tpu.dot_dimension_numbers<[1], [0], [0], [1], [0, 0, 1, 1], [], []>} : vector<15x60xbf16>, vector<60x32xbf16>, vector<15x32xf32> -> vector<15x32xf32>
    %c2_159 = arith.constant 2 : index
    %c0_160 = arith.constant 0 : index
    %c0_161 = arith.constant 0 : index
    %285 = vector.load %arg18[%c2_159, %c0_160, %c0_161] : memref<4x32x128xf32, #tpu.memory_space<vmem>>, vector<1x32x128xf32>
    %286 = vector.shape_cast %285 : vector<1x32x128xf32> to vector<32x128xf32>
    %287 = arith.truncf %284 : vector<15x32xf32> to vector<15x32xbf16>
    %288 = arith.truncf %286 : vector<32x128xf32> to vector<32x128xbf16>
    %cst_162 = arith.constant dense<0.000000e+00> : vector<15x128xf32>
    %289 = tpu.matmul %287, %288, %cst_162 {dimension_numbers = #tpu.dot_dimension_numbers<[1], [0], [0], [1], [0, 0, 1, 1], [], []>} : vector<15x32xbf16>, vector<32x128xbf16>, vector<15x128xf32> -> vector<15x128xf32>
    %290 = arith.addf %279, %289 : vector<15x128xf32>
    %c3_163 = arith.constant 3 : index
    %c0_164 = arith.constant 0 : index
    %c0_165 = arith.constant 0 : index
    %291 = vector.load %arg17[%c3_163, %c0_164, %c0_165] : memref<4x15x60xf32, #tpu.memory_space<vmem>>, vector<1x15x60xf32>
    %292 = vector.shape_cast %291 : vector<1x15x60xf32> to vector<15x60xf32>
    %293 = arith.truncf %292 : vector<15x60xf32> to vector<15x60xbf16>
    %294 = arith.truncf %258 : vector<60x32xf32> to vector<60x32xbf16>
    %cst_166 = arith.constant dense<0.000000e+00> : vector<15x32xf32>
    %295 = tpu.matmul %293, %294, %cst_166 {dimension_numbers = #tpu.dot_dimension_numbers<[1], [0], [0], [1], [0, 0, 1, 1], [], []>} : vector<15x60xbf16>, vector<60x32xbf16>, vector<15x32xf32> -> vector<15x32xf32>
    %c3_167 = arith.constant 3 : index
    %c0_168 = arith.constant 0 : index
    %c0_169 = arith.constant 0 : index
    %296 = vector.load %arg18[%c3_167, %c0_168, %c0_169] : memref<4x32x128xf32, #tpu.memory_space<vmem>>, vector<1x32x128xf32>
    %297 = vector.shape_cast %296 : vector<1x32x128xf32> to vector<32x128xf32>
    %298 = arith.truncf %295 : vector<15x32xf32> to vector<15x32xbf16>
    %299 = arith.truncf %297 : vector<32x128xf32> to vector<32x128xbf16>
    %cst_170 = arith.constant dense<0.000000e+00> : vector<15x128xf32>
    %300 = tpu.matmul %298, %299, %cst_170 {dimension_numbers = #tpu.dot_dimension_numbers<[1], [0], [0], [1], [0, 0, 1, 1], [], []>} : vector<15x32xbf16>, vector<32x128xbf16>, vector<15x128xf32> -> vector<15x128xf32>
    %301 = arith.addf %290, %300 : vector<15x128xf32>
    %c0_171 = arith.constant 0 : index
    %c0_172 = arith.constant 0 : index
    %302 = vector.load %arg19[%c0_171, %c0_172] : memref<15x128xf32, #tpu.memory_space<vmem>>, vector<15x128xf32>
    tpu.vector_store %arg19[%c0_171, %c0_172], %301 {strides = array<i32>} : memref<15x128xf32, #tpu.memory_space<vmem>>, vector<15x128xf32>,
    return
  }
  func.func @transform_0(%arg0: i32) -> (i32, i32) {
    %c0_i32 = arith.constant 0 : i32
    %c0_i32_0 = arith.constant 0 : i32
    %c0_i32_1 = arith.constant 0 : i32
    return %c0_i32, %c0_i32_0 : i32, i32
  }
  func.func @transform_1(%arg0: i32) -> (i32, i32) {
    %c0_i32 = arith.constant 0 : i32
    %c0_i32_0 = arith.constant 0 : i32
    %c0_i32_1 = arith.constant 0 : i32
    return %c0_i32, %c0_i32_0 : i32, i32
  }
  func.func @transform_2(%arg0: i32) -> (i32, i32, i32) {
    %c0_i32 = arith.constant 0 : i32
    %c0_i32_0 = arith.constant 0 : i32
    %c0_i32_1 = arith.constant 0 : i32
    %c0_i32_2 = arith.constant 0 : i32
    return %c0_i32, %c0_i32_0, %c0_i32_1 : i32, i32, i32
  }
  func.func @transform_3(%arg0: i32) -> (i32, i32, i32) {
    %c0_i32 = arith.constant 0 : i32
    %c0_i32_0 = arith.constant 0 : i32
    %c0_i32_1 = arith.constant 0 : i32
    %c0_i32_2 = arith.constant 0 : i32
    return %c0_i32, %c0_i32_0, %c0_i32_1 : i32, i32, i32
  }
  func.func @transform_4(%arg0: i32) -> (i32, i32, i32, i32) {
    %c0_i32 = arith.constant 0 : i32
    %c0_i32_0 = arith.constant 0 : i32
    %c0_i32_1 = arith.constant 0 : i32
    %c0_i32_2 = arith.constant 0 : i32
    %c0_i32_3 = arith.constant 0 : i32
    return %c0_i32, %c0_i32_0, %c0_i32_1, %c0_i32_2 : i32, i32, i32, i32
  }
  func.func @transform_5(%arg0: i32) -> (i32, i32) {
    %c0_i32 = arith.constant 0 : i32
    %c0_i32_0 = arith.constant 0 : i32
    %c0_i32_1 = arith.constant 0 : i32
    return %c0_i32, %c0_i32_0 : i32, i32
  }
  func.func @transform_6(%arg0: i32) -> (i32, i32, i32) {
    %c0_i32 = arith.constant 0 : i32
    %c0_i32_0 = arith.constant 0 : i32
    %c0_i32_1 = arith.constant 0 : i32
    %c0_i32_2 = arith.constant 0 : i32
    return %c0_i32, %c0_i32_0, %c0_i32_1 : i32, i32, i32
  }
  func.func @transform_7(%arg0: i32) -> (i32, i32) {
    %c0_i32 = arith.constant 0 : i32
    %c0_i32_0 = arith.constant 0 : i32
    %c0_i32_1 = arith.constant 0 : i32
    return %c0_i32, %c0_i32_0 : i32, i32
  }
  func.func @transform_8(%arg0: i32) -> (i32, i32, i32) {
    %c0_i32 = arith.constant 0 : i32
    %c0_i32_0 = arith.constant 0 : i32
    %c0_i32_1 = arith.constant 0 : i32
    %c0_i32_2 = arith.constant 0 : i32
    return %c0_i32, %c0_i32_0, %c0_i32_1 : i32, i32, i32
  }
  func.func @transform_9(%arg0: i32) -> (i32, i32, i32) {
    %c0_i32 = arith.constant 0 : i32
    %c0_i32_0 = arith.constant 0 : i32
    %c0_i32_1 = arith.constant 0 : i32
    %c0_i32_2 = arith.constant 0 : i32
    return %c0_i32, %c0_i32_0, %c0_i32_1 : i32, i32, i32
  }
  func.func @transform_10(%arg0: i32) -> (i32, i32) {
    %c0_i32 = arith.constant 0 : i32
    %c0_i32_0 = arith.constant 0 : i32
    %c0_i32_1 = arith.constant 0 : i32
    return %c0_i32, %c0_i32_0 : i32, i32
  }
  func.func @transform_11(%arg0: i32) -> (i32, i32) {
    %c0_i32 = arith.constant 0 : i32
    %c0_i32_0 = arith.constant 0 : i32
    %c0_i32_1 = arith.constant 0 : i32
    return %c0_i32, %c0_i32_0 : i32, i32
  }
  func.func @transform_12(%arg0: i32) -> (i32, i32) {
    %c0_i32 = arith.constant 0 : i32
    %c0_i32_0 = arith.constant 0 : i32
    %c0_i32_1 = arith.constant 0 : i32
    return %c0_i32, %c0_i32_0 : i32, i32
  }
  func.func @transform_13(%arg0: i32) -> (i32, i32) {
    %c0_i32 = arith.constant 0 : i32
    %c0_i32_0 = arith.constant 0 : i32
    %c0_i32_1 = arith.constant 0 : i32
    return %c0_i32, %c0_i32_0 : i32, i32
  }
  func.func @transform_14(%arg0: i32) -> (i32, i32) {
    %c0_i32 = arith.constant 0 : i32
    %c0_i32_0 = arith.constant 0 : i32
    %c0_i32_1 = arith.constant 0 : i32
    return %c0_i32, %c0_i32_0 : i32, i32
  }
  func.func @transform_15(%arg0: i32) -> (i32, i32) {
    %c0_i32 = arith.constant 0 : i32
    %c0_i32_0 = arith.constant 0 : i32
    %c0_i32_1 = arith.constant 0 : i32
    return %c0_i32, %c0_i32_0 : i32, i32
  }
  func.func @transform_16(%arg0: i32) -> (i32, i32, i32) {
    %c0_i32 = arith.constant 0 : i32
    %c0_i32_0 = arith.constant 0 : i32
    %c0_i32_1 = arith.constant 0 : i32
    %c0_i32_2 = arith.constant 0 : i32
    return %c0_i32, %c0_i32_0, %c0_i32_1 : i32, i32, i32
  }
  func.func @transform_17(%arg0: i32) -> (i32, i32, i32) {
    %c0_i32 = arith.constant 0 : i32
    %c0_i32_0 = arith.constant 0 : i32
    %c0_i32_1 = arith.constant 0 : i32
    %c0_i32_2 = arith.constant 0 : i32
    return %c0_i32, %c0_i32_0, %c0_i32_1 : i32, i32, i32
  }
  func.func @transform_18(%arg0: i32) -> (i32, i32) {
    %c0_i32 = arith.constant 0 : i32
    %c0_i32_0 = arith.constant 0 : i32
    %c0_i32_1 = arith.constant 0 : i32
    return %c0_i32, %c0_i32_0 : i32, i32
  }
}

</mosaic_0001>

<bundles_post_ra>
// kernel: tpu_custom_call.1
= control target key start
LH: loop header
LB: loop body
LE: loop exit
PB: predicated region body
PF: predicated region fallthrough
CT: control target
= control target key end

     0   :  { %s4507_s0 = inlined_call_operand.vmem [shape: f32[20,32], index: 0, kind: input, shape index: {}]   ;;  %s4508_s1 = inlined_call_operand.vmem [shape: f32[20,32], index: 1, kind: input, shape index: {}]   ;;  %s4509_s2 = inlined_call_operand.vmem [shape: f32[2,20,20], index: 2, kind: input, shape index: {}]   ;;  %s4510_s3 = inlined_call_operand.vmem [shape: f32[3,60,20], index: 3, kind: input, shape index: {}]   ;;  %s4511_s4 = inlined_call_operand.vmem [shape: f32[3,3,32,32], index: 4, kind: input, shape index: {}]   ;;  %s4512_s5 = inlined_call_operand.vmem [shape: f32[60,32], index: 5, kind: input, shape index: {}]   ;;  %s4513_s6 = inlined_call_operand.vmem [shape: f32[4,60,32], index: 6, kind: input, shape index: {}]   ;;  %s4514_s7 = inlined_call_operand.vmem [shape: f32[60,60], index: 7, kind: input, shape index: {}]   ;;  %s4515_s8 = inlined_call_operand.vmem [shape: f32[3,32,32], index: 8, kind: input, shape index: {}]   ;;  %s4516_s9 = inlined_call_operand.vmem [shape: f32[3,1,32], index: 9, kind: input, shape index: {}]   ;;  %s4517_s10 = inlined_call_operand.vmem [shape: f32[32,32], index: 10, kind: input, shape index: {}]   ;;  %s4518_s11 = inlined_call_operand.vmem [shape: f32[1,32], index: 11, kind: input, shape index: {}]   ;;  %s4519_s12 = inlined_call_operand.vmem [shape: f32[32,64], index: 12, kind: input, shape index: {}]   ;;  %s4520_s13 = inlined_call_operand.vmem [shape: f32[1,64], index: 13, kind: input, shape index: {}]   ;;  %s4521_s14 = inlined_call_operand.vmem [shape: f32[64,32], index: 14, kind: input, shape index: {}]   ;;  %s4522_s15 = inlined_call_operand.vmem [shape: f32[1,32], index: 15, kind: input, shape index: {}]   ;;  %s4523_s16 = inlined_call_operand.vmem [shape: f32[4,15,60], index: 16, kind: input, shape index: {}]   ;;  %s4524_s17 = inlined_call_operand.vmem [shape: f32[4,32,128], index: 17, kind: input, shape index: {}]   ;;  %s4525_s18 = inlined_call_operand.hbm [shape: f32[15,128], index: 18, kind: output, shape index: {}]  }
   0x1   :  { %4529 = sst [smem:[#allocation6_spill]] %s4507_s0 }
   0x2   :  { %4530 = sst [smem:[#allocation7_spill]] %s4508_s1 }
   0x3   :  { %4531 = sst [smem:[#allocation8_spill]] %s4509_s2 }
   0x4   :  { %4532 = sst [smem:[#allocation9_spill]] %s4520_s13 }
   0x5   :  { %s4533_s29 = sld [smem:[#allocation6_spill]]  ;;  %vm84_vm0 = vcmask 1041408  }
   0x6   :  { %s4534_s13 = sld [smem:[#allocation7_spill]] }
   0x7   :  { %s4535_s27 = sld [smem:[#allocation8_spill]] }
   0xb   :  { %v63_v0 = vld [vmem:[%s4533_s29 + $0x10] sm:$0xf]  ;;  %v61_v2 = vld [vmem:[%s4533_s29] sm:$0xff]  ;;  %v62_v4 = vld [vmem:[%s4533_s29 + $0x8] sm:$0xff] }
   0xc   :  { %v66_v1 = vld [vmem:[%s4534_s13 + $0x10] sm:$0xf]  ;;  %v64_v5 = vld [vmem:[%s4534_s13] sm:$0xff]  ;;  %v65_v6 = vld [vmem:[%s4534_s13 + $0x8] sm:$0xff] }
   0xd   :  { %v69_v3 = vadd.f32 %v66_v1, %v63_v0  ;;  %v67_v7 = vadd.f32 %v64_v5, %v61_v2  ;;  %v68_v8 = vadd.f32 %v65_v6, %v62_v4  ;;  %v70_v10 = vld [vmem:[%s4535_s27] sm:$0xff]  ;;  %v71_v11 = vld [vmem:[%s4535_s27 + $0x8] sm:$0xff]  ;;  %v2581_v13 = vld [vmem:[%s4535_s27 + $0x18] sm:$0xff] }
   0xe   :  { %v2582_v15 = vld [vmem:[%s4535_s27 + $0x20] sm:$0xff] }
   0xf   :  { %v3087_v9 = vpack.c.bf16 %v69_v3, %v69_v3  ;;  %v3100_v14 = vpack.c.bf16 %v68_v8, %v67_v7 }
  0x11   :  { %v86_v12 = vsel %vm84_vm0, %v3087_v9, 0 }
  0x12   :  { %94 = vmatpush.bf16.msra.mxu0 %v86_v12  ;;  %124 = vmatpush.bf16.msra.mxu1 %v86_v12 }
  0x13   :  { %23 = vsyncpa [#allocation4], 0  ;;  %v73_v16 = vpack.c.bf16 %v71_v11, %v70_v10  ;;  %v110_v17 = vpack.c.bf16 %v2582_v15, %v2581_v13  ;;  %vm77_vm1 = vcmask 162816   ;;  %v72_v18 = vld [vmem:[%s4535_s27 + $0x10] sm:$0xf]  ;;  %v2595_v23 = vld [vmem:[%s4511_s4 + $0x98] sm:$0xff] }
  0x14   :  { %v2583_v19 = vld [vmem:[%s4535_s27 + $0x28] sm:$0xf]  ;;  %v74_v20 = vpack.c.bf16 %v72_v18, %v72_v18  ;;  %v2594_v22 = vld [vmem:[%s4511_s4 + $0x90] sm:$0xff]  ;;  %v2592_v25 = vld [vmem:[%s4511_s4 + $0x80] sm:$0xff]  ;;  %vm142_vm2 = vcmask 261120   ;;  %vm548_vm4 = vcmask 257024  }
  0x15   :  { %v111_v21 = vpack.c.bf16 %v2583_v19, %v2583_v19  ;;  %v195_v24 = vpack.c.bf16 %v2595_v23, %v2594_v22  ;;  %v2593_v26 = vld [vmem:[%s4511_s4 + $0x88] sm:$0xff]  ;;  %v2590_v28 = vld [vmem:[%s4511_s4 + $0x70] sm:$0xff]  ;;  %v2591_v29 = vld [vmem:[%s4511_s4 + $0x78] sm:$0xff]  ;;  %s2966_s19 = smov 120   ;;  %s2967_s1 = smov 104  }
  0x16   :  { %95 = vmatpush.bf16.msra.mxu0 %v3100_v14  ;;  %125 = vmatpush.bf16.msra.mxu1 %v3100_v14  ;;  %v194_v27 = vpack.c.bf16 %v2593_v26, %v2592_v25  ;;  %v186_v30 = vpack.c.bf16 %v2591_v29, %v2590_v28  ;;  %v2588_v31 = vld [vmem:[%s4511_s4 + $0x60] sm:$0xff]  ;;  %v2589_v32 = vld [vmem:[%s4511_s4 + $0x68] sm:$0xff]  ;;  %v2622_v34 = vld [vmem:[%s4511_s4 + $0xf0] sm:$0xff]  ;;  %s2968_s20 = smov 112   ;;  %s4536_s0 = sld [smem:[#allocation9_spill]] }
  0x17   :  { %208 = vmatpush.bf16.msra.mxu3 %v195_v24  ;;  %v185_v33 = vpack.c.bf16 %v2589_v32, %v2588_v31  ;;  %v2623_v35 = vld [vmem:[%s4511_s4 + $0xf8] sm:$0xff]  ;;  %v2620_v36 = vld [vmem:[%s4511_s4 + $0xe0] sm:$0xff]  ;;  %v2621_v38 = vld [vmem:[%s4511_s4 + $0xe8] sm:$0xff] }
  0x18   :  { %v354_v37 = vpack.c.bf16 %v2623_v35, %v2622_v34  ;;  %v138_v39 = vld [vmem:[%s4511_s4 + $0x10] sm:$0xff]  ;;  %v139_v40 = vld [vmem:[%s4511_s4 + $0x18] sm:$0xff]  ;;  %v353_v44 = vpack.c.bf16 %v2621_v38, %v2620_v36  ;;  %v136_v49 = vld [vmem:[%s4511_s4] sm:$0xff] }
  0x19   :  { %2579 = vmatmul.msk.bf16.vlgmr.msra.gmra.mxu0 %vm77_vm1, %v73_v16  ;;  %2584 = vmatmul.msk.bf16.vlgmr.msra.gmra.mxu1 %vm77_vm1, %v110_v17  ;;  %v141_v41 = vpack.c.bf16 %v139_v40, %v138_v39  ;;  %v2618_v42 = vld [vmem:[%s4511_s4 + $0xd0] sm:$0xff]  ;;  %v2619_v43 = vld [vmem:[%s4511_s4 + $0xd8] sm:$0xff]  ;;  %v137_v50 = vld [vmem:[%s4511_s4 + $0x8] sm:$0xff] }
  0x1a   :  { %226 = vmatpush.bf16.msrb.mxu0 %v186_v30  ;;  %v347_v45 = vpack.c.bf16 %v2619_v43, %v2618_v42  ;;  %v140_v51 = vpack.c.bf16 %v137_v50, %v136_v49  ;;  %v2616_v52 = vld [vmem:[%s4511_s4 + $0xc0] sm:$0xff]  ;;  %v2617_v53 = vld [vmem:[%s4511_s4 + $0xc8] sm:$0xff]  ;;  %v2630_v59 = vld [vmem:[%s4511_s4 + $0x110] sm:$0xff] }
  0x1b   :  { %209 = vmatpush.bf16.msra.mxu3 %v194_v27  ;;  %154 = vmatpush.bf16.msra.mxu2 %v141_v41  ;;  %v346_v54 = vpack.c.bf16 %v2617_v53, %v2616_v52  ;;  %v2631_v60 = vld [vmem:[%s4511_s4 + $0x118] sm:$0xff]  ;;  %v2628_v61 = vld [vmem:[%s4511_s4 + $0x100] sm:$0xff]  ;;  %v2629_v63 = vld [vmem:[%s4511_s4 + $0x108] sm:$0xff] }
  0x1c   :  { %v399_v62 = vpack.c.bf16 %v2631_v60, %v2630_v59  ;;  %v398_v0 = vpack.c.bf16 %v2629_v63, %v2628_v61  ;;  %v167_v34 = vld [vmem:[%s4510_s3 + $0x8] sm:$0xff]  ;;  %v168_v41 = vld [vmem:[%s4510_s3 + $0x10] sm:$0xff]  ;;  %v169_v42 = vld [vmem:[%s4510_s3 + $0x18] sm:$0xff] }
  0x1d   :  { %v2601_v38 = vld [vmem:[%s4510_s3 + $0x48] sm:$0xff]  ;;  %v2602_v43 = vld [vmem:[%s4510_s3 + $0x50] sm:$0xff]  ;;  %v170_v49 = vld [vmem:[%s4510_s3 + $0x20] sm:$0xff] }
  0x1e   :  { %227 = vmatpush.bf16.msrb.mxu0 %v185_v33  ;;  %v166_v33 = vld [vmem:[%s4510_s3] sm:$0xff]  ;;  %v171_v50 = vld [vmem:[%s4510_s3 + $0x28] sm:$0xff] }
  0x1f   :  { %361 = vmatpush.bf16.msrb.mxu3 %v354_v37  ;;  %155 = vmatpush.bf16.msra.mxu2 %v140_v51  ;;  %v174_v35 = vpack.c.bf16 %v167_v34, %v166_v33  ;;  %v2600_v37 = vld [vmem:[%s4510_s3 + $0x40] sm:$0xff]  ;;  %v176_v52 = vpack.c.bf16 %v171_v50, %v170_v49  ;;  %v2605_v53 = vld [vmem:[%s4510_s3 + $0x68] sm:$0xff]  ;;  %v497_v50 = vld [vmem:[%s4512_s5 + $0x18] sm:$0xff] }
  0x20   :  { %v247_v39 = vpack.c.bf16 %v2601_v38, %v2600_v37  ;;  %v2604_v51 = vld [vmem:[%s4510_s3 + $0x60] sm:$0xff]  ;;  %v495_v34 = vld [vmem:[%s4512_s5 + $0x8] sm:$0xff] }
  0x22   :  { %379 = vmatpush.bf16.msra.mxu0 %v347_v45  ;;  %2586 = vmatmul.msk.bf16.vlgmr.msra.gmra.mxu2 %vm142_vm2, %v3100_v14  ;;  %v2603_v45 = vld [vmem:[%s4510_s3 + $0x58] sm:$0xff] }
  0x23   :  { %362 = vmatpush.bf16.msrb.mxu3 %v353_v44  ;;  %v175_v44 = vpack.c.bf16 %v169_v42, %v168_v41  ;;  %v496_v42 = vld [vmem:[%s4512_s5 + $0x10] sm:$0xff] }
  0x26   :  { %380 = vmatpush.bf16.msra.mxu0 %v346_v54 }
  0x29   :  { %2580 = vmatmul.msk.bf16.gmra.mxu0 %vm77_vm1, %v74_v20  ;;  %2585 = vmatmul.msk.bf16.gmra.mxu1 %vm77_vm1, %v111_v21 }
  0x32   :  { %2587 = vmatmul.msk.bf16.gmra.mxu2 %vm142_vm2, %v3087_v9 }
  0x39   :  { %2598 = vmatmul.msk.bf16.vlgmr.msrb.gmra.mxu0 %vm142_vm2, %v3100_v14 }
  0x49   :  { %2599 = vmatmul.msk.bf16.gmra.mxu0 %vm142_vm2, %v3087_v9 }
  0x59   :  { %2626 = vmatmul.msk.bf16.vlgmr.msra.gmra.mxu0 %vm142_vm2, %v3100_v14 }
  0x69   :  { %2627 = vmatmul.msk.bf16.gmra.mxu0 %vm142_vm2, %v3087_v9 }
  0x96   :  { %v97_v46 = vpop.f32.mrf.mxu0  ;;  %v127_v58 = vpop.f32.mrf.mxu1 }
  0x9e   :  { %v99_v47 = vpop.f32.mrf.mxu0  ;;  %v129_v1 = vpop.f32.mrf.mxu1 }
  0x9f   :  { %v192_v48 = vpack.c.bf16 %v99_v47, %v97_v46  ;;  %v396_v4 = vpack.c.bf16 %v129_v1, %v127_v58  ;;  %v248_v46 = vpack.c.bf16 %v2603_v45, %v2602_v43  ;;  %v2635_v1 = vld [vmem:[%s4510_s3 + $0x88] sm:$0xff] }
  0xa1   :  { %2596 = vmatmul.msk.bf16.vlgmr.msra.gmra.mxu3 %vm142_vm2, %v192_v48 }
  0xa2   :  { %412 = vmatpush.bf16.msra.mxu3 %v399_v62 }
  0xa5   :  { %v157_v12 = vpop.f32.mrf.mxu2 }
  0xa6   :  { %v102_v55 = vpop.f32.mrf.mxu0  ;;  %413 = vmatpush.bf16.msra.mxu3 %v398_v0  ;;  %v132_v2 = vpop.f32.mrf.mxu1  ;;  %v2634_v0 = vld [vmem:[%s4510_s3 + $0x80] sm:$0xff] }
  0xa7   :  { %v193_v56 = vpack.c.bf16 %v102_v55, %v102_v55  ;;  %v397_v5 = vpack.c.bf16 %v132_v2, %v132_v2  ;;  %v249_v55 = vpack.c.bf16 %v2605_v53, %v2604_v51 }
  0xad   :  { %v159_v15 = vpop.f32.mrf.mxu2 }
  0xae   :  { %v104_v57 = vpop.f32.mrf.mxu0  ;;  %v134_v3 = vpop.f32.mrf.mxu1  ;;  %v178_v29 = vpack.c.bf16 %v159_v15, %v157_v12  ;;  %v2637_v12 = vld [vmem:[%s4510_s3 + $0x98] sm:$0xff]  ;;  %v2639_v15 = vld [vmem:[%s4510_s3 + $0xa8] sm:$0xff] }
  0xb1   :  { %2597 = vmatmul.msk.bf16.gmra.mxu3 %vm142_vm2, %v193_v56 }
  0xb5   :  { %v162_v22 = vpop.f32.mrf.mxu2 }
  0xb6   :  { %v229_v6 = vpop.f32.mrf.mxu0  ;;  %v179_v24 = vpack.c.bf16 %v162_v22, %v162_v22 }
  0xb8   :  { %v310_v27 = vsel %vm84_vm0, %v179_v24, 0 }
  0xb9   :  { %318 = vmatpush.bf16.msrb.mxu2 %v310_v27 }
  0xbd   :  { %319 = vmatpush.bf16.msrb.mxu2 %v178_v29  ;;  %v164_v30 = vpop.f32.mrf.mxu2 }
  0xbe   :  { %v231_v7 = vpop.f32.mrf.mxu0 }
  0xc0   :  { %2612 = vmatmul.msk.bf16.vlgmr.msrb.gmra.mxu2 %vm77_vm1, %v174_v35 }
  0xc1   :  { %2624 = vmatmul.msk.bf16.vlgmr.msrb.gmra.mxu3 %vm142_vm2, %v192_v48 }
  0xc6   :  { %v234_v8 = vpop.f32.mrf.mxu0 }
  0xce   :  { %v236_v10 = vpop.f32.mrf.mxu0 }
  0xcf   :  { %v2607_v10 = vld [vmem:[%s4510_s3 + $0x78] sm:$0xf] }
  0xd0   :  { %2613 = vmatmul.msk.bf16.gmra.mxu2 %vm77_vm1, %v175_v44 }
  0xd1   :  { %2625 = vmatmul.msk.bf16.gmra.mxu3 %vm142_vm2, %v193_v56 }
  0xd6   :  { %v382_v9 = vpop.f32.mrf.mxu0 }
  0xde   :  { %v384_v14 = vpop.f32.mrf.mxu0 }
  0xe0   :  { %2614 = vmatmul.msk.bf16.gmra.mxu2 %vm77_vm1, %v176_v52 }
  0xe1   :  { %2632 = vmatmul.msk.bf16.vlgmr.msra.gmra.mxu3 %vm142_vm2, %v396_v4  ;;  %v436_v4 = vpack.c.bf16 %v2635_v1, %v2634_v0  ;;  %v499_v0 = vld [vmem:[%s4512_s5 + $0x28] sm:$0xff] }
  0xe6   :  { %v387_v17 = vpop.f32.mrf.mxu0 }
  0xee   :  { %v389_v28 = vpop.f32.mrf.mxu0 }
  0xf1   :  { %2633 = vmatmul.msk.bf16.gmra.mxu3 %vm142_vm2, %v397_v5  ;;  %v172_v5 = vld [vmem:[%s4510_s3 + $0x30] sm:$0xff] }
 0x124   :  { %v211_v11 = vpop.f32.mrf.mxu3 }
 0x125   :  { %v230_v23 = vadd.f32 %v229_v6, %v211_v11  ;;  %v173_v6 = vld [vmem:[%s4510_s3 + $0x38] sm:$0xf] }
 0x12c   :  { %v213_v13 = vpop.f32.mrf.mxu3 }
 0x12d   :  { %v232_v20 = vadd.f32 %v231_v7, %v213_v13  ;;  %v2606_v7 = vld [vmem:[%s4510_s3 + $0x70] sm:$0xff] }
 0x12e   :  { %v250_v11 = vpack.c.bf16 %v2607_v10, %v2606_v7 }
 0x12f   :  { %v251_v26 = vpack.c.bf16 %v232_v20, %v230_v23 }
 0x134   :  { %v216_v16 = vpop.f32.mrf.mxu3 }
 0x135   :  { %v235_v18 = vadd.f32 %v234_v8, %v216_v16  ;;  %v177_v8 = vpack.c.bf16 %v173_v6, %v172_v5 }
 0x137   :  { %v252_v19 = vpack.c.bf16 %v235_v18, %v235_v18  ;;  %2615 = vmatmul.msk.bf16.gmra.mxu2 %vm77_vm1, %v177_v8  ;;  %v2641_v18 = vld [vmem:[%s4510_s3 + $0xb8] sm:$0xf]  ;;  %v500_v8 = vld [vmem:[%s4512_s5 + $0x30] sm:$0xff] }
 0x139   :  { %v266_v21 = vsel %vm84_vm0, %v252_v19, 0 }
 0x13a   :  { %274 = vmatpush.bf16.msrb.mxu1 %v266_v21 }
 0x13c   :  { %v218_v25 = vpop.f32.mrf.mxu3 }
 0x13e   :  { %275 = vmatpush.bf16.msrb.mxu1 %v251_v26  ;;  %v494_v26 = vld [vmem:[%s4512_s5] sm:$0xff] }
 0x141   :  { %2608 = vmatmul.msk.bf16.vlgmr.msrb.gmra.mxu1 %vm77_vm1, %v247_v39 }
 0x143   :  { %v321_v20 = vpop.f32.mrf.mxu2 }
 0x144   :  { %v364_v31 = vpop.f32.mrf.mxu3 }
 0x145   :  { %v383_v60 = vadd.f32 %v382_v9, %v364_v31  ;;  %v2636_v9 = vld [vmem:[%s4510_s3 + $0x90] sm:$0xff] }
 0x146   :  { %v437_v13 = vpack.c.bf16 %v2637_v12, %v2636_v9  ;;  %v2965_v12 = vmov 32.0  }
 0x147   :  { %2777 = vrcp.f32 %v2965_v12 }
 0x14b   :  { %v323_v22 = vpop.f32.mrf.mxu2 }
 0x14c   :  { %v366_v32 = vpop.f32.mrf.mxu3 }
 0x14d   :  { %v385_v58 = vadd.f32 %v384_v14, %v366_v32  ;;  %v2638_v14 = vld [vmem:[%s4510_s3 + $0xa0] sm:$0xff] }
 0x14e   :  { %v438_v16 = vpack.c.bf16 %v2639_v15, %v2638_v14 }
 0x151   :  { %2609 = vmatmul.msk.bf16.gmra.mxu1 %vm77_vm1, %v248_v46 }
 0x153   :  { %v326_v28 = vpop.f32.mrf.mxu2 }
 0x154   :  { %v369_v36 = vpop.f32.mrf.mxu3 }
 0x155   :  { %v388_v54 = vadd.f32 %v387_v17, %v369_v36  ;;  %v2640_v17 = vld [vmem:[%s4510_s3 + $0xb0] sm:$0xff] }
 0x156   :  { %v439_v19 = vpack.c.bf16 %v2641_v18, %v2640_v17 }
 0x15b   :  { %v328_v37 = vpop.f32.mrf.mxu2 }
 0x15c   :  { %v371_v40 = vpop.f32.mrf.mxu3 }
 0x161   :  { %2610 = vmatmul.msk.bf16.gmra.mxu1 %vm77_vm1, %v249_v55 }
 0x164   :  { %v415_v47 = vpop.f32.mrf.mxu3 }
 0x165   :  { %v424_v63 = vadd.f32 %v415_v47, %v383_v60  ;;  %v331_v47 = vpop.f32.mrf.mxu2 }
 0x16c   :  { %v417_v48 = vpop.f32.mrf.mxu3 }
 0x16d   :  { %v425_v61 = vadd.f32 %v417_v48, %v385_v58  ;;  %v333_v55 = vpop.f32.mrf.mxu2 }
 0x16f   :  { %v440_v2 = vpack.c.bf16 %v425_v61, %v424_v63 }
 0x171   :  { %2611 = vmatmul.msk.bf16.gmra.mxu1 %vm77_vm1, %v250_v11 }
 0x174   :  { %v420_v56 = vpop.f32.mrf.mxu3 }
 0x175   :  { %v426_v57 = vadd.f32 %v420_v56, %v388_v54 }
 0x177   :  { %v441_v59 = vpack.c.bf16 %v426_v57, %v426_v57  ;;  %v498_v57 = vld [vmem:[%s4512_s5 + $0x20] sm:$0xff] }
 0x179   :  { %v455_v62 = vsel %vm84_vm0, %v441_v59, 0 }
 0x17a   :  { %463 = vmatpush.bf16.msrb.mxu0 %v455_v62 }
 0x17c   :  { %v422_v3 = vpop.f32.mrf.mxu3 }
 0x17e   :  { %464 = vmatpush.bf16.msrb.mxu0 %v440_v2 }
 0x181   :  { %2642 = vmatmul.msk.bf16.vlgmr.msrb.gmra.mxu0 %vm77_vm1, %v436_v4 }
 0x191   :  { %2643 = vmatmul.msk.bf16.gmra.mxu0 %vm77_vm1, %v437_v13  ;;  %v2778_v13 = vpop.eup %2777 }
 0x192   :  { %v553_v14 = vmul.f32 32.0, %v2778_v13  ;;  %vm557_vm3 = vweird.f32 %v2778_v13 }
 0x194   :  { %v554_v15 = vsub.f32 1.0, %v553_v14 }
 0x1a1   :  { %2644 = vmatmul.msk.bf16.gmra.mxu0 %vm77_vm1, %v438_v16  ;;  %v555_v16 = vmul.f32 %v2778_v13, %v554_v15 }
 0x1a3   :  { %v556_v17 = vadd.f32 %v2778_v13, %v555_v16  ;;  %v727_v16 = vld [vmem:[%s4515_s8] sm:$0xff] }
 0x1a5   :  { %v3343_v18 = vsel %vm557_vm3, %v2778_v13, %v556_v17  ;;  %v728_v17 = vld [vmem:[%s4515_s8 + $0x8] sm:$0xff] }
 0x1b1   :  { %2645 = vmatmul.msk.bf16.gmra.mxu0 %vm77_vm1, %v439_v19 }
 0x1ba   :  { %v336_v2 = vpop.f32.mrf.mxu2 }
 0x1be   :  { %v277_v21 = vpop.f32.mrf.mxu1 }
 0x1bf   :  { %v322_v24 = vadd.f32 %v321_v20, %v277_v21 }
 0x1c2   :  { %v338_v19 = vpop.f32.mrf.mxu2 }
 0x1c6   :  { %v279_v23 = vpop.f32.mrf.mxu1 }
 0x1c7   :  { %v324_v32 = vadd.f32 %v323_v22, %v279_v23 }
 0x1ce   :  { %v282_v29 = vpop.f32.mrf.mxu1 }
 0x1cf   :  { %v327_v40 = vadd.f32 %v326_v28, %v282_v29  ;;  %v501_v29 = vld [vmem:[%s4512_s5 + $0x38] sm:$0xf] }
 0x1d6   :  { %v284_v38 = vpop.f32.mrf.mxu1 }
 0x1d7   :  { %v329_v46 = vadd.f32 %v328_v37, %v284_v38 }
 0x1de   :  { %v287_v48 = vpop.f32.mrf.mxu1 }
 0x1df   :  { %v332_v54 = vadd.f32 %v331_v47, %v287_v48 }
 0x1e6   :  { %v289_v58 = vpop.f32.mrf.mxu1 }
 0x1e7   :  { %v334_v62 = vadd.f32 %v333_v55, %v289_v58 }
 0x1ee   :  { %v292_v3 = vpop.f32.mrf.mxu1 }
 0x1ef   :  { %v337_v6 = vadd.f32 %v336_v2, %v292_v3  ;;  %v729_v3 = vld [vmem:[%s4515_s8 + $0x10] sm:$0xff] }
 0x1f6   :  { %v294_v21 = vpop.f32.mrf.mxu1 }
 0x1fe   :  { %v466_v25 = vpop.f32.mrf.mxu0 }
 0x1ff   :  { %v486_v27 = vadd.f32 %v466_v25, %v322_v24  ;;  %v339_v24 = vadd.f32 %v338_v19, %v294_v21  ;;  %v2658_v19 = vld [vmem:[%s4515_s8 + $0x20] sm:$0xff]  ;;  %v2659_v21 = vld [vmem:[%s4515_s8 + $0x28] sm:$0xff] }
 0x201   :  { %v3297_v30 = vadd.f32 %v494_v26, %v486_v27 }
 0x203   :  { %v527_v31 = vsel %vm142_vm2, %v3297_v30, 0.0 }
 0x204   :  { %528 = vadd.xlane.f32.xlu0 %v527_v31 }
 0x206   :  { %v468_v33 = vpop.f32.mrf.mxu0 }
 0x207   :  { %v487_v35 = vadd.f32 %v468_v33, %v324_v32 }
 0x209   :  { %v3304_v36 = vadd.f32 %v495_v34, %v487_v35 }
 0x20b   :  { %v530_v39 = vsel %vm142_vm2, %v3304_v36, 0.0 }
 0x20c   :  { %531 = vadd.xlane.f32.xlu0 %v530_v39 }
 0x20e   :  { %v471_v41 = vpop.f32.mrf.mxu0 }
 0x20f   :  { %v488_v43 = vadd.f32 %v471_v41, %v327_v40 }
 0x211   :  { %v3311_v44 = vadd.f32 %v496_v42, %v488_v43 }
 0x213   :  { %v533_v45 = vsel %vm142_vm2, %v3311_v44, 0.0 }
 0x214   :  { %534 = vadd.xlane.f32.xlu1 %v533_v45 }
 0x216   :  { %v473_v49 = vpop.f32.mrf.mxu0 }
 0x217   :  { %v489_v51 = vadd.f32 %v473_v49, %v329_v46 }
 0x219   :  { %v3318_v52 = vadd.f32 %v497_v50, %v489_v51 }
 0x21b   :  { %v536_v53 = vsel %vm142_vm2, %v3318_v52, 0.0 }
 0x21c   :  { %537 = vadd.xlane.f32.xlu1 %v536_v53 }
 0x21e   :  { %v476_v56 = vpop.f32.mrf.mxu0 }
 0x21f   :  { %v490_v59 = vadd.f32 %v476_v56, %v332_v54 }
 0x221   :  { %v3325_v60 = vadd.f32 %v498_v57, %v490_v59 }
 0x223   :  { %v539_v61 = vsel %vm142_vm2, %v3325_v60, 0.0 }
 0x224   :  { %540 = vadd.xlane.f32.xlu2 %v539_v61 }
 0x226   :  { %v478_v63 = vpop.f32.mrf.mxu0 }
 0x227   :  { %v491_v1 = vadd.f32 %v478_v63, %v334_v62 }
 0x229   :  { %v3332_v4 = vadd.f32 %v499_v0, %v491_v1 }
 0x22b   :  { %v542_v5 = vsel %vm142_vm2, %v3332_v4, 0.0 }
 0x22c   :  { %543 = vadd.xlane.f32.xlu2 %v542_v5  ;;  %v730_v5 = vld [vmem:[%s4515_s8 + $0x18] sm:$0xff] }
 0x22e   :  { %v481_v7 = vpop.f32.mrf.mxu0 }
 0x22f   :  { %v492_v10 = vadd.f32 %v481_v7, %v337_v6  ;;  %v2660_v6 = vld [vmem:[%s4515_s8 + $0x30] sm:$0xff]  ;;  %v736_v7 = vpack.c.bf16 %v730_v5, %v729_v3  ;;  %v510_v5 = vld [vmem:[%s4513_s6] sm:$0xff] }
 0x231   :  { %v3339_v11 = vadd.f32 %v500_v8, %v492_v10  ;;  %v2661_v8 = vld [vmem:[%s4515_s8 + $0x38] sm:$0xff]  ;;  %v2669_v10 = vld [vmem:[%s4515_s8 + $0x50] sm:$0xff]  ;;  %759 = vmatpush.bf16.msra.mxu1 %v736_v7 }
 0x232   :  { %v788_v12 = vpack.c.bf16 %v2661_v8, %v2660_v6  ;;  %v511_v8 = vld [vmem:[%s4513_s6 + $0x8] sm:$0xff] }
 0x233   :  { %v545_v9 = vsel %vm142_vm2, %v3339_v11, 0.0 }
 0x234   :  { %546 = vadd.xlane.f32.xlu2 %v545_v9  ;;  %v2670_v9 = vld [vmem:[%s4515_s8 + $0x58] sm:$0xff]  ;;  %800 = vmatpush.bf16.msra.mxu2 %v788_v12 }
 0x235   :  { %v829_v13 = vpack.c.bf16 %v2670_v9, %v2669_v10 }
 0x236   :  { %v483_v25 = vpop.f32.mrf.mxu0 }
 0x237   :  { %v493_v27 = vadd.f32 %v483_v25, %v339_v24  ;;  %841 = vmatpush.bf16.msrb.mxu3 %v829_v13  ;;  %v2668_v24 = vld [vmem:[%s4515_s8 + $0x48] sm:$0xff] }
 0x239   :  { %v3356_v33 = vadd.f32 %v501_v29, %v493_v27 }
 0x23b   :  { %v549_v38 = vsel %vm548_vm4, %v3356_v33, 0.0 }
 0x277   :  { %v529_v20 = vpop.xlane.xlu0 %528 }
 0x278   :  { %v559_v22 = vmul.f32 %v3343_v18, %v529_v20  ;;  %v735_v20 = vpack.c.bf16 %v728_v17, %v727_v16  ;;  %v2646_v16 = vld [vmem:[%s4513_s6 + $0x40] sm:$0xff] }
 0x27a   :  { %v3347_v23 = vsub.f32 %v3297_v30, %v559_v22  ;;  %v2667_v22 = vld [vmem:[%s4515_s8 + $0x40] sm:$0xff]  ;;  %760 = vmatpush.bf16.msra.mxu1 %v735_v20 }
 0x27b   :  { %v828_v27 = vpack.c.bf16 %v2668_v24, %v2667_v22 }
 0x27c   :  { %v575_v26 = vmul.f32 %v3347_v23, %v3347_v23 }
 0x27d   :  { %842 = vmatpush.bf16.msrb.mxu3 %v828_v27 }
 0x27e   :  { %v583_v28 = vsel %vm142_vm2, %v575_v26, 0.0  ;;  %v787_v26 = vpack.c.bf16 %v2659_v21, %v2658_v19 }
 0x27f   :  { %584 = vadd.xlane.f32.xlu0 %v583_v28  ;;  %v532_v31 = vpop.xlane.xlu0 %531 }
 0x280   :  { %v560_v32 = vmul.f32 %v3343_v18, %v532_v31  ;;  %801 = vmatpush.bf16.msra.mxu2 %v787_v26 }
 0x282   :  { %v3359_v34 = vsub.f32 %v3304_v36, %v560_v32 }
 0x284   :  { %v576_v35 = vmul.f32 %v3359_v34, %v3359_v34 }
 0x286   :  { %v586_v37 = vsel %vm142_vm2, %v576_v35, 0.0 }
 0x287   :  { %v535_v39 = vpop.xlane.xlu1 %534  ;;  %587 = vadd.xlane.f32.xlu1 %v586_v37  ;;  %550 = vadd.xlane.f32.xlu0 %v549_v38 }
 0x288   :  { %v561_v40 = vmul.f32 %v3343_v18, %v535_v39 }
 0x28a   :  { %v3368_v41 = vsub.f32 %v3311_v44, %v561_v40 }
 0x28c   :  { %v577_v42 = vmul.f32 %v3368_v41, %v3368_v41 }
 0x28e   :  { %v589_v43 = vsel %vm142_vm2, %v577_v42, 0.0 }
 0x28f   :  { %590 = vadd.xlane.f32.xlu1 %v589_v43  ;;  %v538_v45 = vpop.xlane.xlu1 %537 }
 0x290   :  { %v562_v46 = vmul.f32 %v3343_v18, %v538_v45 }
 0x292   :  { %v3375_v47 = vsub.f32 %v3318_v52, %v562_v46 }
 0x294   :  { %v578_v48 = vmul.f32 %v3375_v47, %v3375_v47 }
 0x296   :  { %v592_v49 = vsel %vm142_vm2, %v578_v48, 0.0 }
 0x297   :  { %v541_v50 = vpop.xlane.xlu2 %540  ;;  %593 = vadd.xlane.f32.xlu2 %v592_v49 }
 0x298   :  { %v563_v51 = vmul.f32 %v3343_v18, %v541_v50 }
 0x29a   :  { %v3382_v53 = vsub.f32 %v3325_v60, %v563_v51 }
 0x29c   :  { %v579_v54 = vmul.f32 %v3382_v53, %v3382_v53 }
 0x29e   :  { %v595_v55 = vsel %vm142_vm2, %v579_v54, 0.0 }
 0x29f   :  { %v544_v56 = vpop.xlane.xlu2 %543  ;;  %596 = vadd.xlane.f32.xlu0 %v595_v55 }
 0x2a0   :  { %v564_v57 = vmul.f32 %v3343_v18, %v544_v56 }
 0x2a2   :  { %v3389_v58 = vsub.f32 %v3332_v4, %v564_v57 }
 0x2a4   :  { %v580_v59 = vmul.f32 %v3389_v58, %v3389_v58 }
 0x2a6   :  { %v598_v61 = vsel %vm142_vm2, %v580_v59, 0.0 }
 0x2a7   :  { %599 = vadd.xlane.f32.xlu1 %v598_v61  ;;  %v547_v62 = vpop.xlane.xlu2 %546 }
 0x2a8   :  { %v565_v63 = vmul.f32 %v3343_v18, %v547_v62 }
 0x2aa   :  { %v3396_v0 = vsub.f32 %v3339_v11, %v565_v63 }
 0x2ac   :  { %v581_v1 = vmul.f32 %v3396_v0, %v3396_v0 }
 0x2ae   :  { %v601_v2 = vsel %vm142_vm2, %v581_v1, 0.0 }
 0x2af   :  { %602 = vadd.xlane.f32.xlu2 %v601_v2 }
 0x2f2   :  { %v585_v14 = vpop.xlane.xlu0 %584 }
 0x2f3   :  { %v607_v15 = vmul.f32 %v585_v14, %v3343_v18 }
 0x2f5   :  { %v615_v25 = vadd.f32 1e-05, %v607_v15 }
 0x2f7   :  { %2779 = vrsqrt.f32 %v615_v25  ;;  %vm629_vm6 = vweird.f32 %v615_v25 }
 0x2fa   :  { %v588_v28 = vpop.xlane.xlu1 %587  ;;  %v551_v29 = vpop.xlane.xlu0 %550 }
 0x2fb   :  { %v608_v31 = vmul.f32 %v588_v28, %v3343_v18  ;;  %v566_v32 = vmul.f32 %v3343_v18, %v551_v29 }
 0x2fd   :  { %v2780_v35 = vpop.eup %2779  ;;  %v616_v37 = vadd.f32 1e-05, %v608_v31  ;;  %v3441_v38 = vsub.f32 %v3356_v33, %v566_v32 }
 0x2fe   :  { %v624_v39 = vmul.f32 %v2780_v35, %v615_v25  ;;  %vm630_vm5 = vweird.f32 %v2780_v35 }
 0x2ff   :  { %2781 = vrsqrt.f32 %v616_v37  ;;  %v582_v40 = vmul.f32 %v3441_v38, %v3441_v38  ;;  %vm631_vm7 = vmor %vm629_vm6, %vm630_vm5  ;;  %vm639_vm9 = vweird.f32 %v616_v37 }
 0x300   :  { %v625_v42 = vmul.f32 %v2780_v35, %v624_v39 }
 0x301   :  { %v604_v43 = vsel %vm548_vm4, %v582_v40, 0.0 }
 0x302   :  { %v626_v45 = vmul.f32 0.5, %v625_v42  ;;  %v591_v46 = vpop.xlane.xlu1 %590  ;;  %605 = vadd.xlane.f32.xlu0 %v604_v43 }
 0x303   :  { %v609_v48 = vmul.f32 %v591_v46, %v3343_v18  ;;  %v512_v46 = vld [vmem:[%s4513_s6 + $0x10] sm:$0xff] }
 0x304   :  { %v627_v49 = vsub.f32 1.5, %v626_v45 }
 0x305   :  { %v2782_v50 = vpop.eup %2781  ;;  %v617_v51 = vadd.f32 1e-05, %v609_v48 }
 0x306   :  { %v628_v54 = vmul.f32 %v2780_v35, %v627_v49  ;;  %v634_v55 = vmul.f32 %v2782_v50, %v616_v37  ;;  %vm640_vm8 = vweird.f32 %v2782_v50 }
 0x307   :  { %2783 = vrsqrt.f32 %v617_v51  ;;  %vm641_vm10 = vmor %vm639_vm9, %vm640_vm8  ;;  %vm649_vm12 = vweird.f32 %v617_v51 }
 0x308   :  { %v635_v56 = vmul.f32 %v2782_v50, %v634_v55  ;;  %v632_v57 = vsel %vm631_vm7, %v2780_v35, %v628_v54  ;;  %v2648_v55 = vld [vmem:[%s4513_s6 + $0x50] sm:$0xff] }
 0x309   :  { %v703_v2 = vmul.f32 %v632_v57, %v3347_v23  ;;  %v2647_v23 = vld [vmem:[%s4513_s6 + $0x48] sm:$0xff] }
 0x30a   :  { %v636_v59 = vmul.f32 0.5, %v635_v56  ;;  %v594_v61 = vpop.xlane.xlu2 %593  ;;  %v2649_v56 = vld [vmem:[%s4513_s6 + $0x58] sm:$0xff] }
 0x30b   :  { %v610_v62 = vmul.f32 %v594_v61, %v3343_v18  ;;  %v711_v12 = vmul.f32 %v703_v2, %v510_v5 }
 0x30c   :  { %v637_v63 = vsub.f32 1.5, %v636_v59 }
 0x30d   :  { %v2784_v1 = vpop.eup %2783  ;;  %v618_v3 = vadd.f32 1e-05, %v610_v62  ;;  %v719_v25 = vadd.f32 %v2646_v16, %v711_v12 }
 0x30e   :  { %v638_v6 = vmul.f32 %v2782_v50, %v637_v63  ;;  %v644_v7 = vmul.f32 %v2784_v1, %v617_v51  ;;  %vm650_vm11 = vweird.f32 %v2784_v1 }
 0x30f   :  { %2785 = vrsqrt.f32 %v618_v3  ;;  %vm651_vm13 = vmor %vm649_vm12, %vm650_vm11  ;;  %vm659_vm15 = vweird.f32 %v618_v3 }
 0x310   :  { %v642_v10 = vsel %vm641_vm10, %v2782_v50, %v638_v6  ;;  %v645_v9 = vmul.f32 %v2784_v1, %v644_v7  ;;  %v513_v50 = vld [vmem:[%s4513_s6 + $0x18] sm:$0xff] }
 0x311   :  { %v704_v13 = vmul.f32 %v642_v10, %v3359_v34 }
 0x312   :  { %v646_v14 = vmul.f32 0.5, %v645_v9  ;;  %v597_v15 = vpop.xlane.xlu0 %596  ;;  %v514_v9 = vld [vmem:[%s4513_s6 + $0x20] sm:$0xff] }
 0x313   :  { %v712_v17 = vmul.f32 %v704_v13, %v511_v8  ;;  %v611_v19 = vmul.f32 %v597_v15, %v3343_v18  ;;  %v515_v13 = vld [vmem:[%s4513_s6 + $0x28] sm:$0xff]  ;;  %v2650_v15 = vld [vmem:[%s4513_s6 + $0x60] sm:$0xff] }
 0x314   :  { %v647_v20 = vsub.f32 1.5, %v646_v14 }
 0x315   :  { %v2786_v21 = vpop.eup %2785  ;;  %v720_v22 = vadd.f32 %v2647_v23, %v712_v17  ;;  %v619_v24 = vadd.f32 1e-05, %v611_v19 }
 0x316   :  { %v648_v26 = vmul.f32 %v2784_v1, %v647_v20  ;;  %v654_v34 = vmul.f32 %v2786_v21, %v618_v3  ;;  %vm660_vm14 = vweird.f32 %v2786_v21 }
 0x317   :  { %2787 = vrsqrt.f32 %v619_v24  ;;  %v731_v27 = vpack.c.bf16 %v720_v22, %v719_v25  ;;  %vm661_vm0 = vmor %vm659_vm15, %vm660_vm14  ;;  %vm669_vm3 = vweird.f32 %v619_v24  ;;  %vm1060_vm15 = vcmask 1045504  }
 0x318   :  { %v655_v28 = vmul.f32 %v2786_v21, %v654_v34  ;;  %v652_v29 = vsel %vm651_vm13, %v2784_v1, %v648_v26 }
 0x319   :  { %2654 = vmatmul.msk.bf16.vlgmr.msra.gmra.mxu1 %vm142_vm2, %v731_v27  ;;  %2663 = vmatmul.msk.bf16.vlgmr.msra.gmra.mxu2 %vm142_vm2, %v731_v27  ;;  %v705_v40 = vmul.f32 %v652_v29, %v3368_v41 }
 0x31a   :  { %v656_v31 = vmul.f32 0.5, %v655_v28  ;;  %2672 = vmatmul.msk.bf16.vlgmr.msrb.gmra.mxu3 %vm142_vm2, %v731_v27  ;;  %v600_v32 = vpop.xlane.xlu1 %599 }
 0x31b   :  { %v612_v35 = vmul.f32 %v600_v32, %v3343_v18  ;;  %v713_v54 = vmul.f32 %v705_v40, %v512_v46 }
 0x31c   :  { %v657_v37 = vsub.f32 1.5, %v656_v31 }
 0x31d   :  { %v2788_v39 = vpop.eup %2787  ;;  %v620_v42 = vadd.f32 1e-05, %v612_v35  ;;  %v721_v62 = vadd.f32 %v2648_v55, %v713_v54 }
 0x31e   :  { %v658_v43 = vmul.f32 %v2786_v21, %v657_v37  ;;  %v664_v45 = vmul.f32 %v2788_v39, %v619_v24  ;;  %vm670_vm1 = vweird.f32 %v2788_v39 }
 0x31f   :  { %2789 = vrsqrt.f32 %v620_v42  ;;  %vm671_vm5 = vmor %vm669_vm3, %vm670_vm1  ;;  %vm679_vm7 = vweird.f32 %v620_v42  ;;  %vm950_vm1 = vcmask 490496   ;;  %vm972_vm3 = vcmask 486400  }
 0x320   :  { %v662_v48 = vsel %vm661_vm0, %v2786_v21, %v658_v43  ;;  %v665_v49 = vmul.f32 %v2788_v39, %v664_v45  ;;  %vm880_vm0 = vcmask 64512  }
 0x321   :  { %v706_v51 = vmul.f32 %v662_v48, %v3375_v47  ;;  %v516_v48 = vld [vmem:[%s4513_s6 + $0x30] sm:$0xff] }
 0x322   :  { %v666_v41 = vmul.f32 0.5, %v665_v49 }
 0x323   :  { %v714_v57 = vmul.f32 %v706_v51, %v513_v50  ;;  %v517_v50 = vld [vmem:[%s4513_s6 + $0x38] sm:$0xf] }
 0x324   :  { %v667_v59 = vsub.f32 1.5, %v666_v41  ;;  %v2652_v41 = vld [vmem:[%s4513_s6 + $0x70] sm:$0xff] }
 0x325   :  { %v2790_v61 = vpop.eup %2789  ;;  %v722_v63 = vadd.f32 %v2649_v56, %v714_v57 }
 0x326   :  { %v668_v1 = vmul.f32 %v2788_v39, %v667_v59  ;;  %v674_v2 = vmul.f32 %v2790_v61, %v620_v42  ;;  %vm680_vm6 = vweird.f32 %v2790_v61 }
 0x327   :  { %v732_v3 = vpack.c.bf16 %v722_v63, %v721_v62  ;;  %vm681_vm8 = vmor %vm679_vm7, %vm680_vm6  ;;  %vm1378_vm6 = vcmask 130112   ;;  %vm1652_vm7 = vcmask 195712  }
 0x328   :  { %v675_v47 = vmul.f32 %v2790_v61, %v674_v2  ;;  %v672_v5 = vsel %vm671_vm5, %v2788_v39, %v668_v1  ;;  %vm1100_vm5 = vcmask 60416  }
 0x329   :  { %2655 = vmatmul.msk.bf16.gmra.mxu1 %vm142_vm2, %v732_v3  ;;  %2664 = vmatmul.msk.bf16.gmra.mxu2 %vm142_vm2, %v732_v3  ;;  %v707_v8 = vmul.f32 %v672_v5, %v3382_v53  ;;  %v2651_v53 = vld [vmem:[%s4513_s6 + $0x68] sm:$0xff] }
 0x32a   :  { %v676_v6 = vmul.f32 0.5, %v675_v47  ;;  %2673 = vmatmul.msk.bf16.gmra.mxu3 %vm142_vm2, %v732_v3  ;;  %v3523_v3 = vld [vmem:[%s4516_s9 + $0x1] ss:$0 sm:$0xff] }
 0x32b   :  { %v715_v14 = vmul.f32 %v707_v8, %v514_v9 }
 0x32c   :  { %v677_v7 = vsub.f32 1.5, %v676_v6 }
 0x32d   :  { %v723_v17 = vadd.f32 %v2650_v15, %v715_v14 }
 0x32e   :  { %v678_v10 = vmul.f32 %v2790_v61, %v677_v7 }
 0x330   :  { %v682_v12 = vsel %vm681_vm8, %v2790_v61, %v678_v10  ;;  %v2771_v10 = vld [vmem:[%s4516_s9] ss:$0 sm:$0xff]  ;;  %vm1926_vm8 = vcmask 261312  }
 0x331   :  { %v708_v23 = vmul.f32 %v682_v12, %v3389_v58  ;;  %v603_v58 = vpop.xlane.xlu2 %602 }
 0x332   :  { %v613_v21 = vmul.f32 %v603_v58, %v3343_v18 }
 0x333   :  { %v716_v16 = vmul.f32 %v708_v23, %v515_v13 }
 0x334   :  { %v621_v22 = vadd.f32 1e-05, %v613_v21 }
 0x335   :  { %v724_v19 = vadd.f32 %v2651_v53, %v716_v16 }
 0x336   :  { %2791 = vrsqrt.f32 %v621_v22  ;;  %vm689_vm10 = vweird.f32 %v621_v22 }
 0x337   :  { %v733_v20 = vpack.c.bf16 %v724_v19, %v723_v17 }
 0x339   :  { %2656 = vmatmul.msk.bf16.gmra.mxu1 %vm142_vm2, %v733_v20  ;;  %2665 = vmatmul.msk.bf16.gmra.mxu2 %vm142_vm2, %v733_v20 }
 0x33a   :  { %2674 = vmatmul.msk.bf16.gmra.mxu3 %vm142_vm2, %v733_v20 }
 0x33c   :  { %v2792_v24 = vpop.eup %2791 }
 0x33d   :  { %v684_v25 = vmul.f32 %v2792_v24, %v621_v22  ;;  %vm690_vm9 = vweird.f32 %v2792_v24 }
 0x33e   :  { %vm691_vm11 = vmor %vm689_vm10, %vm690_vm9  ;;  %vm1386_vm9 = vcmask 126016   ;;  %vm1660_vm10 = vcmask 191616  }
 0x33f   :  { %v685_v26 = vmul.f32 %v2792_v24, %v684_v25 }
 0x341   :  { %v686_v29 = vmul.f32 0.5, %v685_v26 }
 0x343   :  { %v687_v31 = vsub.f32 1.5, %v686_v29 }
 0x345   :  { %v688_v35 = vmul.f32 %v2792_v24, %v687_v31 }
 0x347   :  { %v692_v40 = vsel %vm691_vm11, %v2792_v24, %v688_v35  ;;  %vm1934_vm11 = vcmask 257216  }
 0x348   :  { %v709_v45 = vmul.f32 %v692_v40, %v3396_v0  ;;  %v2653_v0 = vld [vmem:[%s4513_s6 + $0x78] sm:$0xf] }
 0x34a   :  { %v717_v54 = vmul.f32 %v709_v45, %v516_v48 }
 0x34c   :  { %v725_v56 = vadd.f32 %v2652_v41, %v717_v54 }
 0x375   :  { %v606_v34 = vpop.xlane.xlu0 %605 }
 0x376   :  { %v614_v27 = vmul.f32 %v606_v34, %v3343_v18 }
 0x378   :  { %v622_v28 = vadd.f32 1e-05, %v614_v27 }
 0x37a   :  { %2793 = vrsqrt.f32 %v622_v28  ;;  %vm699_vm13 = vweird.f32 %v622_v28 }
 0x380   :  { %v2794_v32 = vpop.eup %2793 }
 0x381   :  { %v694_v37 = vmul.f32 %v2794_v32, %v622_v28  ;;  %vm700_vm12 = vweird.f32 %v2794_v32 }
 0x382   :  { %vm701_vm14 = vmor %vm699_vm13, %vm700_vm12 }
 0x383   :  { %v695_v39 = vmul.f32 %v2794_v32, %v694_v37 }
 0x385   :  { %v696_v42 = vmul.f32 0.5, %v695_v39  ;;  %v2773_v39 = vld [vmem:[%s4516_s9 + $0x2] ss:$0 sm:$0xff] }
 0x387   :  { %v697_v43 = vsub.f32 1.5, %v696_v42 }
 0x389   :  { %v698_v46 = vmul.f32 %v2794_v32, %v697_v43 }
 0x38b   :  { %v702_v49 = vsel %vm701_vm14, %v2794_v32, %v698_v46 }
 0x38c   :  { %v710_v51 = vmul.f32 %v702_v49, %v3441_v38 }
 0x38e   :  { %v718_v55 = vmul.f32 %v710_v51, %v517_v50 }
 0x390   :  { %v726_v57 = vadd.f32 %v2653_v0, %v718_v55 }
 0x392   :  { %v734_v59 = vpack.c.bf16 %v726_v57, %v725_v56 }
 0x394   :  { %2657 = vmatmul.msk.bf16.gmra.mxu1 %vm142_vm2, %v734_v59  ;;  %2666 = vmatmul.msk.bf16.gmra.mxu2 %vm142_vm2, %v734_v59 }
 0x395   :  { %2675 = vmatmul.msk.bf16.gmra.mxu3 %vm142_vm2, %v734_v59 }
 0x396   :  { %v762_v38 = vpop.f32.mrf.mxu1 }
 0x397   :  { %v763_v29 = vadd.f32 %v2771_v10, %v762_v38 }
 0x39c   :  { %v803_v61 = vpop.f32.mrf.mxu2 }
 0x39d   :  { %v844_v16 = vpop.f32.mrf.mxu3  ;;  %v804_v58 = vadd.f32 %v3523_v3, %v803_v61 }
 0x39e   :  { %v764_v62 = vpop.f32.mrf.mxu1  ;;  %v845_v46 = vadd.f32 %v2773_v39, %v844_v16 }
 0x39f   :  { %v765_v28 = vadd.f32 %v2771_v10, %v764_v62 }
 0x3a1   :  { %v3560_v31 = vpack.c.bf16 %v765_v28, %v763_v29 }
 0x3a4   :  { %v805_v63 = vpop.f32.mrf.mxu2 }
 0x3a5   :  { %v806_v20 = vadd.f32 %v3523_v3, %v805_v63  ;;  %v846_v22 = vpop.f32.mrf.mxu3 }
 0x3a6   :  { %v767_v2 = vpop.f32.mrf.mxu1  ;;  %v847_v45 = vadd.f32 %v2773_v39, %v846_v22 }
 0x3a7   :  { %v768_v13 = vadd.f32 %v2771_v10, %v767_v2  ;;  %v3548_v21 = vpack.c.bf16 %v806_v20, %v804_v58 }
 0x3a8   :  { %v3581_v48 = vpack.c.bf16 %v847_v45, %v845_v46 }
 0x3ac   :  { %v808_v1 = vpop.f32.mrf.mxu2 }
 0x3ad   :  { %v809_v5 = vadd.f32 %v3523_v3, %v808_v1  ;;  %v849_v27 = vpop.f32.mrf.mxu3 }
 0x3ae   :  { %v769_v8 = vpop.f32.mrf.mxu1 }
 0x3af   :  { %v770_v9 = vadd.f32 %v2771_v10, %v769_v8 }
 0x3b1   :  { %v3534_v23 = vpack.c.bf16 %v770_v9, %v768_v13 }
 0x3b4   :  { %v810_v47 = vpop.f32.mrf.mxu2 }
 0x3b5   :  { %v811_v6 = vadd.f32 %v3523_v3, %v810_v47  ;;  %v851_v32 = vpop.f32.mrf.mxu3 }
 0x3b6   :  { %v772_v17 = vpop.f32.mrf.mxu1 }
 0x3b7   :  { %v3527_v7 = vpack.c.bf16 %v811_v6, %v809_v5  ;;  %v773_v26 = vadd.f32 %v2771_v10, %v772_v17  ;;  %v850_v6 = vadd.f32 %v2773_v39, %v849_v27 }
 0x3b9   :  { %1120 = vrot.lane.b32.xlu0 %v3527_v7, %s2966_s19 }
 0x3bc   :  { %v813_v12 = vpop.f32.mrf.mxu2 }
 0x3bd   :  { %v814_v15 = vadd.f32 %v3523_v3, %v813_v12  ;;  %v854_v35 = vpop.f32.mrf.mxu3  ;;  %v897_v12 = vsel %vm880_vm0, %v3527_v7, 0 }
 0x3be   :  { %v774_v24 = vpop.f32.mrf.mxu1  ;;  %v855_v42 = vadd.f32 %v2773_v39, %v854_v35 }
 0x3bf   :  { %v775_v25 = vadd.f32 %v2771_v10, %v774_v24 }
 0x3c1   :  { %1108 = vrot.lane.b32.xlu0 %v3534_v23, %s2966_s19  ;;  %v3554_v34 = vpack.c.bf16 %v775_v25, %v773_v26 }
 0x3c4   :  { %v815_v14 = vpop.f32.mrf.mxu2 }
 0x3c5   :  { %v816_v53 = vadd.f32 %v3523_v3, %v815_v14  ;;  %v856_v37 = vpop.f32.mrf.mxu3  ;;  %v894_v14 = vsel %vm880_vm0, %v3548_v21, 0 }
 0x3c6   :  { %v857_v40 = vadd.f32 %v2773_v39, %v856_v37 }
 0x3c7   :  { %v3540_v19 = vpack.c.bf16 %v816_v53, %v814_v15 }
 0x3c8   :  { %v3577_v43 = vpack.c.bf16 %v857_v40, %v855_v42 }
 0x3c9   :  { %1674 = vrot.lane.b32.xlu0 %v3540_v19, %s2967_s1  ;;  %1122 = vrot.lane.b32.xlu2 %v3540_v19, %s2966_s19 }
 0x3d1   :  { %1672 = vrot.lane.b32.xlu0 %v3527_v7, %s2967_s1  ;;  %1118 = vrot.lane.b32.xlu2 %v3548_v21, %s2966_s19 }
 0x3d9   :  { %1398 = vrot.lane.b32.xlu0 %v3527_v7, %s2968_s20  ;;  %1110 = vrot.lane.b32.xlu2 %v3554_v34, %s2966_s19 }
 0x3e1   :  { %1388 = vrot.lane.b32.xlu0 %v3560_v31, %s2968_s20  ;;  %1400 = vrot.lane.b32.xlu2 %v3540_v19, %s2968_s20 }
 0x3e9   :  { %1666 = vrot.lane.b32.xlu0 %v3554_v34, %s2967_s1  ;;  %1662 = vrot.lane.b32.xlu2 %v3560_v31, %s2967_s1 }
 0x3f1   :  { %1664 = vrot.lane.b32.xlu2 %v3534_v23, %s2967_s1 }
 0x3f9   :  { %1392 = vrot.lane.b32.xlu2 %v3554_v34, %s2968_s20 }
 0x401   :  { %1295 = vrot.lane.b32.xlu2 %v3577_v43, %s2966_s19 }
 0x409   :  { %1291 = vrot.lane.b32.xlu2 %v3581_v48, %s2966_s19 }
 0x411   :  { %v777_v49 = vpop.f32.mrf.mxu1 }
 0x412   :  { %v778_v41 = vadd.f32 %v2771_v10, %v777_v49 }
 0x417   :  { %v818_v50 = vpop.f32.mrf.mxu2 }
 0x418   :  { %v859_v51 = vpop.f32.mrf.mxu3  ;;  %v819_v57 = vadd.f32 %v3523_v3, %v818_v50 }
 0x419   :  { %v779_v54 = vpop.f32.mrf.mxu1  ;;  %v860_v61 = vadd.f32 %v2773_v39, %v859_v51 }
 0x41a   :  { %v780_v0 = vadd.f32 %v2771_v10, %v779_v54  ;;  %v900_v10 = vsel %vm880_vm0, %v3540_v19, 0 }
 0x41c   :  { %v875_v55 = vpack.c.bf16 %v780_v0, %v778_v41 }
 0x41e   :  { %1394 = vrot.lane.b32.xlu0 %v875_v55, %s2968_s20 }
 0x41f   :  { %v820_v56 = vpop.f32.mrf.mxu2 }
 0x420   :  { %v821_v59 = vadd.f32 %v3523_v3, %v820_v56  ;;  %v861_v38 = vpop.f32.mrf.mxu3  ;;  %v852_v3 = vadd.f32 %v2773_v39, %v851_v32 }
 0x421   :  { %v862_v62 = vadd.f32 %v2773_v39, %v861_v38 }
 0x422   :  { %v879_v63 = vpack.c.bf16 %v821_v59, %v819_v57  ;;  %v3598_v8 = vpack.c.bf16 %v852_v3, %v850_v6 }
 0x423   :  { %v3588_v1 = vpack.c.bf16 %v862_v62, %v860_v61  ;;  %v1123_v5 = vpop.permute.xlu2 %1122 }
 0x424   :  { %1402 = vrot.lane.b32.xlu2 %v879_v63, %s2968_s20  ;;  %1124 = vrot.lane.b32.xlu1 %v879_v63, %s2966_s19  ;;  %v903_v2 = vsel %vm880_vm0, %v879_v63, 0  ;;  %v1145_v40 = vsel %vm880_vm0, %v1123_v5, 0 }
 0x425   :  { %909 = vmatpush.bf16.xpose.msra.mxu0 %v903_v2  ;;  %v1062_v47 = vsel %vm1060_vm15, %v3588_v1, 0 }
 0x426   :  { %1068 = vmatpush.bf16.msrb.mxu1 %v1062_v47  ;;  %1297 = vrot.lane.b32.xlu0 %v3588_v1, %s2966_s19 }
 0x42a   :  { %1069 = vmatpush.bf16.msrb.mxu1 %v3577_v43 }
 0x42b   :  { %v1119_v9 = vpop.permute.xlu2 %1118  ;;  %v1121_v53 = vpop.permute.xlu0 %1120 }
 0x42c   :  { %1106 = vrot.lane.b32.xlu1 %v3560_v31, %s2966_s19  ;;  %v1142_v45 = vsel %vm880_vm0, %v1121_v53, 0  ;;  %v1139_v49 = vsel %vm880_vm0, %v1119_v9, 0  ;;  %v3681_v9 = vld [vmem:[%s4514_s7 + $0x10] sm:$0xff] }
 0x42d   :  { %910 = vmatpush.bf16.xpose.msra.mxu0 %v900_v10 }
 0x42e   :  { %1070 = vmatpush.bf16.msrb.mxu1 %v3598_v8 }
 0x432   :  { %1071 = vmatpush.bf16.msrb.mxu1 %v3581_v48 }
 0x433   :  { %v3609_v13 = vpop.permute.xlu2 %1110  ;;  %v1109_v16 = vpop.permute.xlu0 %1108 }
 0x434   :  { %1112 = vrot.lane.b32.xlu1 %v875_v55, %s2966_s19 }
 0x435   :  { %911 = vmatpush.bf16.xpose.msra.mxu0 %v897_v12 }
 0x43b   :  { %v1401_v15 = vpop.permute.xlu2 %1400  ;;  %v1675_v19 = vpop.permute.xlu0 %1674 }
 0x43c   :  { %1670 = vrot.lane.b32.xlu1 %v3548_v21, %s2967_s1  ;;  %v1423_v27 = vsel %vm880_vm0, %v1401_v15, 0  ;;  %v1697_v61 = vsel %vm880_vm0, %v1675_v19, 0 }
 0x43d   :  { %912 = vmatpush.bf16.xpose.msra.mxu0 %v894_v14 }
 0x443   :  { %v3620_v7 = vpop.permute.xlu2 %1662  ;;  %v1673_v58 = vpop.permute.xlu0 %1672 }
 0x444   :  { %2676 = vmatmul.msk.bf16.vlgmr.msra.gmra.mxu0 %vm880_vm0, %v3560_v31  ;;  %1396 = vrot.lane.b32.xlu1 %v3548_v21, %s2968_s20  ;;  %v1694_v6 = vsel %vm880_vm0, %v1673_v58, 0  ;;  %v3694_v58 = vld [vmem:[%s4514_s7 + $0x18] sm:$0xff] }
 0x44b   :  { %v3626_v17 = vpop.permute.xlu2 %1664  ;;  %v1399_v22 = vpop.permute.xlu0 %1398 }
 0x44c   :  { %1676 = vrot.lane.b32.xlu1 %v879_v63, %s2967_s1  ;;  %v3669_v63 = vld [vmem:[%s4514_s7 + $0x8] sm:$0xff] }
 0x453   :  { %v3629_v20 = vpop.permute.xlu2 %1392  ;;  %v1389_v24 = vpop.permute.xlu0 %1388 }
 0x454   :  { %2677 = vmatmul.msk.bf16.gmra.mxu0 %vm880_vm0, %v3534_v23  ;;  %1390 = vrot.lane.b32.xlu1 %v3534_v23, %s2968_s20 }
 0x45b   :  { %v1296_v21 = vpop.permute.xlu2 %1295  ;;  %v3640_v28 = vpop.permute.xlu0 %1666 }
 0x45c   :  { %1668 = vrot.lane.b32.xlu1 %v875_v55, %s2967_s1 }
 0x463   :  { %v3636_v23 = vpop.permute.xlu2 %1291 }
 0x464   :  { %2678 = vmatmul.msk.bf16.gmra.mxu0 %vm880_vm0, %v3554_v34  ;;  %1293 = vrot.lane.b32.xlu1 %v3598_v8, %s2966_s19  ;;  %v1420_v34 = vsel %vm880_vm0, %v1399_v22, 0  ;;  %s2970_s19 = smov 16  }
 0x474   :  { %2679 = vmatmul.msk.bf16.gmra.mxu0 %vm880_vm0, %v875_v55  ;;  %v3657_v55 = vld [vmem:[%s4514_s7] sm:$0xff] }
 0x47e   :  { %v1403_v25 = vpop.permute.xlu2 %1402 }
 0x47f   :  { %v1426_v26 = vsel %vm880_vm0, %v1403_v25, 0  ;;  %v3707_v25 = vld [vmem:[%s4514_s7 + $0x20] sm:$0xff] }
 0x480   :  { %1432 = vmatpush.bf16.xpose.msrb.mxu0 %v1426_v26 }
 0x488   :  { %1433 = vmatpush.bf16.xpose.msrb.mxu0 %v1423_v27 }
 0x490   :  { %1434 = vmatpush.bf16.xpose.msrb.mxu0 %v1420_v34  ;;  %v3643_v29 = vpop.permute.xlu0 %1394 }
 0x496   :  { %v1125_v31 = vpop.permute.xlu1 %1124 }
 0x497   :  { %v1148_v32 = vsel %vm880_vm0, %v1125_v31, 0 }
 0x498   :  { %1154 = vmatpush.bf16.xpose.msrb.mxu2 %v1148_v32  ;;  %v1298_v35 = vpop.permute.xlu0 %1297 }
 0x499   :  { %v1315_v37 = vsel %vm1060_vm15, %v1298_v35, 0 }
 0x49a   :  { %1321 = vmatpush.bf16.msra.mxu3 %v1315_v37 }
 0x49e   :  { %v1107_v39 = vpop.permute.xlu1 %1106  ;;  %1322 = vmatpush.bf16.msra.mxu3 %v1296_v21 }
 0x4a0   :  { %1155 = vmatpush.bf16.xpose.msrb.mxu2 %v1145_v40 }
 0x4a6   :  { %v1113_v42 = vpop.permute.xlu1 %1112 }
 0x4a8   :  { %1156 = vmatpush.bf16.xpose.msrb.mxu2 %v1142_v45 }
 0x4ae   :  { %v1671_v46 = vpop.permute.xlu1 %1670 }
 0x4b0   :  { %1157 = vmatpush.bf16.xpose.msrb.mxu2 %v1139_v49 }
 0x4b6   :  { %v1397_v50 = vpop.permute.xlu1 %1396 }
 0x4b7   :  { %v1417_v51 = vsel %vm880_vm0, %v1397_v50, 0  ;;  %2684 = vmatmul.msk.bf16.vlgmr.msrb.gmra.mxu2 %vm880_vm0, %v1107_v39  ;;  %v3730_v39 = vld [vmem:[%s4514_s7 + $0x30] sm:$0xff] }
 0x4b8   :  { %1435 = vmatpush.bf16.xpose.msrb.mxu0 %v1417_v51 }
 0x4be   :  { %v1677_v54 = vpop.permute.xlu1 %1676 }
 0x4bf   :  { %v1700_v41 = vsel %vm880_vm0, %v1677_v54, 0  ;;  %2692 = vmatmul.msk.bf16.vlgmr.msrb.gmra.mxu0 %vm880_vm0, %v1389_v24 }
 0x4c0   :  { %1706 = vmatpush.bf16.xpose.msra.mxu2 %v1700_v41 }
 0x4c1   :  { %v914_v0 = vpop.f32.mrf.mxu0 }
 0x4c2   :  { %v934_v56 = vmul.f32 0.35355338, %v914_v0 }
 0x4c4   :  { %v3660_v57 = vadd.f32 %v934_v56, %v3657_v55 }
 0x4c6   :  { %v1391_v59 = vpop.permute.xlu1 %1390  ;;  %v951_v38 = vsel %vm950_vm1, %v3660_v57, -inf }
 0x4c7   :  { %952 = vmax.xlane.f32.xlu0 %v951_v38  ;;  %2685 = vmatmul.msk.bf16.gmra.mxu2 %vm880_vm0, %v1109_v16  ;;  %v1691_v16 = vsel %vm880_vm0, %v1671_v46, 0 }
 0x4c8   :  { %1707 = vmatpush.bf16.xpose.msra.mxu2 %v1697_v61 }
 0x4c9   :  { %v916_v62 = vpop.f32.mrf.mxu0 }
 0x4ca   :  { %v935_v2 = vmul.f32 0.35355338, %v916_v62 }
 0x4cc   :  { %v3672_v47 = vadd.f32 %v935_v2, %v3669_v63 }
 0x4ce   :  { %v1669_v5 = vpop.permute.xlu1 %1668  ;;  %v954_v3 = vsel %vm950_vm1, %v3672_v47, -inf }
 0x4cf   :  { %955 = vmax.xlane.f32.xlu2 %v954_v3  ;;  %2693 = vmatmul.msk.bf16.gmra.mxu0 %vm880_vm0, %v1391_v59 }
 0x4d0   :  { %1708 = vmatpush.bf16.xpose.msra.mxu2 %v1694_v6 }
 0x4d1   :  { %v919_v10 = vpop.f32.mrf.mxu0 }
 0x4d2   :  { %v936_v12 = vmul.f32 0.35355338, %v919_v10 }
 0x4d4   :  { %v3684_v14 = vadd.f32 %v936_v12, %v3681_v9 }
 0x4d6   :  { %v1294_v15 = vpop.permute.xlu1 %1293  ;;  %v957_v53 = vsel %vm950_vm1, %v3684_v14, -inf }
 0x4d7   :  { %958 = vmax.xlane.f32.xlu2 %v957_v53  ;;  %2686 = vmatmul.msk.bf16.gmra.mxu2 %vm880_vm0, %v3609_v13 }
 0x4d8   :  { %1323 = vmatpush.bf16.msra.mxu3 %v1294_v15  ;;  %1709 = vmatpush.bf16.xpose.msra.mxu2 %v1691_v16 }
 0x4d9   :  { %v921_v19 = vpop.f32.mrf.mxu0 }
 0x4da   :  { %v937_v21 = vmul.f32 0.35355338, %v921_v19 }
 0x4dc   :  { %1324 = vmatpush.bf16.msra.mxu3 %v3636_v23  ;;  %v3698_v22 = vadd.f32 %v937_v21, %v3694_v58 }
 0x4de   :  { %v960_v24 = vsel %vm950_vm1, %v3698_v22, -inf }
 0x4df   :  { %961 = vmax.xlane.f32.xlu1 %v960_v24  ;;  %2694 = vmatmul.msk.bf16.gmra.mxu0 %vm880_vm0, %v3629_v20  ;;  %v3718_v20 = vld [vmem:[%s4514_s7 + $0x28] sm:$0xff] }
 0x4e1   :  { %v924_v13 = vpop.f32.mrf.mxu0 }
 0x4e2   :  { %v938_v26 = vmul.f32 0.35355338, %v924_v13 }
 0x4e4   :  { %v3710_v27 = vadd.f32 %v938_v26, %v3707_v25 }
 0x4e6   :  { %v963_v23 = vsel %vm950_vm1, %v3710_v27, -inf }
 0x4e7   :  { %964 = vmax.xlane.f32.xlu1 %v963_v23  ;;  %2687 = vmatmul.msk.bf16.gmra.mxu2 %vm880_vm0, %v1113_v42 }
 0x4e9   :  { %v926_v34 = vpop.f32.mrf.mxu0 }
 0x4ea   :  { %v939_v31 = vmul.f32 0.35355338, %v926_v34 }
 0x4ec   :  { %v3721_v32 = vadd.f32 %v939_v31, %v3718_v20 }
 0x4ee   :  { %v966_v35 = vsel %vm950_vm1, %v3721_v32, -inf }
 0x4ef   :  { %967 = vmax.xlane.f32.xlu0 %v966_v35  ;;  %2695 = vmatmul.msk.bf16.gmra.mxu0 %vm880_vm0, %v3643_v29  ;;  %v3742_v29 = vld [vmem:[%s4514_s7 + $0x38] sm:$0xf]  ;;  %s2969_s7 = smov 8  }
 0x4f1   :  { %v929_v37 = vpop.f32.mrf.mxu0 }
 0x4f2   :  { %v940_v40 = vmul.f32 0.35355338, %v929_v37 }
 0x4f4   :  { %v3733_v42 = vadd.f32 %v940_v40, %v3730_v39 }
 0x4f6   :  { %v969_v45 = vsel %vm950_vm1, %v3733_v42, -inf }
 0x4f7   :  { %970 = vmax.xlane.f32.xlu2 %v969_v45  ;;  %2700 = vmatmul.msk.bf16.vlgmr.msra.gmra.mxu2 %vm880_vm0, %v3620_v7 }
 0x4f9   :  { %v931_v46 = vpop.f32.mrf.mxu0 }
 0x4fa   :  { %v941_v49 = vmul.f32 0.35355338, %v931_v46 }
 0x4fc   :  { %v3745_v50 = vadd.f32 %v941_v49, %v3742_v29 }
 0x4fe   :  { %v973_v51 = vsel %vm972_vm3, %v3745_v50, -inf }
 0x4ff   :  { %974 = vmax.xlane.f32.xlu1 %v973_v51 }
 0x507   :  { %2701 = vmatmul.msk.bf16.gmra.mxu2 %vm880_vm0, %v3626_v17 }
 0x517   :  { %2702 = vmatmul.msk.bf16.gmra.mxu2 %vm880_vm0, %v3640_v28 }
 0x527   :  { %2703 = vmatmul.msk.bf16.gmra.mxu2 %vm880_vm0, %v1669_v5 }
 0x53a   :  { %v1159_v7 = vpop.f32.mrf.mxu2  ;;  %v953_v0 = vpop.xlane.xlu0 %952 }
 0x53b   :  { %v1179_v54 = vmul.f32 0.35355338, %v1159_v7  ;;  %v976_v17 = vsub.f32 %v3660_v57, %v953_v0 }
 0x53c   :  { %v1437_v41 = vpop.f32.mrf.mxu0 }
 0x53d   :  { %v1457_v56 = vmul.f32 0.35355338, %v1437_v41  ;;  %v3755_v59 = vadd.f32 %v1179_v54, %v3657_v55  ;;  %v984_v6 = vmul.f32 1.442695, %v976_v17 }
 0x53f   :  { %v1195_v38 = vsel %vm950_vm1, %v3755_v59, -inf  ;;  %v3760_v61 = vadd.f32 %v1457_v56, %v3657_v55 }
 0x540   :  { %1196 = vmax.xlane.f32.xlu2 %v1195_v38 }
 0x541   :  { %v1473_v28 = vsel %vm950_vm1, %v3760_v61, -inf }
 0x542   :  { %v956_v62 = vpop.xlane.xlu2 %955  ;;  %v1161_v2 = vpop.f32.mrf.mxu2  ;;  %1474 = vmax.xlane.f32.xlu0 %v1473_v28 }
 0x543   :  { %v977_v5 = vsub.f32 %v3672_v47, %v956_v62  ;;  %v1180_v3 = vmul.f32 0.35355338, %v1161_v2 }
 0x544   :  { %v1439_v10 = vpop.f32.mrf.mxu0 }
 0x545   :  { %v986_v12 = vmul.f32 1.442695, %v977_v5  ;;  %v1458_v15 = vmul.f32 0.35355338, %v1439_v10  ;;  %v3767_v53 = vadd.f32 %v1180_v3, %v3669_v63 }
 0x547   :  { %2795 = vpow2.f32 %v986_v12  ;;  %v1198_v57 = vsel %vm950_vm1, %v3767_v53, -inf  ;;  %v3772_v16 = vadd.f32 %v1458_v15, %v3669_v63 }
 0x548   :  { %2797 = vpow2.f32 %v984_v6  ;;  %1199 = vmax.xlane.f32.xlu1 %v1198_v57 }
 0x549   :  { %v1476_v47 = vsel %vm950_vm1, %v3772_v16, -inf }
 0x54a   :  { %v959_v19 = vpop.xlane.xlu2 %958  ;;  %v1164_v21 = vpop.f32.mrf.mxu2  ;;  %1477 = vmax.xlane.f32.xlu0 %v1476_v47 }
 0x54b   :  { %v978_v24 = vsub.f32 %v3684_v14, %v959_v19  ;;  %v1181_v37 = vmul.f32 0.35355338, %v1164_v21 }
 0x54c   :  { %v1442_v13 = vpop.f32.mrf.mxu0 }
 0x54d   :  { %v3777_v26 = vpop.eup %2795  ;;  %v988_v23 = vmul.f32 1.442695, %v978_v24  ;;  %v1459_v34 = vmul.f32 0.35355338, %v1442_v13  ;;  %v3791_v51 = vadd.f32 %v1181_v37, %v3681_v9 }
 0x54e   :  { %v3779_v31 = vpop.eup %2797  ;;  %v1003_v35 = vsel %vm950_vm1, %v3777_v26, 0.0 }
 0x54f   :  { %v3784_v40 = vadd.f32 %v1459_v34, %v3681_v9  ;;  %2799 = vpow2.f32 %v988_v23  ;;  %v1000_v14 = vsel %vm950_vm1, %v3779_v31, 0.0  ;;  %v1201_v0 = vsel %vm950_vm1, %v3791_v51, -inf }
 0x550   :  { %1004 = vadd.xlane.f32.xlu1 %v1003_v35 }
 0x551   :  { %v1479_v45 = vsel %vm950_vm1, %v3784_v40, -inf }
 0x552   :  { %v962_v46 = vpop.xlane.xlu1 %961  ;;  %v1166_v49 = vpop.f32.mrf.mxu2  ;;  %1480 = vmax.xlane.f32.xlu2 %v1479_v45  ;;  %1001 = vadd.xlane.f32.xlu0 %v1000_v14 }
 0x553   :  { %v979_v38 = vsub.f32 %v3698_v22, %v962_v46  ;;  %v1182_v17 = vmul.f32 0.35355338, %v1166_v49 }
 0x554   :  { %v1444_v7 = vpop.f32.mrf.mxu0 }
 0x555   :  { %v1460_v54 = vmul.f32 0.35355338, %v1444_v7  ;;  %v3793_v41 = vpop.eup %2799  ;;  %v990_v10 = vmul.f32 1.442695, %v979_v38  ;;  %v3807_v57 = vadd.f32 %v1182_v17, %v3694_v58 }
 0x556   :  { %v1006_v28 = vsel %vm950_vm1, %v3793_v41, 0.0 }
 0x557   :  { %v3798_v56 = vadd.f32 %v1460_v54, %v3694_v58  ;;  %v1204_v19 = vsel %vm950_vm1, %v3807_v57, -inf }
 0x558   :  { %1202 = vmax.xlane.f32.xlu1 %v1201_v0 }
 0x559   :  { %v1482_v62 = vsel %vm950_vm1, %v3798_v56, -inf }
 0x55a   :  { %v965_v2 = vpop.xlane.xlu1 %964  ;;  %v1169_v5 = vpop.f32.mrf.mxu2  ;;  %1007 = vadd.xlane.f32.xlu2 %v1006_v28  ;;  %1483 = vmax.xlane.f32.xlu0 %v1482_v62 }
 0x55b   :  { %v980_v3 = vsub.f32 %v3710_v27, %v965_v2  ;;  %v1183_v49 = vmul.f32 0.35355338, %v1169_v5 }
 0x55c   :  { %v1447_v6 = vpop.f32.mrf.mxu0 }
 0x55d   :  { %v992_v12 = vmul.f32 1.442695, %v980_v3  ;;  %v1461_v15 = vmul.f32 0.35355338, %v1447_v6  ;;  %v3835_v62 = vadd.f32 %v1183_v49, %v3707_v25 }
 0x55f   :  { %v3810_v22 = vadd.f32 %v1461_v15, %v3707_v25  ;;  %2801 = vpow2.f32 %v992_v12 }
 0x560   :  { %2803 = vpow2.f32 %v990_v10 }
 0x561   :  { %v1485_v47 = vsel %vm950_vm1, %v3810_v22, -inf }
 0x562   :  { %v1171_v21 = vpop.f32.mrf.mxu2  ;;  %1486 = vmax.xlane.f32.xlu1 %v1485_v47  ;;  %1205 = vmax.xlane.f32.xlu0 %v1204_v19  ;;  %v968_v24 = vpop.xlane.xlu0 %967 }
 0x563   :  { %v981_v37 = vsub.f32 %v3721_v32, %v968_v24  ;;  %v1184_v45 = vmul.f32 0.35355338, %v1171_v21 }
 0x564   :  { %v1449_v27 = vpop.f32.mrf.mxu0 }
 0x565   :  { %v1462_v13 = vmul.f32 0.35355338, %v1449_v27  ;;  %v3816_v23 = vpop.eup %2801  ;;  %v994_v17 = vmul.f32 1.442695, %v981_v37  ;;  %v3832_v28 = vadd.f32 %v1184_v45, %v3718_v20 }
 0x566   :  { %v3818_v34 = vpop.eup %2803  ;;  %v1012_v14 = vsel %vm950_vm1, %v3816_v23, 0.0 }
 0x567   :  { %v3821_v35 = vadd.f32 %v1462_v13, %v3718_v20  ;;  %v1009_v0 = vsel %vm950_vm1, %v3818_v34, 0.0  ;;  %2805 = vpow2.f32 %v994_v17  ;;  %v1210_v2 = vsel %vm950_vm1, %v3832_v28, -inf }
 0x569   :  { %v1488_v46 = vsel %vm950_vm1, %v3821_v35, -inf }
 0x56a   :  { %v971_v7 = vpop.xlane.xlu2 %970  ;;  %v1174_v54 = vpop.f32.mrf.mxu2  ;;  %1013 = vadd.xlane.f32.xlu1 %v1012_v14  ;;  %1489 = vmax.xlane.f32.xlu2 %v1488_v46 }
 0x56b   :  { %v982_v38 = vsub.f32 %v3733_v42, %v971_v7  ;;  %1010 = vadd.xlane.f32.xlu0 %v1009_v0  ;;  %v1207_v42 = vsel %vm950_vm1, %v3835_v62, -inf  ;;  %v1185_v27 = vmul.f32 0.35355338, %v1174_v54 }
 0x56d   :  { %v996_v32 = vmul.f32 1.442695, %v982_v38  ;;  %v3845_v47 = vpop.eup %2805  ;;  %v3858_v45 = vadd.f32 %v1185_v27, %v3730_v39 }
 0x56e   :  { %v1015_v24 = vsel %vm950_vm1, %v3845_v47, 0.0 }
 0x56f   :  { %2807 = vpow2.f32 %v996_v32  ;;  %v1213_v49 = vsel %vm950_vm1, %v3858_v45, -inf }
 0x572   :  { %v975_v5 = vpop.xlane.xlu1 %974  ;;  %v1176_v3 = vpop.f32.mrf.mxu2  ;;  %1211 = vmax.xlane.f32.xlu2 %v1210_v2 }
 0x573   :  { %v983_v6 = vsub.f32 %v3745_v50, %v975_v5  ;;  %v1186_v10 = vmul.f32 0.35355338, %v1176_v3  ;;  %1208 = vmax.xlane.f32.xlu0 %v1207_v42 }
 0x575   :  { %v998_v12 = vmul.f32 1.442695, %v983_v6  ;;  %v3843_v15 = vadd.f32 %v1186_v10, %v3742_v29  ;;  %v3847_v19 = vpop.eup %2807 }
 0x576   :  { %v1018_v13 = vsel %vm950_vm1, %v3847_v19, 0.0 }
 0x577   :  { %2809 = vpow2.f32 %v998_v12  ;;  %v1216_v21 = vsel %vm972_vm3, %v3843_v15, -inf }
 0x578   :  { %1217 = vmax.xlane.f32.xlu1 %v1216_v21 }
 0x57a   :  { %v1711_v50 = vpop.f32.mrf.mxu2  ;;  %1016 = vadd.xlane.f32.xlu2 %v1015_v24 }
 0x57b   :  { %1019 = vadd.xlane.f32.xlu0 %v1018_v13  ;;  %v1731_v46 = vmul.f32 0.35355338, %v1711_v50 }
 0x57d   :  { %v3855_v37 = vpop.eup %2809  ;;  %v3868_v38 = vadd.f32 %v1731_v46, %v3657_v55 }
 0x57e   :  { %v1021_v14 = vsel %vm972_vm3, %v3855_v37, 0.0 }
 0x57f   :  { %v1747_v32 = vsel %vm950_vm1, %v3868_v38, -inf }
 0x580   :  { %1022 = vadd.xlane.f32.xlu1 %v1021_v14  ;;  %v1452_v14 = vpop.f32.mrf.mxu0 }
 0x582   :  { %v1713_v7 = vpop.f32.mrf.mxu2  ;;  %1214 = vmax.xlane.f32.xlu2 %v1213_v49 }
 0x583   :  { %v1732_v54 = vmul.f32 0.35355338, %v1713_v7 }
 0x585   :  { %v3865_v0 = vadd.f32 %v1732_v54, %v3669_v63 }
 0x587   :  { %v1750_v17 = vsel %vm950_vm1, %v3865_v0, -inf }
 0x588   :  { %1751 = vmax.xlane.f32.xlu1 %v1750_v17 }
 0x58a   :  { %v1716_v2 = vpop.f32.mrf.mxu2  ;;  %1748 = vmax.xlane.f32.xlu2 %v1747_v32 }
 0x58b   :  { %v1733_v5 = vmul.f32 0.35355338, %v1716_v2  ;;  %v1454_v2 = vpop.f32.mrf.mxu0 }
 0x58d   :  { %v3875_v3 = vadd.f32 %v1733_v5, %v3681_v9 }
 0x58f   :  { %v1753_v63 = vsel %vm950_vm1, %v3875_v3, -inf }
 0x590   :  { %1754 = vmax.xlane.f32.xlu1 %v1753_v63 }
 0x592   :  { %v1718_v42 = vpop.f32.mrf.mxu2 }
 0x593   :  { %v1734_v55 = vmul.f32 0.35355338, %v1718_v42 }
 0x595   :  { %v3880_v6 = vadd.f32 %v1734_v55, %v3694_v58  ;;  %v1464_v55 = vmul.f32 0.35355338, %v1454_v2 }
 0x597   :  { %v1756_v10 = vsel %vm950_vm1, %v3880_v6, -inf }
 0x598   :  { %1757 = vmax.xlane.f32.xlu2 %v1756_v10 }
 0x59a   :  { %v1721_v12 = vpop.f32.mrf.mxu2 }
 0x59b   :  { %v1735_v21 = vmul.f32 0.35355338, %v1721_v12 }
 0x59d   :  { %v3885_v27 = vadd.f32 %v1735_v21, %v3707_v25  ;;  %v3908_v21 = vadd.f32 %v1464_v55, %v3742_v29 }
 0x59f   :  { %v1759_v9 = vsel %vm950_vm1, %v3885_v27, -inf }
 0x5a0   :  { %1760 = vmax.xlane.f32.xlu0 %v1759_v9 }
 0x5a2   :  { %v1723_v24 = vpop.f32.mrf.mxu2 }
 0x5a3   :  { %v1736_v50 = vmul.f32 0.35355338, %v1723_v24 }
 0x5a5   :  { %v3890_v13 = vadd.f32 %v1736_v50, %v3718_v20 }
 0x5a7   :  { %v1762_v58 = vsel %vm950_vm1, %v3890_v13, -inf }
 0x5a8   :  { %1763 = vmax.xlane.f32.xlu1 %v1762_v58  ;;  %v1463_v58 = vmul.f32 0.35355338, %v1452_v14 }
 0x5aa   :  { %v1726_v46 = vpop.f32.mrf.mxu2 }
 0x5ab   :  { %v1737_v49 = vmul.f32 0.35355338, %v1726_v46  ;;  %v1494_v46 = vsel %vm972_vm3, %v3908_v21, -inf }
 0x5ad   :  { %v3895_v7 = vadd.f32 %v1737_v49, %v3730_v39 }
 0x5af   :  { %v1765_v25 = vsel %vm950_vm1, %v3895_v7, -inf }
 0x5b0   :  { %1766 = vmax.xlane.f32.xlu2 %v1765_v25 }
 0x5b2   :  { %v1728_v54 = vpop.f32.mrf.mxu2 }
 0x5b3   :  { %v1738_v17 = vmul.f32 0.35355338, %v1728_v54  ;;  %v1197_v32 = vpop.xlane.xlu2 %1196 }
 0x5b4   :  { %v1219_v20 = vsub.f32 %v3755_v59, %v1197_v32 }
 0x5b5   :  { %v3900_v5 = vpop.xlane.xlu0 %1474  ;;  %v3903_v63 = vadd.f32 %v1738_v17, %v3742_v29  ;;  %v3920_v29 = vadd.f32 %v1463_v58, %v3730_v39 }
 0x5b6   :  { %v1227_v42 = vmul.f32 1.442695, %v1219_v20 }
 0x5b7   :  { %v1768_v10 = vsel %vm972_vm3, %v3903_v63, -inf  ;;  %v1491_v17 = vsel %vm950_vm1, %v3920_v29, -inf }
 0x5b8   :  { %2811 = vpow2.f32 %v1227_v42  ;;  %1769 = vmax.xlane.f32.xlu0 %v1768_v10 }
 0x5bb   :  { %v1200_v12 = vpop.xlane.xlu1 %1199 }
 0x5bc   :  { %v1220_v9 = vsub.f32 %v3767_v53, %v1200_v12 }
 0x5bd   :  { %v3911_v24 = vpop.xlane.xlu0 %1477 }
 0x5be   :  { %v3913_v59 = vpop.eup %2811  ;;  %v1229_v50 = vmul.f32 1.442695, %v1220_v9 }
 0x5bf   :  { %v1243_v49 = vsel %vm950_vm1, %v3913_v59, 0.0 }
 0x5c0   :  { %2813 = vpow2.f32 %v1229_v50  ;;  %1495 = vmax.xlane.f32.xlu0 %v1494_v46  ;;  %1244 = vadd.xlane.f32.xlu2 %v1243_v49 }
 0x5c3   :  { %v1005_v25 = vpop.xlane.xlu1 %1004 }
 0x5c4   :  { %2815 = vrcp.f32 %v1005_v25 }
 0x5c5   :  { %v1002_v53 = vpop.xlane.xlu0 %1001  ;;  %v3928_v2 = vpop.xlane.xlu2 %1480 }
 0x5c6   :  { %v3922_v54 = vpop.eup %2813  ;;  %2817 = vrcp.f32 %v1002_v53 }
 0x5c7   :  { %v1246_v14 = vsel %vm950_vm1, %v3922_v54, 0.0 }
 0x5c8   :  { %1247 = vadd.xlane.f32.xlu1 %v1246_v14  ;;  %1492 = vmax.xlane.f32.xlu2 %v1491_v17 }
 0x5ca   :  { %v2816_v32 = vpop.eup %2815 }
 0x5cb   :  { %v1203_v20 = vpop.xlane.xlu1 %1202  ;;  %v1033_v55 = vmul.f32 %v2816_v32, %v3777_v26 }
 0x5cc   :  { %v2818_v42 = vpop.eup %2817  ;;  %v1221_v39 = vsub.f32 %v3791_v51, %v1203_v20 }
 0x5cd   :  { %v1032_v10 = vmul.f32 %v2818_v42, %v3779_v31  ;;  %v3933_v12 = vpop.xlane.xlu0 %1483  ;;  %v1008_v58 = vpop.xlane.xlu2 %1007 }
 0x5ce   :  { %v1231_v9 = vmul.f32 1.442695, %v1221_v39 }
 0x5cf   :  { %v1040_v50 = vpack.c.bf16 %v1033_v55, %v1032_v10 }
 0x5d0   :  { %2819 = vpow2.f32 %v1231_v9 }
 0x5d1   :  { %2680 = vmatmul.msk.bf16.vlgmr.msrb.gmra.mxu1 %vm950_vm1, %v1040_v50 }
 0x5d5   :  { %v1206_v46 = vpop.xlane.xlu0 %1205  ;;  %v3941_v26 = vpop.xlane.xlu1 %1486 }
 0x5d6   :  { %v3936_v49 = vpop.eup %2819  ;;  %v1222_v25 = vsub.f32 %v3807_v57, %v1206_v46 }
 0x5d7   :  { %v1249_v51 = vsel %vm950_vm1, %v3936_v49, 0.0 }
 0x5d8   :  { %v1233_v53 = vmul.f32 1.442695, %v1222_v25  ;;  %1250 = vadd.xlane.f32.xlu0 %v1249_v51 }
 0x5da   :  { %2821 = vpow2.f32 %v1233_v53 }
 0x5db   :  { %2823 = vrcp.f32 %v1008_v58 }
 0x5dd   :  { %v3943_v31 = vpop.xlane.xlu2 %1489  ;;  %v1014_v39 = vpop.xlane.xlu1 %1013 }
 0x5de   :  { %v1011_v14 = vpop.xlane.xlu0 %1010 }
 0x5df   :  { %2825 = vrcp.f32 %v1011_v14 }
 0x5e0   :  { %1571 = vrot.lane.b32.xlu2 %v3588_v1, %s2968_s20  ;;  %v3947_v17 = vpop.eup %2821 }
 0x5e1   :  { %1845 = vrot.lane.b32.xlu1 %v3588_v1, %s2967_s1  ;;  %v1252_v57 = vsel %vm950_vm1, %v3947_v17, 0.0  ;;  %v2824_v32 = vpop.eup %2823 }
 0x5e2   :  { %1253 = vadd.xlane.f32.xlu0 %v1252_v57  ;;  %v1034_v10 = vmul.f32 %v2824_v32, %v3793_v41 }
 0x5e5   :  { %v2826_v20 = vpop.eup %2825  ;;  %v1212_v42 = vpop.xlane.xlu2 %1211 }
 0x5e6   :  { %v1209_v55 = vpop.xlane.xlu0 %1208  ;;  %v1035_v9 = vmul.f32 %v2826_v20, %v3818_v34 }
 0x5e7   :  { %v1223_v50 = vsub.f32 %v3835_v62, %v1209_v55  ;;  %v1497_v55 = vsub.f32 %v3760_v61, %v3900_v5 }
 0x5e8   :  { %v1041_v58 = vpack.c.bf16 %v1035_v9, %v1034_v10 }
 0x5e9   :  { %v1235_v46 = vmul.f32 1.442695, %v1223_v50  ;;  %v1505_v50 = vmul.f32 1.442695, %v1497_v55 }
 0x5ea   :  { %2681 = vmatmul.msk.bf16.gmra.mxu1 %vm950_vm1, %v1041_v58 }
 0x5eb   :  { %2827 = vpow2.f32 %v1235_v46  ;;  %v1218_v25 = vpop.xlane.xlu1 %1217 }
 0x5ec   :  { %2829 = vrcp.f32 %v1014_v39 }
 0x5ed   :  { %v1017_v1 = vpop.xlane.xlu2 %1016 }
 0x5ee   :  { %2831 = vrcp.f32 %v1017_v1  ;;  %v1020_v10 = vpop.xlane.xlu0 %1019 }
 0x5f1   :  { %v3957_v51 = vpop.eup %2827 }
 0x5f2   :  { %v2830_v53 = vpop.eup %2829  ;;  %v1255_v14 = vsel %vm950_vm1, %v3957_v51, 0.0 }
 0x5f3   :  { %1256 = vadd.xlane.f32.xlu0 %v1255_v14  ;;  %v1036_v34 = vmul.f32 %v2830_v53, %v3816_v23  ;;  %v1023_v39 = vpop.xlane.xlu1 %1022  ;;  %v1224_v23 = vsub.f32 %v3832_v28, %v1212_v42 }
 0x5f4   :  { %v2832_v41 = vpop.eup %2831  ;;  %2833 = vrcp.f32 %v1023_v39 }
 0x5f5   :  { %v1037_v62 = vmul.f32 %v2832_v41, %v3845_v47  ;;  %v1215_v57 = vpop.xlane.xlu2 %1214  ;;  %2835 = vrcp.f32 %v1020_v10  ;;  %v1237_v1 = vmul.f32 1.442695, %v1224_v23  ;;  %v1226_v41 = vsub.f32 %v3843_v15, %v1218_v25 }
 0x5f6   :  { %v1225_v32 = vsub.f32 %v3858_v45, %v1215_v57 }
 0x5f7   :  { %v1042_v20 = vpack.c.bf16 %v1037_v62, %v1036_v34  ;;  %v1241_v62 = vmul.f32 1.442695, %v1226_v41 }
 0x5f8   :  { %v1239_v9 = vmul.f32 1.442695, %v1225_v32  ;;  %v1498_v32 = vsub.f32 %v3772_v16, %v3911_v24 }
 0x5fa   :  { %2682 = vmatmul.msk.bf16.gmra.mxu1 %vm950_vm1, %v1042_v20  ;;  %2837 = vpow2.f32 %v1239_v9  ;;  %v2834_v58 = vpop.eup %2833  ;;  %v1507_v20 = vmul.f32 1.442695, %v1498_v32 }
 0x5fb   :  { %2839 = vpow2.f32 %v1505_v50  ;;  %v2836_v47 = vpop.eup %2835  ;;  %v1039_v45 = vmul.f32 %v2834_v58, %v3855_v37  ;;  %v1752_v34 = vpop.xlane.xlu1 %1751 }
 0x5fc   :  { %v1038_v61 = vmul.f32 %v2836_v47, %v3847_v19  ;;  %2841 = vpow2.f32 %v1237_v1  ;;  %v1772_v25 = vsub.f32 %v3865_v0, %v1752_v34  ;;  %v1500_v34 = vsub.f32 %v3798_v56, %v3933_v12 }
 0x5fd   :  { %v1749_v42 = vpop.xlane.xlu2 %1748  ;;  %2843 = vpow2.f32 %v1241_v62 }
 0x5fe   :  { %v1043_v14 = vpack.c.bf16 %v1039_v45, %v1038_v61  ;;  %2845 = vpow2.f32 %v1507_v20 }
 0x600   :  { %v3969_v46 = vpop.eup %2837 }
 0x601   :  { %v3972_v5 = vpop.eup %2839  ;;  %v1261_v53 = vsel %vm950_vm1, %v3969_v46, 0.0 }
 0x602   :  { %v1521_v28 = vsel %vm950_vm1, %v3972_v5, 0.0  ;;  %v3981_v37 = vpop.eup %2841 }
 0x603   :  { %v1258_v19 = vsel %vm950_vm1, %v3981_v37, 0.0  ;;  %v3992_v39 = vpop.xlane.xlu1 %1754  ;;  %v3998_v15 = vpop.eup %2843 }
 0x604   :  { %v1264_v16 = vsel %vm972_vm3, %v3998_v15, 0.0  ;;  %v4005_v50 = vpop.eup %2845 }
 0x605   :  { %v1524_v0 = vsel %vm950_vm1, %v4005_v50, 0.0 }
 0x607   :  { %1843 = vrot.lane.b32.xlu0 %v3577_v43, %s2967_s1 }
 0x609   :  { %1262 = vadd.xlane.f32.xlu2 %v1261_v53 }
 0x60a   :  { %2683 = vmatmul.msk.bf16.gmra.mxu1 %vm950_vm1, %v1043_v14 }
 0x60b   :  { %1522 = vadd.xlane.f32.xlu1 %v1521_v28  ;;  %v1758_v57 = vpop.xlane.xlu2 %1757 }
 0x60c   :  { %v1774_v61 = vsub.f32 %v3880_v6, %v1758_v57 }
 0x60e   :  { %v1785_v14 = vmul.f32 1.442695, %v1774_v61 }
 0x613   :  { %1259 = vadd.xlane.f32.xlu1 %v1258_v19  ;;  %v1761_v9 = vpop.xlane.xlu0 %1760 }
 0x614   :  { %v1775_v20 = vsub.f32 %v3885_v27, %v1761_v9 }
 0x616   :  { %v1787_v56 = vmul.f32 1.442695, %v1775_v20 }
 0x61b   :  { %v1764_v24 = vpop.xlane.xlu1 %1763 }
 0x621   :  { %1841 = vrot.lane.b32.xlu2 %v3598_v8, %s2967_s1 }
 0x623   :  { %v3994_v55 = vpop.xlane.xlu2 %1766 }
 0x629   :  { %1569 = vrot.lane.b32.xlu2 %v3577_v43, %s2968_s20  ;;  %v1781_v43 = vmul.f32 1.442695, %v1772_v25 }
 0x62b   :  { %2847 = vpow2.f32 %v1781_v43  ;;  %v4013_v45 = vpop.xlane.xlu0 %1769  ;;  %v1776_v43 = vsub.f32 %v3890_v13, %v1764_v24 }
 0x62c   :  { %1567 = vrot.lane.b32.xlu1 %v3598_v8, %s2968_s20  ;;  %v1499_v8 = vsub.f32 %v3784_v40, %v3928_v2 }
 0x62e   :  { %v1509_v58 = vmul.f32 1.442695, %v1499_v8 }
 0x631   :  { %1265 = vadd.xlane.f32.xlu0 %v1264_v16  ;;  %1839 = vrot.lane.b32.xlu2 %v3581_v48, %s2967_s1  ;;  %v4015_v1 = vpop.eup %2847  ;;  %s2971_s1 = smov 24  }
 0x632   :  { %v1798_v40 = vsel %vm950_vm1, %v4015_v1, 0.0 }
 0x633   :  { %v1245_v10 = vpop.xlane.xlu2 %1244  ;;  %v4027_v57 = vpop.xlane.xlu0 %1495 }
 0x634   :  { %2849 = vrcp.f32 %v1245_v10 }
 0x639   :  { %1525 = vadd.xlane.f32.xlu0 %v1524_v0 }
 0x63a   :  { %v2850_v53 = vpop.eup %2849 }
 0x63b   :  { %v1248_v23 = vpop.xlane.xlu1 %1247  ;;  %v4011_v47 = vpop.xlane.xlu2 %1492  ;;  %v1275_v28 = vmul.f32 %v2850_v53, %v3913_v59  ;;  %v1511_v59 = vmul.f32 1.442695, %v1500_v34  ;;  %v1501_v53 = vsub.f32 %v3810_v22, %v3941_v26  ;;  %v1777_v26 = vsub.f32 %v3895_v7, %v3994_v55 }
 0x63c   :  { %2851 = vrcp.f32 %v1248_v23 }
 0x63d   :  { %2853 = vpow2.f32 %v1509_v58  ;;  %v1791_v20 = vmul.f32 1.442695, %v1777_v26 }
 0x63e   :  { %2855 = vpow2.f32 %v1785_v14 }
 0x63f   :  { %2857 = vpow2.f32 %v1511_v59 }
 0x640   :  { %2859 = vpow2.f32 %v1787_v56 }
 0x641   :  { %1799 = vadd.xlane.f32.xlu0 %v1798_v40 }
 0x642   :  { %v2852_v2 = vpop.eup %2851 }
 0x643   :  { %v1276_v19 = vmul.f32 %v2852_v2, %v3922_v54  ;;  %v1572_v41 = vpop.permute.xlu2 %1571  ;;  %v4025_v32 = vpop.eup %2853  ;;  %v1771_v54 = vsub.f32 %v3868_v38, %v1749_v42  ;;  %v1789_v42 = vmul.f32 1.442695, %v1776_v43 }
 0x644   :  { %v1589_v62 = vsel %vm1060_vm15, %v1572_v41, 0  ;;  %v1527_v25 = vsel %vm950_vm1, %v4025_v32, 0.0  ;;  %v4034_v16 = vpop.eup %2855 }
 0x645   :  { %v1283_v6 = vpack.c.bf16 %v1276_v19, %v1275_v28  ;;  %1595 = vmatpush.bf16.msra.mxu1 %v1589_v62  ;;  %v1779_v12 = vmul.f32 1.442695, %v1771_v54  ;;  %v1804_v38 = vsel %vm950_vm1, %v4034_v16, 0.0  ;;  %v4040_v27 = vpop.eup %2857  ;;  %v1513_v28 = vmul.f32 1.442695, %v1501_v53 }
 0x646   :  { %v4043_v58 = vpop.eup %2859  ;;  %v1530_v13 = vsel %vm950_vm1, %v4040_v27, 0.0 }
 0x647   :  { %2688 = vmatmul.msk.bf16.vlgmr.msra.gmra.mxu3 %vm950_vm1, %v1283_v6  ;;  %2861 = vpow2.f32 %v1779_v12  ;;  %v1807_v40 = vsel %vm950_vm1, %v4043_v58, 0.0 }
 0x649   :  { %1528 = vadd.xlane.f32.xlu0 %v1527_v25 }
 0x64b   :  { %v1251_v10 = vpop.xlane.xlu0 %1250 }
 0x64c   :  { %2863 = vrcp.f32 %v1251_v10 }
 0x64d   :  { %v4047_v24 = vpop.eup %2861  ;;  %2865 = vpow2.f32 %v1789_v42 }
 0x64e   :  { %v1073_v8 = vpop.f32.mrf.mxu1  ;;  %v1795_v2 = vsel %vm950_vm1, %v4047_v24, 0.0 }
 0x64f   :  { %1093 = vst.msk [vmem:[#allocation2] sm:$0xff] %vm880_vm0, %v1073_v8 }
 0x651   :  { %1805 = vadd.xlane.f32.xlu0 %v1804_v38 }
 0x652   :  { %v2864_v14 = vpop.eup %2863 }
 0x653   :  { %v1846_v9 = vpop.permute.xlu1 %1845  ;;  %v4056_v19 = vpop.eup %2865  ;;  %v1277_v34 = vmul.f32 %v2864_v14, %v3936_v49  ;;  %v1503_v49 = vsub.f32 %v3920_v29, %v4011_v47 }
 0x654   :  { %v1863_v0 = vsel %vm1060_vm15, %v1846_v9, 0  ;;  %v1810_v62 = vsel %vm950_vm1, %v4056_v19, 0.0 }
 0x655   :  { %1869 = vmatpush.bf16.msrb.mxu3 %v1863_v0  ;;  %v1254_v23 = vpop.xlane.xlu0 %1253 }
 0x656   :  { %v1075_v61 = vpop.f32.mrf.mxu1  ;;  %1531 = vadd.xlane.f32.xlu1 %v1530_v13  ;;  %2867 = vrcp.f32 %v1254_v23  ;;  %v1773_v13 = vsub.f32 %v3875_v3, %v3992_v39 }
 0x657   :  { %1094 = vst.msk [vmem:[#allocation2 + $0x8] sm:$0xff] %vm880_vm0, %v1075_v61  ;;  %2869 = vpow2.f32 %v1513_v28 }
 0x658   :  { %2871 = vpow2.f32 %v1791_v20 }
 0x659   :  { %1808 = vadd.xlane.f32.xlu0 %v1807_v40  ;;  %v1783_v40 = vmul.f32 1.442695, %v1773_v13 }
 0x65a   :  { %1796 = vadd.xlane.f32.xlu2 %v1795_v2 }
 0x65c   :  { %v2868_v41 = vpop.eup %2867 }
 0x65d   :  { %v1278_v22 = vmul.f32 %v2868_v41, %v3947_v17  ;;  %v4065_v59 = vpop.eup %2869  ;;  %v1517_v17 = vmul.f32 1.442695, %v1503_v49 }
 0x65e   :  { %v1533_v7 = vsel %vm950_vm1, %v4065_v59, 0.0  ;;  %v4072_v55 = vpop.eup %2871 }
 0x65f   :  { %v1284_v6 = vpack.c.bf16 %v1278_v22, %v1277_v34  ;;  %2873 = vpow2.f32 %v1517_v17  ;;  %v1813_v56 = vsel %vm950_vm1, %v4072_v55, 0.0  ;;  %v1502_v34 = vsub.f32 %v3821_v35, %v3943_v31 }
 0x660   :  { %v1504_v35 = vsub.f32 %v3908_v21, %v4027_v57 }
 0x661   :  { %1811 = vadd.xlane.f32.xlu0 %v1810_v62  ;;  %2689 = vmatmul.msk.bf16.gmra.mxu3 %vm950_vm1, %v1284_v6  ;;  %v1515_v39 = vmul.f32 1.442695, %v1502_v34 }
 0x665   :  { %v4079_v29 = vpop.eup %2873 }
 0x666   :  { %v1257_v12 = vpop.xlane.xlu0 %1256  ;;  %v1539_v43 = vsel %vm950_vm1, %v4079_v29, 0.0 }
 0x667   :  { %v1078_v54 = vpop.f32.mrf.mxu1  ;;  %2875 = vrcp.f32 %v1257_v12 }
 0x668   :  { %1095 = vst.msk [vmem:[#allocation2 + $0x10] sm:$0xff] %vm880_vm0, %v1078_v54 }
 0x669   :  { %1534 = vadd.xlane.f32.xlu0 %v1533_v7 }
 0x66d   :  { %v2876_v23 = vpop.eup %2875 }
 0x66e   :  { %v1279_v2 = vmul.f32 %v2876_v23, %v3957_v51  ;;  %v1778_v51 = vsub.f32 %v3903_v63, %v4013_v45  ;;  %v1519_v63 = vmul.f32 1.442695, %v1504_v35 }
 0x66f   :  { %v1080_v25 = vpop.f32.mrf.mxu1 }
 0x670   :  { %1096 = vst.msk [vmem:[#allocation2 + $0x18] sm:$0xff] %vm880_vm0, %v1080_v25  ;;  %v1793_v26 = vmul.f32 1.442695, %v1778_v51 }
 0x671   :  { %1814 = vadd.xlane.f32.xlu0 %v1813_v56 }
 0x672   :  { %1565 = vrot.lane.b32.xlu2 %v3581_v48, %s2968_s20 }
 0x677   :  { %v1083_v47 = vpop.f32.mrf.mxu1 }
 0x678   :  { %1097 = vst.msk [vmem:[#allocation2 + $0x20] sm:$0xff] %vm880_vm0, %v1083_v47 }
 0x679   :  { %1540 = vadd.xlane.f32.xlu0 %v1539_v43  ;;  %v1844_v10 = vpop.permute.xlu0 %1843 }
 0x67a   :  { %1870 = vmatpush.bf16.msrb.mxu3 %v1844_v10 }
 0x67c   :  { %v1263_v8 = vpop.xlane.xlu2 %1262 }
 0x67e   :  { %v1523_v38 = vpop.xlane.xlu1 %1522 }
 0x67f   :  { %v1085_v42 = vpop.f32.mrf.mxu1 }
 0x680   :  { %1098 = vst.msk [vmem:[#allocation2 + $0x28] sm:$0xff] %vm880_vm0, %v1085_v42 }
 0x684   :  { %v1842_v9 = vpop.permute.xlu2 %1841 }
 0x685   :  { %1871 = vmatpush.bf16.msrb.mxu3 %v1842_v9 }
 0x686   :  { %v1260_v48 = vpop.xlane.xlu1 %1259 }
 0x687   :  { %2877 = vrcp.f32 %v1260_v48  ;;  %v1088_v0 = vpop.f32.mrf.mxu1 }
 0x688   :  { %1099 = vst.msk [vmem:[#allocation2 + $0x30] sm:$0xff] %vm880_vm0, %v1088_v0  ;;  %2879 = vpow2.f32 %v1783_v40 }
 0x689   :  { %2881 = vpow2.f32 %v1515_v39 }
 0x68a   :  { %2883 = vpow2.f32 %v1793_v26 }
 0x68b   :  { %2885 = vrcp.f32 %v1263_v8 }
 0x68c   :  { %v1570_v61 = vpop.permute.xlu2 %1569 }
 0x68d   :  { %v2878_v53 = vpop.eup %2877  ;;  %1596 = vmatpush.bf16.msra.mxu1 %v1570_v61 }
 0x68e   :  { %v1280_v14 = vmul.f32 %v2878_v53, %v3981_v37  ;;  %v4093_v22 = vpop.eup %2879 }
 0x68f   :  { %v1090_v28 = vpop.f32.mrf.mxu1  ;;  %v1801_v37 = vsel %vm950_vm1, %v4093_v22, 0.0  ;;  %v4099_v6 = vpop.eup %2881 }
 0x690   :  { %1101 = vst.msk [vmem:[#allocation2 + $0x38] sm:$0xf] %vm1100_vm5, %v1090_v28  ;;  %v1285_v41 = vpack.c.bf16 %v1280_v14, %v1279_v2  ;;  %v1536_v31 = vsel %vm950_vm1, %v4099_v6, 0.0  ;;  %v4105_v45 = vpop.eup %2883 }
 0x691   :  { %v2886_v49 = vpop.eup %2885  ;;  %v1816_v54 = vsel %vm972_vm3, %v4105_v45, 0.0 }
 0x692   :  { %2690 = vmatmul.msk.bf16.gmra.mxu3 %vm950_vm1, %v1285_v41  ;;  %v1281_v17 = vmul.f32 %v2886_v49, %v3969_v46 }
 0x694   :  { %v1840_v3 = vpop.permute.xlu2 %1839 }
 0x695   :  { %1872 = vmatpush.bf16.msrb.mxu3 %v1840_v3 }
 0x69b   :  { %1802 = vadd.xlane.f32.xlu2 %v1801_v37 }
 0x69e   :  { %v1568_v62 = vpop.permute.xlu1 %1567 }
 0x69f   :  { %1597 = vmatpush.bf16.msra.mxu1 %v1568_v62 }
 0x6a3   :  { %1537 = vadd.xlane.f32.xlu2 %v1536_v31 }
 0x6a4   :  { %v1266_v20 = vpop.xlane.xlu0 %1265 }
 0x6a5   :  { %2887 = vrcp.f32 %v1266_v20 }
 0x6a6   :  { %2889 = vpow2.f32 %v1519_v63 }
 0x6ab   :  { %v2888_v7 = vpop.eup %2887  ;;  %1817 = vadd.xlane.f32.xlu2 %v1816_v54 }
 0x6ac   :  { %v1282_v21 = vmul.f32 %v2888_v7, %v3998_v15  ;;  %v4111_v25 = vpop.eup %2889  ;;  %v1526_v12 = vpop.xlane.xlu0 %1525 }
 0x6ad   :  { %v1542_v56 = vsel %vm972_vm3, %v4111_v25, 0.0  ;;  %2891 = vrcp.f32 %v1526_v12 }
 0x6ae   :  { %v1286_v57 = vpack.c.bf16 %v1282_v21, %v1281_v17  ;;  %2893 = vrcp.f32 %v1523_v38 }
 0x6b0   :  { %2691 = vmatmul.msk.bf16.gmra.mxu3 %vm950_vm1, %v1286_v57 }
 0x6b3   :  { %1543 = vadd.xlane.f32.xlu2 %v1542_v56  ;;  %v2892_v15 = vpop.eup %2891 }
 0x6b4   :  { %v1800_v47 = vpop.xlane.xlu0 %1799  ;;  %v2894_v10 = vpop.eup %2893  ;;  %v1554_v9 = vmul.f32 %v2892_v15, %v4005_v50 }
 0x6b5   :  { %2895 = vrcp.f32 %v1800_v47  ;;  %v1553_v0 = vmul.f32 %v2894_v10, %v3972_v5 }
 0x6b7   :  { %v1561_v61 = vpack.c.bf16 %v1554_v9, %v1553_v0 }
 0x6bb   :  { %v2896_v8 = vpop.eup %2895 }
 0x6bc   :  { %v1828_v13 = vmul.f32 %v2896_v8, %v4015_v1  ;;  %v1529_v2 = vpop.xlane.xlu0 %1528 }
 0x6c9   :  { %v1532_v53 = vpop.xlane.xlu1 %1531 }
 0x6ca   :  { %v1326_v43 = vpop.f32.mrf.mxu3 }
 0x6cb   :  { %1354 = vrot.lane.b32.xlu1 %v1326_v43, %s2969_s7 }
 0x6cd   :  { %v1797_v46 = vpop.xlane.xlu2 %1796 }
 0x6ce   :  { %2897 = vrcp.f32 %v1797_v46 }
 0x6cf   :  { %2899 = vrcp.f32 %v1532_v53 }
 0x6d0   :  { %2901 = vrcp.f32 %v1529_v2 }
 0x6d2   :  { %v1328_v42 = vpop.f32.mrf.mxu3 }
 0x6d3   :  { %1356 = vrot.lane.b32.xlu0 %v1328_v42, %s2969_s7 }
 0x6d4   :  { %v2898_v48 = vpop.eup %2897 }
 0x6d5   :  { %v1827_v38 = vmul.f32 %v2898_v48, %v4047_v24  ;;  %v1566_v23 = vpop.permute.xlu2 %1565  ;;  %v2900_v50 = vpop.eup %2899 }
 0x6d6   :  { %1598 = vmatpush.bf16.msra.mxu1 %v1566_v23  ;;  %v2902_v14 = vpop.eup %2901  ;;  %v1556_v5 = vmul.f32 %v2900_v50, %v4040_v27  ;;  %v1806_v24 = vpop.xlane.xlu0 %1805 }
 0x6d7   :  { %v1835_v40 = vpack.c.bf16 %v1828_v13, %v1827_v38  ;;  %v1555_v1 = vmul.f32 %v2902_v14, %v4025_v32  ;;  %2903 = vrcp.f32 %v1806_v24 }
 0x6d9   :  { %2696 = vmatmul.msk.bf16.vlgmr.msra.gmra.mxu1 %vm950_vm1, %v1561_v61  ;;  %2704 = vmatmul.msk.bf16.vlgmr.msrb.gmra.mxu3 %vm950_vm1, %v1835_v40  ;;  %v1562_v28 = vpack.c.bf16 %v1556_v5, %v1555_v1  ;;  %v1946_v1 = vld [vmem:[%s4517_s10 + $0x10] sm:$0xff] }
 0x6dd   :  { %v2904_v51 = vpop.eup %2903 }
 0x6de   :  { %v1809_v41 = vpop.xlane.xlu0 %1808  ;;  %v1830_v26 = vmul.f32 %v2904_v51, %v4034_v16 }
 0x6e4   :  { %v1331_v56 = vpop.f32.mrf.mxu3 }
 0x6e6   :  { %v1812_v34 = vpop.xlane.xlu0 %1811 }
 0x6e9   :  { %2697 = vmatmul.msk.bf16.gmra.mxu1 %vm950_vm1, %v1562_v28  ;;  %v1947_v28 = vld [vmem:[%s4517_s10 + $0x18] sm:$0xff] }
 0x6ea   :  { %v1953_v24 = vpack.c.bf16 %v1947_v28, %v1946_v1 }
 0x6ec   :  { %v1333_v15 = vpop.f32.mrf.mxu3  ;;  %1972 = vmatpush.bf16.msra.mxu0 %v1953_v24 }
 0x6ee   :  { %v1535_v3 = vpop.xlane.xlu0 %1534 }
 0x6f6   :  { %v1815_v32 = vpop.xlane.xlu0 %1814 }
 0x6fe   :  { %v1541_v16 = vpop.xlane.xlu0 %1540 }
 0x70e   :  { %v1803_v39 = vpop.xlane.xlu2 %1802 }
 0x70f   :  { %2905 = vrcp.f32 %v1803_v39 }
 0x710   :  { %2907 = vrcp.f32 %v1535_v3 }
 0x715   :  { %v2906_v37 = vpop.eup %2905  ;;  %v1336_v9 = vpop.f32.mrf.mxu3 }
 0x716   :  { %v1829_v62 = vmul.f32 %v2906_v37, %v4093_v22  ;;  %v1538_v27 = vpop.xlane.xlu2 %1537  ;;  %v2908_v31 = vpop.eup %2907  ;;  %v1944_v37 = vld [vmem:[%s4517_s10] sm:$0xff] }
 0x717   :  { %2909 = vrcp.f32 %v1538_v27  ;;  %v1557_v63 = vmul.f32 %v2908_v31, %v4065_v59 }
 0x718   :  { %v1836_v35 = vpack.c.bf16 %v1830_v26, %v1829_v62  ;;  %2911 = vrcp.f32 %v1812_v34  ;;  %v1945_v26 = vld [vmem:[%s4517_s10 + $0x8] sm:$0xff] }
 0x719   :  { %2913 = vrcp.f32 %v1809_v41  ;;  %v1952_v62 = vpack.c.bf16 %v1945_v26, %v1944_v37 }
 0x71a   :  { %2705 = vmatmul.msk.bf16.gmra.mxu3 %vm950_vm1, %v1836_v35  ;;  %2915 = vrcp.f32 %v1541_v16 }
 0x71b   :  { %1973 = vmatpush.bf16.msra.mxu0 %v1952_v62 }
 0x71d   :  { %v2910_v20 = vpop.eup %2909 }
 0x71e   :  { %v1558_v49 = vmul.f32 %v2910_v20, %v4099_v6  ;;  %v1818_v54 = vpop.xlane.xlu2 %1817  ;;  %v2912_v17 = vpop.eup %2911 }
 0x71f   :  { %v2914_v22 = vpop.eup %2913  ;;  %v1832_v21 = vmul.f32 %v2912_v17, %v4056_v19 }
 0x720   :  { %v1563_v7 = vpack.c.bf16 %v1558_v49, %v1557_v63  ;;  %v1831_v57 = vmul.f32 %v2914_v22, %v4043_v58  ;;  %v2916_v59 = vpop.eup %2915 }
 0x721   :  { %v1559_v43 = vmul.f32 %v2916_v59, %v4079_v29  ;;  %v1338_v29 = vpop.f32.mrf.mxu3 }
 0x722   :  { %2698 = vmatmul.msk.bf16.gmra.mxu1 %vm950_vm1, %v1563_v7  ;;  %v1837_v47 = vpack.c.bf16 %v1832_v21, %v1831_v57 }
 0x726   :  { %v1544_v12 = vpop.xlane.xlu2 %1543 }
 0x727   :  { %2917 = vrcp.f32 %v1544_v12 }
 0x728   :  { %2919 = vrcp.f32 %v1818_v54 }
 0x729   :  { %2921 = vrcp.f32 %v1815_v32 }
 0x72a   :  { %2706 = vmatmul.msk.bf16.gmra.mxu3 %vm950_vm1, %v1837_v47 }
 0x72d   :  { %v2918_v6 = vpop.eup %2917 }
 0x72e   :  { %v1560_v46 = vmul.f32 %v2918_v6, %v4111_v25  ;;  %v2920_v19 = vpop.eup %2919 }
 0x72f   :  { %v2922_v58 = vpop.eup %2921  ;;  %v1834_v8 = vmul.f32 %v2920_v19, %v4105_v45 }
 0x730   :  { %v1564_v10 = vpack.c.bf16 %v1560_v46, %v1559_v43  ;;  %v1833_v42 = vmul.f32 %v2922_v58, %v4072_v55 }
 0x732   :  { %2699 = vmatmul.msk.bf16.gmra.mxu1 %vm950_vm1, %v1564_v10  ;;  %v1838_v48 = vpack.c.bf16 %v1834_v8, %v1833_v42 }
 0x733   :  { %v1341_v13 = vpop.f32.mrf.mxu3 }
 0x73a   :  { %2707 = vmatmul.msk.bf16.gmra.mxu3 %vm950_vm1, %v1838_v48 }
 0x73b   :  { %v1343_v38 = vpop.f32.mrf.mxu3 }
 0x73d   :  { %v1355_v0 = vpop.permute.xlu1 %1354 }
 0x73e   :  { %1379 = vst.msk [vmem:[#allocation2] sm:$0xff] %vm1378_vm6, %v1355_v0 }
 0x745   :  { %v1357_v25 = vpop.permute.xlu0 %1356 }
 0x746   :  { %1380 = vst.msk [vmem:[#allocation2 + $0x8] sm:$0xff] %vm1378_vm6, %v1357_v25 }
 0x756   :  { %v1600_v23 = vpop.f32.mrf.mxu1 }
 0x757   :  { %1628 = vrot.lane.b32.xlu2 %v1600_v23, %s2970_s19 }
 0x75c   :  { %v1874_v45 = vpop.f32.mrf.mxu3 }
 0x75d   :  { %1902 = vrot.lane.b32.xlu0 %v1874_v45, %s2971_s1  ;;  %v2774_v45 = vld [vmem:[%s4518_s11] ss:$0 sm:$0xff] }
 0x75e   :  { %v1602_v55 = vpop.f32.mrf.mxu1 }
 0x75f   :  { %1630 = vrot.lane.b32.xlu1 %v1602_v55, %s2970_s19 }
 0x764   :  { %v1876_v61 = vpop.f32.mrf.mxu3 }
 0x765   :  { %1360 = vrot.lane.b32.xlu0 %v1333_v15, %s2969_s7  ;;  %1904 = vrot.lane.b32.xlu2 %v1876_v61, %s2971_s1 }
 0x766   :  { %v1605_v53 = vpop.f32.mrf.mxu1 }
 0x767   :  { %1358 = vrot.lane.b32.xlu1 %v1331_v56, %s2969_s7 }
 0x76d   :  { %1632 = vrot.lane.b32.xlu2 %v1605_v53, %s2970_s19 }
 0x76e   :  { %v1607_v40 = vpop.f32.mrf.mxu1 }
 0x76f   :  { %1634 = vrot.lane.b32.xlu1 %v1607_v40, %s2970_s19 }
 0x777   :  { %1362 = vrot.lane.b32.xlu1 %v1336_v9, %s2969_s7 }
 0x79d   :  { %v1879_v2 = vpop.f32.mrf.mxu3 }
 0x79e   :  { %1906 = vrot.lane.b32.xlu0 %v1879_v2, %s2971_s1 }
 0x79f   :  { %v1610_v50 = vpop.f32.mrf.mxu1 }
 0x7a5   :  { %v1881_v14 = vpop.f32.mrf.mxu3 }
 0x7a6   :  { %1364 = vrot.lane.b32.xlu0 %v1338_v29, %s2969_s7  ;;  %1908 = vrot.lane.b32.xlu2 %v1881_v14, %s2971_s1 }
 0x7a7   :  { %v1612_v5 = vpop.f32.mrf.mxu1 }
 0x7a8   :  { %1638 = vrot.lane.b32.xlu1 %v1612_v5, %s2970_s19 }
 0x7ad   :  { %v1884_v41 = vpop.f32.mrf.mxu3 }
 0x7ae   :  { %1910 = vrot.lane.b32.xlu0 %v1884_v41, %s2971_s1  ;;  %1636 = vrot.lane.b32.xlu2 %v1610_v50, %s2970_s19 }
 0x7af   :  { %v1615_v34 = vpop.f32.mrf.mxu1 }
 0x7b0   :  { %1366 = vrot.lane.b32.xlu1 %v1341_v13, %s2969_s7 }
 0x7b1   :  { %v1629_v3 = vpop.permute.xlu2 %1628 }
 0x7b2   :  { %1653 = vst.msk [vmem:[#allocation2] sm:$0xff] %vm1652_vm7, %v1629_v3 }
 0x7b5   :  { %v1886_v39 = vpop.f32.mrf.mxu3 }
 0x7b6   :  { %1368 = vrot.lane.b32.xlu0 %v1343_v38, %s2969_s7  ;;  %1912 = vrot.lane.b32.xlu2 %v1886_v39, %s2971_s1 }
 0x7b7   :  { %v1617_v51 = vpop.f32.mrf.mxu1 }
 0x7b8   :  { %1642 = vrot.lane.b32.xlu1 %v1617_v51, %s2970_s19 }
 0x7bd   :  { %v1889_v27 = vpop.f32.mrf.mxu3 }
 0x7be   :  { %1914 = vrot.lane.b32.xlu0 %v1889_v27, %s2971_s1  ;;  %1640 = vrot.lane.b32.xlu2 %v1615_v34, %s2970_s19 }
 0x7bf   :  { %v1905_v31 = vpop.permute.xlu2 %1904 }
 0x7c5   :  { %v1891_v32 = vpop.f32.mrf.mxu3 }
 0x7c6   :  { %1916 = vrot.lane.b32.xlu2 %v1891_v32, %s2971_s1 }
 0x7c7   :  { %v1633_v54 = vpop.permute.xlu2 %1632 }
 0x7cf   :  { %v1903_v35 = vpop.permute.xlu0 %1902 }
 0x7d0   :  { %1927 = vst.msk [vmem:[#allocation2] sm:$0xff] %vm1926_vm8, %v1903_v35 }
 0x7d1   :  { %v1631_v20 = vpop.permute.xlu1 %1630 }
 0x7d2   :  { %1654 = vst.msk [vmem:[#allocation2 + $0x8] sm:$0xff] %vm1652_vm7, %v1631_v20 }
 0x7d3   :  { %1928 = vst.msk [vmem:[#allocation2 + $0x8] sm:$0xff] %vm1926_vm8, %v1905_v31 }
 0x7d7   :  { %v1361_v63 = vpop.permute.xlu0 %1360  ;;  %v1936_v7 = vld [vmem:[#allocation2] sm:$0xff] }
 0x7d8   :  { %1382 = vst.msk [vmem:[#allocation2 + $0x18] sm:$0xff] %vm1378_vm6, %v1361_v63 }
 0x7d9   :  { %v1359_v49 = vpop.permute.xlu1 %1358 }
 0x7da   :  { %1381 = vst.msk [vmem:[#allocation2 + $0x10] sm:$0xff] %vm1378_vm6, %v1359_v49  ;;  %v1937_v17 = vld [vmem:[#allocation2 + $0x8] sm:$0xff] }
 0x7db   :  { %1655 = vst.msk [vmem:[#allocation2 + $0x10] sm:$0xff] %vm1652_vm7, %v1633_v54  ;;  %v1948_v16 = vpack.c.bf16 %v1937_v17, %v1936_v7 }
 0x7dd   :  { %2708 = vmatmul.msk.bf16.vlgmr.msra.gmra.mxu0 %vm142_vm2, %v1948_v16 }
 0x7e1   :  { %v1635_v22 = vpop.permute.xlu1 %1634 }
 0x7e2   :  { %1656 = vst.msk [vmem:[#allocation2 + $0x18] sm:$0xff] %vm1652_vm7, %v1635_v22 }
 0x7e9   :  { %v1363_v21 = vpop.permute.xlu1 %1362 }
 0x7ea   :  { %1383 = vst.msk [vmem:[#allocation2 + $0x20] sm:$0xff] %vm1378_vm6, %v1363_v21 }
 0x800   :  { %v1909_v57 = vpop.permute.xlu2 %1908 }
 0x801   :  { %1930 = vst.msk [vmem:[#allocation2 + $0x18] sm:$0xff] %vm1926_vm8, %v1909_v57 }
 0x808   :  { %v1637_v56 = vpop.permute.xlu2 %1636  ;;  %v1939_v43 = vld [vmem:[#allocation2 + $0x18] sm:$0xff] }
 0x809   :  { %1657 = vst.msk [vmem:[#allocation2 + $0x20] sm:$0xff] %vm1652_vm7, %v1637_v56 }
 0x810   :  { %v1907_v12 = vpop.permute.xlu0 %1906  ;;  %v1913_v47 = vpop.permute.xlu2 %1912 }
 0x811   :  { %1929 = vst.msk [vmem:[#allocation2 + $0x10] sm:$0xff] %vm1926_vm8, %v1907_v12 }
 0x818   :  { %v1365_v59 = vpop.permute.xlu0 %1364  ;;  %v1938_v6 = vld [vmem:[#allocation2 + $0x10] sm:$0xff]  ;;  %v1641_v19 = vpop.permute.xlu2 %1640 }
 0x819   :  { %1384 = vst.msk [vmem:[#allocation2 + $0x28] sm:$0xff] %vm1378_vm6, %v1365_v59  ;;  %v1949_v46 = vpack.c.bf16 %v1939_v43, %v1938_v6 }
 0x81a   :  { %v1639_v15 = vpop.permute.xlu1 %1638 }
 0x81b   :  { %1658 = vst.msk [vmem:[#allocation2 + $0x28] sm:$0xff] %vm1652_vm7, %v1639_v15  ;;  %2709 = vmatmul.msk.bf16.gmra.mxu0 %vm142_vm2, %v1949_v46 }
 0x81c   :  { %1932 = vst.msk [vmem:[#allocation2 + $0x28] sm:$0xff] %vm1926_vm8, %v1913_v47 }
 0x820   :  { %v1911_v10 = vpop.permute.xlu0 %1910  ;;  %v1917_v29 = vpop.permute.xlu2 %1916 }
 0x821   :  { %1931 = vst.msk [vmem:[#allocation2 + $0x20] sm:$0xff] %vm1926_vm8, %v1911_v10 }
 0x822   :  { %v1367_v58 = vpop.permute.xlu1 %1366 }
 0x823   :  { %1385 = vst.msk [vmem:[#allocation2 + $0x30] sm:$0xff] %vm1378_vm6, %v1367_v58  ;;  %v1941_v9 = vld [vmem:[#allocation2 + $0x28] sm:$0xff] }
 0x824   :  { %1659 = vst.msk [vmem:[#allocation2 + $0x30] sm:$0xff] %vm1652_vm7, %v1641_v19 }
 0x828   :  { %v1369_v8 = vpop.permute.xlu0 %1368  ;;  %v1940_v42 = vld [vmem:[#allocation2 + $0x20] sm:$0xff] }
 0x829   :  { %1387 = vst.msk [vmem:[#allocation2 + $0x38] sm:$0xf] %vm1386_vm9, %v1369_v8  ;;  %v1950_v48 = vpack.c.bf16 %v1941_v9, %v1940_v42 }
 0x82a   :  { %v1643_v0 = vpop.permute.xlu1 %1642 }
 0x82b   :  { %1661 = vst.msk [vmem:[#allocation2 + $0x38] sm:$0xf] %vm1660_vm10, %v1643_v0  ;;  %2710 = vmatmul.msk.bf16.gmra.mxu0 %vm142_vm2, %v1950_v48 }
 0x82c   :  { %1935 = vst.msk [vmem:[#allocation2 + $0x38] sm:$0xf] %vm1934_vm11, %v1917_v29 }
 0x830   :  { %v1915_v25 = vpop.permute.xlu0 %1914 }
 0x831   :  { %1933 = vst.msk [vmem:[#allocation2 + $0x30] sm:$0xff] %vm1926_vm8, %v1915_v25 }
 0x833   :  { %v1943_v38 = vld [vmem:[#allocation2 + $0x38] sm:$0xf] }
 0x838   :  { %v1942_v13 = vld [vmem:[#allocation2 + $0x30] sm:$0xff] }
 0x839   :  { %v1951_v23 = vpack.c.bf16 %v1943_v38, %v1942_v13 }
 0x83b   :  { %2711 = vmatmul.msk.bf16.gmra.mxu0 %vm142_vm2, %v1951_v23 }
 0x85a   :  { %v1975_v55 = vpop.f32.mrf.mxu0 }
 0x85b   :  { %v1995_v61 = vadd.f32 %v1975_v55, %v3297_v30 }
 0x85d   :  { %v4205_v53 = vadd.f32 %v2774_v45, %v1995_v61 }
 0x85f   :  { %v2033_v40 = vsel %vm142_vm2, %v4205_v53, 0.0 }
 0x860   :  { %2034 = vadd.xlane.f32.xlu1 %v2033_v40 }
 0x862   :  { %v1977_v2 = vpop.f32.mrf.mxu0 }
 0x863   :  { %v1996_v50 = vadd.f32 %v1977_v2, %v3304_v36 }
 0x865   :  { %v4210_v14 = vadd.f32 %v2774_v45, %v1996_v50  ;;  %v2227_v50 = vld [vmem:[%s4519_s12 + $0x10] sm:$0xff] }
 0x867   :  { %v2036_v5 = vsel %vm142_vm2, %v4210_v14, 0.0 }
 0x868   :  { %2037 = vadd.xlane.f32.xlu0 %v2036_v5  ;;  %v2228_v5 = vld [vmem:[%s4519_s12 + $0x18] sm:$0xff] }
 0x898   :  { %v1980_v1 = vpop.f32.mrf.mxu0 }
 0x899   :  { %v1997_v28 = vadd.f32 %v1980_v1, %v3311_v44  ;;  %v2234_v1 = vpack.c.bf16 %v2228_v5, %v2227_v50 }
 0x89b   :  { %v4215_v24 = vadd.f32 %v2774_v45, %v1997_v28  ;;  %2257 = vmatpush.bf16.msrb.mxu1 %v2234_v1 }
 0x89d   :  { %v2039_v30 = vsel %vm142_vm2, %v4215_v24, 0.0 }
 0x89e   :  { %2040 = vadd.xlane.f32.xlu2 %v2039_v30 }
 0x8a0   :  { %v1982_v41 = vpop.f32.mrf.mxu0 }
 0x8a1   :  { %v1998_v34 = vadd.f32 %v1982_v41, %v3318_v52  ;;  %v2225_v41 = vld [vmem:[%s4519_s12] sm:$0xff] }
 0x8a3   :  { %v4220_v3 = vadd.f32 %v2774_v45, %v1998_v34  ;;  %v2226_v34 = vld [vmem:[%s4519_s12 + $0x8] sm:$0xff]  ;;  %s2973_s12 = smov 128  }
 0x8a5   :  { %v2042_v36 = vsel %vm142_vm2, %v4220_v3, 0.0 }
 0x8a6   :  { %2043 = vadd.xlane.f32.xlu1 %v2042_v36 }
 0x8a8   :  { %v1985_v39 = vpop.f32.mrf.mxu0 }
 0x8a9   :  { %v1999_v51 = vadd.f32 %v1985_v39, %v3325_v60  ;;  %v2233_v39 = vpack.c.bf16 %v2226_v34, %v2225_v41 }
 0x8ab   :  { %v4225_v37 = vadd.f32 %v2774_v45, %v1999_v51  ;;  %2258 = vmatpush.bf16.msrb.mxu1 %v2233_v39 }
 0x8ad   :  { %v2045_v44 = vsel %vm142_vm2, %v4225_v37, 0.0 }
 0x8ae   :  { %2046 = vadd.xlane.f32.xlu0 %v2045_v44 }
 0x8b0   :  { %v1987_v26 = vpop.f32.mrf.mxu0 }
 0x8b1   :  { %v2000_v62 = vadd.f32 %v1987_v26, %v3332_v4 }
 0x8b3   :  { %v4230_v27 = vadd.f32 %v2774_v45, %v2000_v62 }
 0x8b5   :  { %v2048_v52 = vsel %vm142_vm2, %v4230_v27, 0.0 }
 0x8b6   :  { %2049 = vadd.xlane.f32.xlu2 %v2048_v52 }
 0x8b8   :  { %v1990_v32 = vpop.f32.mrf.mxu0 }
 0x8b9   :  { %v2001_v35 = vadd.f32 %v1990_v32, %v3339_v11 }
 0x8bb   :  { %v4235_v31 = vadd.f32 %v2774_v45, %v2001_v35 }
 0x8bd   :  { %v2051_v60 = vsel %vm142_vm2, %v4235_v31, 0.0 }
 0x8be   :  { %2052 = vadd.xlane.f32.xlu2 %v2051_v60 }
 0x8c0   :  { %v1992_v49 = vpop.f32.mrf.mxu0 }
 0x8c1   :  { %v2002_v7 = vadd.f32 %v1992_v49, %v3356_v33 }
 0x8c3   :  { %v4248_v22 = vadd.f32 %v2774_v45, %v2002_v7 }
 0x8c5   :  { %v2054_v56 = vsel %vm548_vm4, %v4248_v22, 0.0 }
 0x8d3   :  { %v2035_v20 = vpop.xlane.xlu1 %2034 }
 0x8d4   :  { %v2057_v63 = vmul.f32 %v2035_v20, %v3343_v18 }
 0x8d6   :  { %v4241_v4 = vsub.f32 %v4205_v53, %v2057_v63 }
 0x8d8   :  { %v2073_v54 = vmul.f32 %v4241_v4, %v4241_v4 }
 0x8da   :  { %v2081_v11 = vsel %vm142_vm2, %v2073_v54, 0.0 }
 0x8db   :  { %2082 = vadd.xlane.f32.xlu1 %v2081_v11  ;;  %v2038_v17 = vpop.xlane.xlu0 %2037 }
 0x8dc   :  { %v2058_v16 = vmul.f32 %v2038_v17, %v3343_v18 }
 0x8de   :  { %v4251_v21 = vsub.f32 %v4210_v14, %v2058_v16 }
 0x8e0   :  { %v2074_v57 = vmul.f32 %v4251_v21, %v4251_v21 }
 0x8e2   :  { %v2084_v12 = vsel %vm142_vm2, %v2074_v57, 0.0 }
 0x8e3   :  { %2055 = vadd.xlane.f32.xlu1 %v2054_v56  ;;  %2085 = vadd.xlane.f32.xlu0 %v2084_v12 }
 0x911   :  { %v2041_v33 = vpop.xlane.xlu2 %2040 }
 0x912   :  { %v2059_v47 = vmul.f32 %v2041_v33, %v3343_v18 }
 0x914   :  { %v4260_v59 = vsub.f32 %v4215_v24, %v2059_v47 }
 0x916   :  { %v2075_v6 = vmul.f32 %v4260_v59, %v4260_v59 }
 0x918   :  { %v2087_v43 = vsel %vm142_vm2, %v2075_v6, 0.0  ;;  %v2712_v6 = vld [vmem:[%s4513_s6 + $0x80] sm:$0xff] }
 0x919   :  { %v2044_v46 = vpop.xlane.xlu1 %2043  ;;  %2088 = vadd.xlane.f32.xlu0 %v2087_v43 }
 0x91a   :  { %v2060_v15 = vmul.f32 %v2044_v46, %v3343_v18  ;;  %v2713_v46 = vld [vmem:[%s4513_s6 + $0x88] sm:$0xff] }
 0x91c   :  { %v4267_v10 = vsub.f32 %v4220_v3, %v2060_v15 }
 0x91e   :  { %v2076_v19 = vmul.f32 %v4267_v10, %v4267_v10 }
 0x920   :  { %v2090_v58 = vsel %vm142_vm2, %v2076_v19, 0.0 }
 0x921   :  { %2091 = vadd.xlane.f32.xlu2 %v2090_v58  ;;  %v2047_v8 = vpop.xlane.xlu0 %2046 }
 0x922   :  { %v2061_v42 = vmul.f32 %v2047_v8, %v3343_v18  ;;  %v2720_v8 = vld [vmem:[%s4513_s6 + $0xc0] sm:$0xff] }
 0x924   :  { %v4274_v9 = vsub.f32 %v4225_v37, %v2061_v42 }
 0x926   :  { %v2077_v48 = vmul.f32 %v4274_v9, %v4274_v9 }
 0x928   :  { %v2093_v0 = vsel %vm142_vm2, %v2077_v48, 0.0 }
 0x929   :  { %v2050_v29 = vpop.xlane.xlu2 %2049  ;;  %2094 = vadd.xlane.f32.xlu1 %v2093_v0 }
 0x92a   :  { %v2062_v25 = vmul.f32 %v2050_v29, %v3343_v18 }
 0x92c   :  { %v4281_v13 = vsub.f32 %v4230_v27, %v2062_v25 }
 0x92e   :  { %v2078_v38 = vmul.f32 %v4281_v13, %v4281_v13 }
 0x930   :  { %v2096_v23 = vsel %vm142_vm2, %v2078_v38, 0.0 }
 0x931   :  { %v2053_v45 = vpop.xlane.xlu2 %2052  ;;  %2097 = vadd.xlane.f32.xlu0 %v2096_v23 }
 0x932   :  { %v2063_v55 = vmul.f32 %v2053_v45, %v3343_v18 }
 0x934   :  { %v4288_v61 = vsub.f32 %v4235_v31, %v2063_v55 }
 0x936   :  { %v2079_v40 = vmul.f32 %v4288_v61, %v4288_v61 }
 0x938   :  { %v2099_v2 = vsel %vm142_vm2, %v2079_v40, 0.0 }
 0x939   :  { %2100 = vadd.xlane.f32.xlu2 %v2099_v2 }
 0x94e   :  { %v2083_v28 = vpop.xlane.xlu1 %2082 }
 0x94f   :  { %v2105_v30 = vmul.f32 %v2083_v28, %v3343_v18 }
 0x951   :  { %v2113_v36 = vadd.f32 1e-05, %v2105_v30 }
 0x953   :  { %2923 = vrsqrt.f32 %v2113_v36  ;;  %vm2127_vm13 = vweird.f32 %v2113_v36 }
 0x956   :  { %v2056_v51 = vpop.xlane.xlu1 %2055  ;;  %v2086_v44 = vpop.xlane.xlu0 %2085 }
 0x957   :  { %v2064_v26 = vmul.f32 %v2056_v51, %v3343_v18  ;;  %v2106_v62 = vmul.f32 %v2086_v44, %v3343_v18 }
 0x959   :  { %v2924_v52 = vpop.eup %2923  ;;  %v4309_v32 = vsub.f32 %v4248_v22, %v2064_v26  ;;  %v2114_v35 = vadd.f32 1e-05, %v2106_v62 }
 0x95a   :  { %v2122_v60 = vmul.f32 %v2924_v52, %v2113_v36  ;;  %vm2128_vm12 = vweird.f32 %v2924_v52 }
 0x95b   :  { %2925 = vrsqrt.f32 %v2114_v35  ;;  %v2080_v20 = vmul.f32 %v4309_v32, %v4309_v32  ;;  %vm2129_vm14 = vmor %vm2127_vm13, %vm2128_vm12 }
 0x95c   :  { %v2123_v63 = vmul.f32 %v2924_v52, %v2122_v60 }
 0x95d   :  { %v2102_v49 = vsel %vm548_vm4, %v2080_v20, 0.0  ;;  %vm2137_vm4 = vweird.f32 %v2114_v35 }
 0x95e   :  { %v2124_v54 = vmul.f32 0.5, %v2123_v63  ;;  %2103 = vadd.xlane.f32.xlu1 %v2102_v49 }
 0x960   :  { %v2125_v7 = vsub.f32 1.5, %v2124_v54 }
 0x961   :  { %v2926_v11 = vpop.eup %2925 }
 0x962   :  { %v2126_v17 = vmul.f32 %v2924_v52, %v2125_v7  ;;  %v2132_v16 = vmul.f32 %v2926_v11, %v2114_v35  ;;  %vm2138_vm0 = vweird.f32 %v2926_v11  ;;  %v2714_v7 = vld [vmem:[%s4513_s6 + $0x90] sm:$0xff] }
 0x963   :  { %vm2139_vm3 = vmor %vm2137_vm4, %vm2138_vm0 }
 0x964   :  { %v2133_v57 = vmul.f32 %v2926_v11, %v2132_v16  ;;  %v2130_v56 = vsel %vm2129_vm14, %v2924_v52, %v2126_v17  ;;  %v2715_v16 = vld [vmem:[%s4513_s6 + $0x98] sm:$0xff] }
 0x965   :  { %v2201_v47 = vmul.f32 %v2130_v56, %v4241_v4  ;;  %v2721_v4 = vld [vmem:[%s4513_s6 + $0xc8] sm:$0xff] }
 0x966   :  { %v2134_v12 = vmul.f32 0.5, %v2133_v57 }
 0x967   :  { %v2209_v19 = vmul.f32 %v2712_v6, %v2201_v47 }
 0x968   :  { %v2135_v33 = vsub.f32 1.5, %v2134_v12  ;;  %v2722_v12 = vld [vmem:[%s4513_s6 + $0xd0] sm:$0xff] }
 0x969   :  { %v2217_v48 = vadd.f32 %v2720_v8, %v2209_v19 }
 0x96a   :  { %v2136_v43 = vmul.f32 %v2926_v11, %v2135_v33  ;;  %v2723_v33 = vld [vmem:[%s4513_s6 + $0xd8] sm:$0xff] }
 0x96c   :  { %v2140_v15 = vsel %vm2139_vm3, %v2926_v11, %v2136_v43 }
 0x96d   :  { %v2202_v58 = vmul.f32 %v2140_v15, %v4251_v21 }
 0x96f   :  { %v2210_v42 = vmul.f32 %v2713_v46, %v2202_v58 }
 0x971   :  { %v2218_v0 = vadd.f32 %v2721_v4, %v2210_v42 }
 0x973   :  { %v2229_v29 = vpack.c.bf16 %v2218_v0, %v2217_v48 }
 0x975   :  { %2728 = vmatmul.msk.bf16.vlgmr.msrb.gmra.mxu1 %vm142_vm2, %v2229_v29 }
 0x98c   :  { %v2089_v25 = vpop.xlane.xlu0 %2088 }
 0x98d   :  { %v2107_v38 = vmul.f32 %v2089_v25, %v3343_v18  ;;  %v2716_v25 = vld [vmem:[%s4513_s6 + $0xa0] sm:$0xff] }
 0x98f   :  { %v2115_v23 = vadd.f32 1e-05, %v2107_v38 }
 0x991   :  { %2927 = vrsqrt.f32 %v2115_v23  ;;  %vm2147_vm6 = vweird.f32 %v2115_v23 }
 0x994   :  { %v2092_v21 = vpop.xlane.xlu2 %2091 }
 0x995   :  { %v2108_v45 = vmul.f32 %v2092_v21, %v3343_v18  ;;  %v2717_v21 = vld [vmem:[%s4513_s6 + $0xa8] sm:$0xff] }
 0x997   :  { %v2928_v55 = vpop.eup %2927  ;;  %v2116_v40 = vadd.f32 1e-05, %v2108_v45 }
 0x998   :  { %v2142_v2 = vmul.f32 %v2928_v55, %v2115_v23  ;;  %vm2148_vm5 = vweird.f32 %v2928_v55 }
 0x999   :  { %2929 = vrsqrt.f32 %v2116_v40  ;;  %vm2149_vm7 = vmor %vm2147_vm6, %vm2148_vm5  ;;  %vm2157_vm9 = vweird.f32 %v2116_v40 }
 0x99a   :  { %v2143_v50 = vmul.f32 %v2928_v55, %v2142_v2  ;;  %v2725_v2 = vld [vmem:[%s4513_s6 + $0xe8] sm:$0xff] }
 0x99c   :  { %v2144_v5 = vmul.f32 0.5, %v2143_v50  ;;  %v2095_v1 = vpop.xlane.xlu1 %2094 }
 0x99d   :  { %v2109_v28 = vmul.f32 %v2095_v1, %v3343_v18 }
 0x99e   :  { %v2145_v30 = vsub.f32 1.5, %v2144_v5 }
 0x99f   :  { %v2930_v41 = vpop.eup %2929  ;;  %v2117_v34 = vadd.f32 1e-05, %v2109_v28 }
 0x9a0   :  { %v2146_v36 = vmul.f32 %v2928_v55, %v2145_v30  ;;  %v2152_v39 = vmul.f32 %v2930_v41, %v2116_v40  ;;  %vm2158_vm8 = vweird.f32 %v2930_v41 }
 0x9a1   :  { %2931 = vrsqrt.f32 %v2117_v34  ;;  %vm2159_vm10 = vmor %vm2157_vm9, %vm2158_vm8  ;;  %vm2167_vm12 = vweird.f32 %v2117_v34 }
 0x9a2   :  { %v2153_v51 = vmul.f32 %v2930_v41, %v2152_v39  ;;  %v2150_v44 = vsel %vm2149_vm7, %v2928_v55, %v2146_v36  ;;  %v2295_v36 = vld [vmem:[%s4521_s14 + $0x38] sm:$0xff] }
 0x9a3   :  { %v2203_v20 = vmul.f32 %v2150_v44, %v4260_v59 }
 0x9a4   :  { %v2154_v26 = vmul.f32 0.5, %v2153_v51  ;;  %v2098_v62 = vpop.xlane.xlu0 %2097 }
 0x9a5   :  { %v2110_v52 = vmul.f32 %v2098_v62, %v3343_v18  ;;  %v2211_v56 = vmul.f32 %v2714_v7, %v2203_v20 }
 0x9a6   :  { %v2155_v35 = vsub.f32 1.5, %v2154_v26 }
 0x9a7   :  { %v2932_v60 = vpop.eup %2931  ;;  %v2118_v63 = vadd.f32 1e-05, %v2110_v52  ;;  %v2219_v46 = vadd.f32 %v2722_v12, %v2211_v56  ;;  %v2292_v52 = vld [vmem:[%s4521_s14 + $0x20] sm:$0xff] }
 0x9a8   :  { %v2156_v49 = vmul.f32 %v2930_v41, %v2155_v35  ;;  %v2162_v54 = vmul.f32 %v2932_v60, %v2117_v34  ;;  %vm2168_vm11 = vweird.f32 %v2932_v60  ;;  %v2294_v34 = vld [vmem:[%s4521_s14 + $0x30] sm:$0xff]  ;;  %v2293_v35 = vld [vmem:[%s4521_s14 + $0x28] sm:$0xff] }
 0x9a9   :  { %2933 = vrsqrt.f32 %v2118_v63  ;;  %vm2169_vm13 = vmor %vm2167_vm12, %vm2168_vm11  ;;  %vm2177_vm0 = vweird.f32 %v2118_v63  ;;  %v2303_v44 = vpack.c.bf16 %v2295_v36, %v2294_v34  ;;  %v2302_v20 = vpack.c.bf16 %v2293_v35, %v2292_v52 }
 0x9aa   :  { %v2160_v11 = vsel %vm2159_vm10, %v2930_v41, %v2156_v49  ;;  %v2163_v17 = vmul.f32 %v2932_v60, %v2162_v54  ;;  %vm2304_vm10 = vcmask 523264  }
 0x9ab   :  { %v2204_v57 = vmul.f32 %v2160_v11, %v4267_v10  ;;  %2321 = vmatpush.bf16.msrb.mxu2 %v2303_v44  ;;  %v2288_v11 = vld [vmem:[%s4521_s14] sm:$0xff] }
 0x9ac   :  { %v2164_v59 = vmul.f32 0.5, %v2163_v17  ;;  %v2101_v38 = vpop.xlane.xlu2 %2100  ;;  %v2289_v17 = vld [vmem:[%s4521_s14 + $0x8] sm:$0xff] }
 0x9ad   :  { %v2212_v47 = vmul.f32 %v2715_v16, %v2204_v57  ;;  %v2111_v40 = vmul.f32 %v2101_v38, %v3343_v18  ;;  %v2300_v56 = vpack.c.bf16 %v2289_v17, %v2288_v11 }
 0x9ae   :  { %v2165_v6 = vsub.f32 1.5, %v2164_v59 }
 0x9af   :  { %v2934_v43 = vpop.eup %2933  ;;  %v2220_v15 = vadd.f32 %v2723_v33, %v2212_v47  ;;  %v2119_v28 = vadd.f32 1e-05, %v2111_v40  ;;  %2322 = vmatpush.bf16.msrb.mxu2 %v2302_v20 }
 0x9b0   :  { %v2166_v19 = vmul.f32 %v2932_v60, %v2165_v6  ;;  %v2172_v58 = vmul.f32 %v2934_v43, %v2118_v63  ;;  %vm2178_vm14 = vweird.f32 %v2934_v43  ;;  %v2290_v63 = vld [vmem:[%s4521_s14 + $0x10] sm:$0xff] }
 0x9b1   :  { %v2230_v8 = vpack.c.bf16 %v2220_v15, %v2219_v46  ;;  %vm2179_vm4 = vmor %vm2177_vm0, %vm2178_vm14  ;;  %2935 = vrsqrt.f32 %v2119_v28  ;;  %vm2187_vm5 = vweird.f32 %v2119_v28  ;;  %v2718_v46 = vld [vmem:[%s4513_s6 + $0xb0] sm:$0xff] }
 0x9b2   :  { %v2173_v10 = vmul.f32 %v2934_v43, %v2172_v58  ;;  %v2170_v4 = vsel %vm2169_vm13, %v2932_v60, %v2166_v19  ;;  %v2719_v19 = vld [vmem:[%s4513_s6 + $0xb8] sm:$0xf] }
 0x9b3   :  { %2729 = vmatmul.msk.bf16.gmra.mxu1 %vm142_vm2, %v2230_v8  ;;  %v2205_v0 = vmul.f32 %v2170_v4, %v4274_v9  ;;  %v2724_v9 = vld [vmem:[%s4513_s6 + $0xe0] sm:$0xff] }
 0x9b4   :  { %v2174_v42 = vmul.f32 0.5, %v2173_v10  ;;  %v2726_v10 = vld [vmem:[%s4513_s6 + $0xf0] sm:$0xff] }
 0x9b5   :  { %v2213_v55 = vmul.f32 %v2716_v25, %v2205_v0 }
 0x9b6   :  { %v2175_v48 = vsub.f32 1.5, %v2174_v42 }
 0x9b7   :  { %v2221_v5 = vadd.f32 %v2724_v9, %v2213_v55 }
 0x9b8   :  { %v2176_v29 = vmul.f32 %v2934_v43, %v2175_v48 }
 0x9ba   :  { %v2180_v23 = vsel %vm2179_vm4, %v2934_v43, %v2176_v29 }
 0x9bb   :  { %v2206_v45 = vmul.f32 %v2180_v23, %v4281_v13  ;;  %v2936_v13 = vpop.eup %2935 }
 0x9bc   :  { %v2182_v41 = vmul.f32 %v2936_v13, %v2119_v28  ;;  %vm2188_vm3 = vweird.f32 %v2936_v13 }
 0x9bd   :  { %v2214_v50 = vmul.f32 %v2717_v21, %v2206_v45  ;;  %vm2189_vm6 = vmor %vm2187_vm5, %vm2188_vm3 }
 0x9be   :  { %v2183_v39 = vmul.f32 %v2936_v13, %v2182_v41 }
 0x9bf   :  { %v2222_v1 = vadd.f32 %v2725_v2, %v2214_v50 }
 0x9c0   :  { %v2184_v60 = vmul.f32 0.5, %v2183_v39 }
 0x9c1   :  { %v2231_v30 = vpack.c.bf16 %v2222_v1, %v2221_v5 }
 0x9c2   :  { %v2185_v49 = vsub.f32 1.5, %v2184_v60 }
 0x9c3   :  { %2730 = vmatmul.msk.bf16.gmra.mxu1 %vm142_vm2, %v2231_v30 }
 0x9c4   :  { %v2186_v16 = vmul.f32 %v2936_v13, %v2185_v49 }
 0x9c6   :  { %v2190_v12 = vsel %vm2189_vm6, %v2936_v13, %v2186_v16 }
 0x9c7   :  { %v2207_v6 = vmul.f32 %v2190_v12, %v4288_v61  ;;  %v2727_v61 = vld [vmem:[%s4513_s6 + $0xf8] sm:$0xf] }
 0x9c9   :  { %v2215_v8 = vmul.f32 %v2718_v46, %v2207_v6 }
 0x9cb   :  { %v2223_v42 = vadd.f32 %v2726_v10, %v2215_v8 }
 0x9d1   :  { %v2104_v51 = vpop.xlane.xlu1 %2103 }
 0x9d2   :  { %v2112_v26 = vmul.f32 %v2104_v51, %v3343_v18  ;;  %v2291_v18 = vld [vmem:[%s4521_s14 + $0x18] sm:$0xff] }
 0x9d3   :  { %v2301_v54 = vpack.c.bf16 %v2291_v18, %v2290_v63 }
 0x9d4   :  { %v2120_v62 = vadd.f32 1e-05, %v2112_v26 }
 0x9d5   :  { %2323 = vmatpush.bf16.msrb.mxu2 %v2301_v54 }
 0x9d6   :  { %2937 = vrsqrt.f32 %v2120_v62  ;;  %vm2197_vm8 = vweird.f32 %v2120_v62 }
 0x9d9   :  { %2324 = vmatpush.bf16.msrb.mxu2 %v2300_v56  ;;  %v2776_v56 = vld [vmem:[%s4522_s15] ss:$0 sm:$0xff] }
 0x9dc   :  { %v2938_v7 = vpop.eup %2937 }
 0x9dd   :  { %v2192_v57 = vmul.f32 %v2938_v7, %v2120_v62  ;;  %vm2198_vm7 = vweird.f32 %v2938_v7 }
 0x9de   :  { %vm2199_vm9 = vmor %vm2197_vm8, %vm2198_vm7 }
 0x9df   :  { %v2193_v59 = vmul.f32 %v2938_v7, %v2192_v57 }
 0x9e1   :  { %v2194_v33 = vmul.f32 0.5, %v2193_v59 }
 0x9e3   :  { %v2195_v47 = vsub.f32 1.5, %v2194_v33 }
 0x9e5   :  { %v2196_v43 = vmul.f32 %v2938_v7, %v2195_v47 }
 0x9e7   :  { %v2200_v15 = vsel %vm2199_vm9, %v2938_v7, %v2196_v43 }
 0x9e8   :  { %v2208_v58 = vmul.f32 %v2200_v15, %v4309_v32  ;;  %v2775_v32 = vld [vmem:[%s4536_s0] ss:$0 sm:$0xff] }
 0x9ea   :  { %v2216_v4 = vmul.f32 %v2719_v19, %v2208_v58 }
 0x9ec   :  { %v2224_v48 = vadd.f32 %v2727_v61, %v2216_v4 }
 0x9ee   :  { %v2232_v0 = vpack.c.bf16 %v2224_v48, %v2223_v42  ;;  %v2747_v42 = vld [vmem:[%s4523_s16 + $0x28] sm:$0x7f]  ;;  %v2754_v48 = vld [vmem:[%s4523_s16 + $0x30] sm:$0xff] }
 0x9f0   :  { %2731 = vmatmul.msk.bf16.gmra.mxu1 %vm142_vm2, %v2232_v0  ;;  %v2755_v0 = vld [vmem:[%s4523_s16 + $0x38] sm:$0x7f] }
 0x9f2   :  { %v2260_v29 = vpop.f32.mrf.mxu1 }
 0x9f3   :  { %v2261_v25 = vadd.f32 %v2775_v32, %v2260_v29 }
 0x9f5   :  { %v2280_v21 = vmax.f32 %v2261_v25, 0.0 }
 0x9fa   :  { %v2262_v38 = vpop.f32.mrf.mxu1 }
 0x9fb   :  { %v2263_v23 = vadd.f32 %v2775_v32, %v2262_v38  ;;  %v2514_v38 = vpack.c.bf16 %v2755_v0, %v2754_v48 }
 0x9fd   :  { %v2281_v45 = vmax.f32 %v2263_v23, 0.0  ;;  %v2737_v23 = vld [vmem:[%s4523_s16 + $0x10] sm:$0xff] }
 0x9ff   :  { %v2296_v55 = vpack.c.bf16 %v2281_v45, %v2280_v21  ;;  %v2738_v21 = vld [vmem:[%s4523_s16 + $0x18] sm:$0x7f] }
 0xa00   :  { %v2403_v45 = vpack.c.bf16 %v2738_v21, %v2737_v23 }
 0xa01   :  { %2732 = vmatmul.msk.bf16.vlgmr.msrb.gmra.mxu2 %vm2304_vm10, %v2296_v55  ;;  %v2742_v55 = vld [vmem:[%s4524_s17 + $0x30] sm:$0xff] }
 0xa30   :  { %v2265_v40 = vpop.f32.mrf.mxu1 }
 0xa31   :  { %v2266_v9 = vadd.f32 %v2775_v32, %v2265_v40  ;;  %v2743_v40 = vld [vmem:[%s4524_s17 + $0x38] sm:$0xff] }
 0xa33   :  { %v2282_v5 = vmax.f32 %v2266_v9, 0.0  ;;  %v2428_v9 = vpack.c.bf16 %v2743_v40, %v2742_v55 }
 0xa38   :  { %v2267_v2 = vpop.f32.mrf.mxu1 }
 0xa39   :  { %v2268_v50 = vadd.f32 %v2775_v32, %v2267_v2  ;;  %v2740_v2 = vld [vmem:[%s4524_s17 + $0x20] sm:$0xff] }
 0xa3b   :  { %v2283_v1 = vmax.f32 %v2268_v50, 0.0  ;;  %v2741_v50 = vld [vmem:[%s4524_s17 + $0x28] sm:$0xff] }
 0xa3d   :  { %v2297_v28 = vpack.c.bf16 %v2283_v1, %v2282_v5  ;;  %v2427_v5 = vpack.c.bf16 %v2741_v50, %v2740_v2  ;;  %v2395_v1 = vld [vmem:[%s4524_s17 + $0x10] sm:$0xff] }
 0xa3f   :  { %2733 = vmatmul.msk.bf16.gmra.mxu2 %vm2304_vm10, %v2297_v28  ;;  %v2396_v28 = vld [vmem:[%s4524_s17 + $0x18] sm:$0xff] }
 0xa40   :  { %v2270_v30 = vpop.f32.mrf.mxu1 }
 0xa41   :  { %v2271_v13 = vadd.f32 %v2775_v32, %v2270_v30  ;;  %v2393_v30 = vld [vmem:[%s4524_s17] sm:$0xff] }
 0xa43   :  { %v2284_v36 = vmax.f32 %v2271_v13, 0.0  ;;  %v2399_v13 = vpack.c.bf16 %v2396_v28, %v2395_v1 }
 0xa48   :  { %v2272_v41 = vpop.f32.mrf.mxu1 }
 0xa49   :  { %v2273_v34 = vadd.f32 %v2775_v32, %v2272_v41  ;;  %v2394_v41 = vld [vmem:[%s4524_s17 + $0x8] sm:$0xff] }
 0xa4b   :  { %v2285_v39 = vmax.f32 %v2273_v34, 0.0  ;;  %v2398_v34 = vpack.c.bf16 %v2394_v41, %v2393_v30 }
 0xa4d   :  { %v2298_v51 = vpack.c.bf16 %v2285_v39, %v2284_v36 }
 0xa4f   :  { %2734 = vmatmul.msk.bf16.gmra.mxu2 %vm2304_vm10, %v2298_v51  ;;  %v2751_v51 = vld [vmem:[%s4524_s17 + $0x50] sm:$0xff] }
 0xa6d   :  { %v2275_v44 = vpop.f32.mrf.mxu1 }
 0xa6e   :  { %v2276_v26 = vadd.f32 %v2775_v32, %v2275_v44  ;;  %v2752_v44 = vld [vmem:[%s4524_s17 + $0x58] sm:$0xff] }
 0xa70   :  { %v2286_v35 = vmax.f32 %v2276_v26, 0.0  ;;  %v2491_v26 = vpack.c.bf16 %v2752_v44, %v2751_v51 }
 0xa72   :  { %2501 = vmatpush.bf16.msra.mxu1 %v2491_v26 }
 0xa75   :  { %v2277_v62 = vpop.f32.mrf.mxu1 }
 0xa76   :  { %v2278_v52 = vadd.f32 %v2775_v32, %v2277_v62 }
 0xa78   :  { %v2287_v60 = vmax.f32 %v2278_v52, 0.0  ;;  %v2749_v52 = vld [vmem:[%s4524_s17 + $0x40] sm:$0xff] }
 0xa7a   :  { %v2299_v20 = vpack.c.bf16 %v2287_v60, %v2286_v35  ;;  %v2750_v35 = vld [vmem:[%s4524_s17 + $0x48] sm:$0xff] }
 0xa7c   :  { %2735 = vmatmul.msk.bf16.gmra.mxu2 %vm2304_vm10, %v2299_v20  ;;  %v2490_v20 = vpack.c.bf16 %v2750_v35, %v2749_v52 }
 0xa7e   :  { %2502 = vmatpush.bf16.msra.mxu1 %v2490_v20 }
 0xa84   :  { %v2326_v63 = vpop.f32.mrf.mxu2 }
 0xa85   :  { %v2346_v10 = vadd.f32 %v2326_v63, %v4205_v53  ;;  %v2746_v53 = vld [vmem:[%s4523_s16 + $0x20] sm:$0xff] }
 0xa86   :  { %v2466_v25 = vpack.c.bf16 %v2747_v42, %v2746_v53 }
 0xa87   :  { %v2358_v4 = vadd.f32 %v2776_v56, %v2346_v10 }
 0xa8c   :  { %v2328_v18 = vpop.f32.mrf.mxu2 }
 0xac2   :  { %v2331_v49 = vpop.f32.mrf.mxu2 }
 0xaca   :  { %v2333_v54 = vpop.f32.mrf.mxu2 }
 0xacb   :  { %v2349_v46 = vadd.f32 %v2333_v54, %v4220_v3  ;;  %v2760_v54 = vld [vmem:[%s4524_s17 + $0x78] sm:$0xff] }
 0xacd   :  { %v2361_v8 = vadd.f32 %v2776_v56, %v2349_v46 }
 0xad2   :  { %v2336_v7 = vpop.f32.mrf.mxu2 }
 0xad3   :  { %v2350_v6 = vadd.f32 %v2336_v7, %v4225_v37 }
 0xad5   :  { %v2362_v58 = vadd.f32 %v2776_v56, %v2350_v6 }
 0xada   :  { %v2338_v11 = vpop.f32.mrf.mxu2 }
 0xadb   :  { %v2351_v12 = vadd.f32 %v2338_v11, %v4230_v27 }
 0xadd   :  { %v2363_v15 = vadd.f32 %v2776_v56, %v2351_v12 }
 0xadf   :  { %v2371_v27 = vpack.c.bf16 %v2363_v15, %v2362_v58 }
 0xaff   :  { %v2341_v17 = vpop.f32.mrf.mxu2 }
 0xb00   :  { %v2352_v16 = vadd.f32 %v2341_v17, %v4235_v31  ;;  %v2348_v31 = vadd.f32 %v2331_v49, %v4215_v24  ;;  %v2366_v24 = vld [vmem:[%s4523_s16] sm:$0xff]  ;;  %v2759_v49 = vld [vmem:[%s4524_s17 + $0x70] sm:$0xff] }
 0xb01   :  { %v2539_v11 = vpack.c.bf16 %v2760_v54, %v2759_v49 }
 0xb02   :  { %v2364_v33 = vadd.f32 %v2776_v56, %v2352_v16  ;;  %v2360_v61 = vadd.f32 %v2776_v56, %v2348_v31  ;;  %v2757_v16 = vld [vmem:[%s4524_s17 + $0x60] sm:$0xff] }
 0xb04   :  { %v2370_v37 = vpack.c.bf16 %v2361_v8, %v2360_v61 }
 0xb07   :  { %v2343_v57 = vpop.f32.mrf.mxu2 }
 0xb08   :  { %v2353_v59 = vadd.f32 %v2343_v57, %v4248_v22  ;;  %v2347_v22 = vadd.f32 %v2328_v18, %v4210_v14  ;;  %v2367_v14 = vld [vmem:[%s4523_s16 + $0x8] sm:$0x7f]  ;;  %s2567_s16 = sshll.u32 %s4525_s18, 4  ;;  %s2568_s16 = int_to_ptr.hbm [resolvable:$true] %s2567_s16 }
 0xb09   :  { %v2368_v32 = vpack.c.bf16 %v2367_v14, %v2366_v24  ;;  %v2758_v57 = vld [vmem:[%s4524_s17 + $0x68] sm:$0xff]  ;;  %s2972_s17 = smov [#allocation3]  }
 0xb0a   :  { %v2365_v47 = vadd.f32 %v2776_v56, %v2353_v59  ;;  %v2359_v3 = vadd.f32 %v2776_v56, %v2347_v22  ;;  %v2538_v56 = vpack.c.bf16 %v2758_v57, %v2757_v16  ;;  %s2565_s27 = sshll.u32 %s2972_s17, 4  ;;  %s2566_s27 = int_to_ptr.vmem [resolvable:$true] %s2565_s27 }
 0xb0c   :  { %v2372_v43 = vpack.c.bf16 %v2365_v47, %v2364_v33  ;;  %v2369_v29 = vpack.c.bf16 %v2359_v3, %v2358_v4 }
 0xb0e   :  { %v2377_v19 = vsel %vm1060_vm15, %v2372_v43, 0 }
 0xb0f   :  { %2383 = vmatpush.bf16.msra.mxu3 %v2377_v19  ;;  %2474 = vmatpush.bf16.msrb.mxu0 %v2377_v19 }
 0xb10   :  { %2522 = vmatpush.bf16.msra.mxu2 %v2377_v19 }
 0xb13   :  { %2384 = vmatpush.bf16.msra.mxu3 %v2371_v27  ;;  %2475 = vmatpush.bf16.msrb.mxu0 %v2371_v27 }
 0xb14   :  { %2523 = vmatpush.bf16.msra.mxu2 %v2371_v27 }
 0xb17   :  { %2385 = vmatpush.bf16.msra.mxu3 %v2370_v37  ;;  %2476 = vmatpush.bf16.msrb.mxu0 %v2370_v37 }
 0xb18   :  { %2524 = vmatpush.bf16.msra.mxu2 %v2370_v37 }
 0xb1b   :  { %2386 = vmatpush.bf16.msra.mxu3 %v2369_v29  ;;  %2477 = vmatpush.bf16.msrb.mxu0 %v2369_v29 }
 0xb1c   :  { %2525 = vmatpush.bf16.msra.mxu2 %v2369_v29 }
 0xb1e   :  { %2736 = vmatmul.msk.bf16.vlgmr.msra.gmra.mxu3 %vm950_vm1, %v2368_v32  ;;  %2748 = vmatmul.msk.bf16.vlgmr.msrb.gmra.mxu0 %vm950_vm1, %v2466_v25 }
 0xb1f   :  { %2411 = vmatpush.bf16.msrb.mxu3 %v2377_v19  ;;  %2756 = vmatmul.msk.bf16.vlgmr.msra.gmra.mxu2 %vm950_vm1, %v2514_v38 }
 0xb23   :  { %2412 = vmatpush.bf16.msrb.mxu3 %v2371_v27 }
 0xb27   :  { %2413 = vmatpush.bf16.msrb.mxu3 %v2370_v37 }
 0xb2b   :  { %2414 = vmatpush.bf16.msrb.mxu3 %v2369_v29 }
 0xb2e   :  { %2739 = vmatmul.msk.bf16.vlgmr.msrb.gmra.mxu3 %vm950_vm1, %v2403_v45 }
 0xb2f   :  { %2438 = vmatpush.bf16.msra.mxu3 %v2428_v9 }
 0xb33   :  { %2439 = vmatpush.bf16.msra.mxu3 %v2427_v5 }
 0xb37   :  { %2455 = vmatpush.bf16.msrb.mxu3 %v2399_v13 }
 0xb3b   :  { %2456 = vmatpush.bf16.msrb.mxu3 %v2398_v34 }
 0xb9b   :  { %v2479_v39 = vpop.f32.mrf.mxu0 }
 0xba1   :  { %v2388_v36 = vpop.f32.mrf.mxu3 }
 0xba2   :  { %v2527_v12 = vpop.f32.mrf.mxu2 }
 0xba3   :  { %v2481_v60 = vpop.f32.mrf.mxu0 }
 0xba4   :  { %v2489_v63 = vpack.c.bf16 %v2481_v60, %v2479_v39 }
 0xba6   :  { %2753 = vmatmul.msk.bf16.vlgmr.msra.gmra.mxu1 %vm142_vm2, %v2489_v63 }
 0xba9   :  { %v2390_v62 = vpop.f32.mrf.mxu3 }
 0xbaa   :  { %v2397_v59 = vpack.c.bf16 %v2390_v62, %v2388_v36  ;;  %v2529_v33 = vpop.f32.mrf.mxu2 }
 0xbab   :  { %v2537_v47 = vpack.c.bf16 %v2529_v33, %v2527_v12 }
 0xbb1   :  { %v2416_v18 = vpop.f32.mrf.mxu3 }
 0xbb9   :  { %v2418_v7 = vpop.f32.mrf.mxu3 }
 0xbba   :  { %v2426_v17 = vpack.c.bf16 %v2418_v7, %v2416_v18 }
 0xbbc   :  { %2744 = vmatmul.msk.bf16.vlgmr.msra.gmra.mxu3 %vm142_vm2, %v2426_v17 }
 0xbbd   :  { %2549 = vmatpush.bf16.msra.mxu3 %v2539_v11 }
 0xbc1   :  { %2550 = vmatpush.bf16.msra.mxu3 %v2538_v56 }
 0xbcc   :  { %2745 = vmatmul.msk.bf16.vlgmr.msrb.gmra.mxu3 %vm142_vm2, %v2397_v59 }
 0xbdc   :  { %2761 = vmatmul.msk.bf16.vlgmr.msra.gmra.mxu3 %vm142_vm2, %v2537_v47 }
 0xc23   :  { %v2504_v31 = vpop.f32.mrf.mxu1 }
 0xc2b   :  { %v2506_v10 = vpop.f32.mrf.mxu1 }
 0xc3f   :  { %v2441_v6 = vpop.f32.mrf.mxu3 }
 0xc47   :  { %v2443_v43 = vpop.f32.mrf.mxu3 }
 0xc4f   :  { %v2458_v46 = vpop.f32.mrf.mxu3 }
 0xc50   :  { %v2459_v19 = vadd.f32 %v2458_v46, %v2441_v6 }
 0xc52   :  { %v2509_v58 = vadd.f32 %v2504_v31, %v2459_v19 }
 0xc57   :  { %v2460_v15 = vpop.f32.mrf.mxu3 }
 0xc58   :  { %v2461_v27 = vadd.f32 %v2460_v15, %v2443_v43 }
 0xc5a   :  { %v2510_v61 = vadd.f32 %v2506_v10, %v2461_v27 }
 0xc5f   :  { %v2552_v22 = vpop.f32.mrf.mxu3 }
 0xc60   :  { %v2557_v8 = vadd.f32 %v2552_v22, %v2509_v58 }
 0xc62   :  { %2559 = vst [vmem:[#allocation3] sm:$0xff] %v2557_v8 }
 0xc67   :  { %v2554_v3 = vpop.f32.mrf.mxu3 }
 0xc68   :  { %v2558_v37 = vadd.f32 %v2554_v3, %v2510_v61 }
 0xc6a   :  { %2560 = vst [vmem:[#allocation3 + $0x8] sm:$0x7f] %v2558_v37 }
 0xc6b   :  { %2573 = dma.vmem_to_hbm [thread:$0]  %s2566_s27, 256, %s2568_s16, [#allocation4], %s2973_s12, %s2973_s12, %s2969_s7  }
 0xc6c   :  { %2963 = dma.done.wait [#allocation4], 256  }
 0xc6d   :  { %2964 = vsyncadd [#allocation4], 4294967040 }
 0xc6e   :  { %2578 = vsyncpa [#allocation4], 1 }

</bundles_post_ra>
